<compile_context>
chip_gen: v7x
topology: tpu7x:2x2x1
jax: 0.10.0
libtpu: 0.0.40
codegen_flags: <defaults>
</compile_context>

<pallas_src>
import jax
import jax.numpy as jnp
from jax.experimental import pallas as pl
from jax.experimental.pallas import tpu as pltpu

# ----------------------------- sizes ---------------------------------------
C_IN = 3        # point-cloud input channels
C_PAD = 8       # channels padded so conv1 is a single MXU matmul
N_PTS = 16      # points per sample
FEAT = 64       # pointnet output feature dim
HID = 128       # LSTM hidden dim
LOC = 2         # g_loc output dim
HEAD_W = 128    # fused head width (64 g_vec + 2 g_loc + padding), lane-dense


# --------------------------- fused kernel -----------------------------------
def _make_kernel(B, L):
    BL = B * L

    def kernel(x_ref, h0_ref, c0_ref,
               w1_ref, b1_ref, w2_ref, b2_ref, wa_ref, ba_ref,
               wih_ref, whh_ref, bg_ref, whead_ref, bhead_ref,
               attn_ref, head_ref, hn_ref, cn_ref,
               hs_ref):
        # ============ GlobalPointNet: all B*L samples (time-major) ==========
        # conv1 (k=1): single MXU matmul, channels zero-padded to 8.
        h1 = jnp.maximum(
            jnp.dot(x_ref[...], w1_ref[...],
                    preferred_element_type=jnp.float32) + b1_ref[...],
            0.0)                                          # (BL*N, FEAT) f32
        # conv2 (k=1): one MXU matmul (bf16 operands, f32 accumulate).
        h2 = jnp.maximum(
            jnp.dot(h1.astype(jnp.bfloat16), w2_ref[...],
                    preferred_element_type=jnp.float32) + b2_ref[...],
            0.0)                                          # (BL*N, FEAT)
        h2_3d = h2.reshape(BL, N_PTS, FEAT)

        # Attention logits + lane-dense softmax (point axis on lanes).
        logits = jnp.sum(h2_3d * wa_ref[...], axis=-1) + ba_ref[...]  # (BL, N)
        m = jnp.max(logits, axis=-1, keepdims=True)
        e = jnp.exp(logits - m)
        denom = jnp.sum(e, axis=-1, keepdims=True)
        attn = e / denom                                  # exact softmax
        attn_ref[...] = attn

        # Attention-weighted sum over points -> per-sample 64-d feature.
        feat = jnp.sum(h2_3d * attn[:, :, None], axis=1)  # (BL, FEAT)

        # ============ GlobalRNN: LSTM over L, batch B, VMEM resident =========
        # Hoisted input projection: one MXU matmul for all timesteps.  Rows
        # are already time-major (t, b) thanks to the wrapper reordering.
        gx_all = (jnp.dot(feat.astype(jnp.bfloat16), wih_ref[...],
                          preferred_element_type=jnp.float32)
                  + bg_ref[...])                          # (BL, 4*HID)

        h = h0_ref[...]                                   # (B, HID) f32
        c = c0_ref[...]
        # Short static trip count -> fully unrolled.  (Use lax.fori_loop with
        # modest unroll if L ever grows well beyond 8.)
        for t in range(L):
            gates = gx_all[t * B:(t + 1) * B, :] + jnp.dot(
                h.astype(jnp.bfloat16), whh_ref[...],
                preferred_element_type=jnp.float32)       # (B, 4*HID)
            # PyTorch gate order: i, f, g, o.
            i_g = jax.nn.sigmoid(gates[:, 0 * HID:1 * HID])
            f_g = jax.nn.sigmoid(gates[:, 1 * HID:2 * HID])
            g_g = jnp.tanh(gates[:, 2 * HID:3 * HID])
            o_g = jax.nn.sigmoid(gates[:, 3 * HID:4 * HID])
            c = f_g * c + i_g * g_g
            h = o_g * jnp.tanh(c)
            hs_ref[pl.ds(t * B, B), :] = h                # (B, HID) slab

        hn_ref[...] = h
        cn_ref[...] = c

        # Hoisted, fused heads: one lane-dense (L*B, 128)@(128, 128) matmul.
        head = (jnp.dot(hs_ref[...].astype(jnp.bfloat16), whead_ref[...],
                        preferred_element_type=jnp.float32)
                + bhead_ref[...])                         # (L*B, HEAD_W)
        head_ref[...] = head

    return kernel


# ----------------------------- parameters -----------------------------------
def init_params(key):
    ks = jax.random.split(key, 13)
    s = 0.1
    pointnet = (
        s * jax.random.normal(ks[0], (C_IN, FEAT), jnp.float32),     # conv1 W
        s * jax.random.normal(ks[1], (1, FEAT), jnp.float32),        # conv1 b
        s * jax.random.normal(ks[2], (FEAT, FEAT), jnp.float32),     # conv2 W
        s * jax.random.normal(ks[3], (1, FEAT), jnp.float32),        # conv2 b
        s * jax.random.normal(ks[4], (1, FEAT), jnp.float32),        # attn W
        s * jax.random.normal(ks[5], (1, 1), jnp.float32),           # attn b
    )
    rnn = (
        s * jax.random.normal(ks[6], (FEAT, 4 * HID), jnp.float32),  # W_ih^T
        s * jax.random.normal(ks[7], (HID, 4 * HID), jnp.float32),   # W_hh^T
        s * jax.random.normal(ks[8], (1, 4 * HID), jnp.float32),     # b_ih+b_hh
        s * jax.random.normal(ks[9], (HID, FEAT), jnp.float32),      # fc_vec W
        s * jax.random.normal(ks[10], (1, FEAT), jnp.float32),       # fc_vec b
        s * jax.random.normal(ks[11], (HID, LOC), jnp.float32),      # fc_loc W
        s * jax.random.normal(ks[12], (1, LOC), jnp.float32),        # fc_loc b
    )
    return pointnet, rnn


# ----------------------------- GlobalModule ----------------------------------
def global_module_forward(x, h0, c0, batch_size, length_size, params):
    """x: (B*L, C_in, N) [PyTorch Conv1d NCW, sample s = b*L + l];
       h0, c0: (1, B, HID)."""
    pointnet_params, rnn_params = params
    w1, b1, w2, b2, wa, ba = pointnet_params
    wih, whh, bg, wv, bv, wl, bl_ = rnn_params

    B, L = batch_size, length_size
    BL = B * L

    # NCW -> time-major (l, b, n, c) row order, channels zero-padded 3 -> 8.
    # This makes conv1 a single MXU matmul and removes the in-kernel
    # time-major permutation entirely.
    x_tm = jnp.transpose(x.reshape(B, L, C_IN, N_PTS), (1, 0, 3, 2))
    x_tm = x_tm.reshape(BL * N_PTS, C_IN)
    x_tm = jnp.pad(x_tm, ((0, 0), (0, C_PAD - C_IN))).astype(jnp.bfloat16)

    w1p = jnp.zeros((C_PAD, FEAT), jnp.float32).at[:C_IN].set(w1)

    # Fuse the two heads into one lane-dense (HID, 128) weight/bias.
    whead = jnp.zeros((HID, HEAD_W), jnp.float32)
    whead = whead.at[:, :FEAT].set(wv).at[:, FEAT:FEAT + LOC].set(wl)
    bhead = jnp.zeros((1, HEAD_W), jnp.float32)
    bhead = bhead.at[:, :FEAT].set(bv).at[:, FEAT:FEAT + LOC].set(bl_)

    kernel = _make_kernel(B, L)
    attn, head, hn, cn = pl.pallas_call(
        kernel,
        out_shape=(
            jax.ShapeDtypeStruct((BL, N_PTS), jnp.float32),    # attn (t-major)
            jax.ShapeDtypeStruct((BL, HEAD_W), jnp.float32),   # heads (t-major)
            jax.ShapeDtypeStruct((B, HID), jnp.float32),       # hn
            jax.ShapeDtypeStruct((B, HID), jnp.float32),       # cn
        ),
        scratch_shapes=[
            pltpu.VMEM((BL, HID), jnp.float32),                # hidden sequence
        ],
    )(x_tm, h0[0], c0[0],
      w1p.astype(jnp.bfloat16), b1,
      w2.astype(jnp.bfloat16), b2, wa, ba,
      wih.astype(jnp.bfloat16), whh.astype(jnp.bfloat16), bg,
      whead.astype(jnp.bfloat16), bhead)

    # Un-permute time-major results back to the module's (b, l) ordering.
    attn_weights = attn.reshape(L, B, N_PTS).transpose(1, 0, 2).reshape(BL, N_PTS)
    head = head.reshape(L, B, HEAD_W)
    g_vec = jnp.transpose(head[:, :, :FEAT], (1, 0, 2))            # (B, L, 64)
    g_loc = jnp.transpose(head[:, :, FEAT:FEAT + LOC], (1, 0, 2))  # (B, L, 2)
    return g_vec, g_loc, attn_weights, hn[None], cn[None]


if __name__ == "__main__":
    B, L = 2, 8
    key = jax.random.PRNGKey(0)
    kx, kh, kc, kp = jax.random.split(key, 4)

    x = jax.random.normal(kx, (B * L, C_IN, N_PTS), jnp.float32)
    h0 = jax.random.normal(kh, (1, B, HID), jnp.float32)
    c0 = jax.random.normal(kc, (1, B, HID), jnp.float32)
    params = init_params(kp)

    fwd = jax.jit(global_module_forward, static_argnums=(3, 4))
    g_vec, g_loc, attn_w, hn, cn = fwd(x, h0, c0, B, L, params)
    jax.block_until_ready((g_vec, g_loc, attn_w, hn, cn))

    assert g_vec.shape == (B, L, FEAT)
    assert g_loc.shape == (B, L, LOC)
    assert attn_w.shape == (B * L, N_PTS)
    assert hn.shape == (1, B, HID) and cn.shape == (1, B, HID)
    assert bool(jnp.all(jnp.isfinite(g_vec))) and bool(jnp.all(jnp.isfinite(g_loc)))
    # softmax rows sum to 1 (exact divide restored per review)
    assert bool(jnp.allclose(jnp.sum(attn_w, axis=-1), 1.0, atol=1e-5))
    print("KERNEL_OK")
</pallas_src>

<mosaic_0001>
module attributes {stable_mosaic.version = 11 : i64} {
  func.func @kernel(%arg0: memref<256x8xbf16, #tpu.memory_space<vmem>>, %arg1: memref<2x128xf32, #tpu.memory_space<vmem>>, %arg2: memref<2x128xf32, #tpu.memory_space<vmem>>, %arg3: memref<8x64xbf16, #tpu.memory_space<vmem>>, %arg4: memref<1x64xf32, #tpu.memory_space<vmem>>, %arg5: memref<64x64xbf16, #tpu.memory_space<vmem>>, %arg6: memref<1x64xf32, #tpu.memory_space<vmem>>, %arg7: memref<1x64xf32, #tpu.memory_space<vmem>>, %arg8: memref<1x1xf32, #tpu.memory_space<vmem>>, %arg9: memref<64x512xbf16, #tpu.memory_space<vmem>>, %arg10: memref<128x512xbf16, #tpu.memory_space<vmem>>, %arg11: memref<1x512xf32, #tpu.memory_space<vmem>>, %arg12: memref<128x128xbf16, #tpu.memory_space<vmem>>, %arg13: memref<1x128xf32, #tpu.memory_space<vmem>>, %arg14: memref<16x16xf32, #tpu.memory_space<vmem>>, %arg15: memref<16x128xf32, #tpu.memory_space<vmem>>, %arg16: memref<2x128xf32, #tpu.memory_space<vmem>>, %arg17: memref<2x128xf32, #tpu.memory_space<vmem>>, %arg18: memref<16x128xf32, #tpu.memory_space<vmem>>) attributes {dimension_semantics = [], scalar_prefetch = 0 : i64, scratch_operands = 1 : i64, tpu.core_type = #tpu.core_type<tc>} {
    %c0 = arith.constant 0 : index
    %c0_0 = arith.constant 0 : index
    %0 = vector.load %arg0[%c0, %c0_0] : memref<256x8xbf16, #tpu.memory_space<vmem>>, vector<256x8xbf16>
    %c0_1 = arith.constant 0 : index
    %c0_2 = arith.constant 0 : index
    %1 = vector.load %arg3[%c0_1, %c0_2] : memref<8x64xbf16, #tpu.memory_space<vmem>>, vector<8x64xbf16>
    %cst = arith.constant dense<0.000000e+00> : vector<256x64xf32>
    %2 = tpu.matmul %0, %1, %cst {dimension_numbers = #tpu.dot_dimension_numbers<[1], [0], [0], [1], [0, 0, 1, 1], [], []>} : vector<256x8xbf16>, vector<8x64xbf16>, vector<256x64xf32> -> vector<256x64xf32>
    %c0_3 = arith.constant 0 : index
    %c0_4 = arith.constant 0 : index
    %3 = vector.load %arg4[%c0_3, %c0_4] : memref<1x64xf32, #tpu.memory_space<vmem>>, vector<1x64xf32>
    %4 = vector.broadcast %3 : vector<1x64xf32> to vector<256x64xf32>
    %5 = arith.addf %2, %4 : vector<256x64xf32>
    %cst_5 = arith.constant 0.000000e+00 : f32
    %6 = vector.broadcast %cst_5 : f32 to vector<256x64xf32>
    %7 = arith.maximumf %5, %6 : vector<256x64xf32>
    %8 = arith.truncf %7 : vector<256x64xf32> to vector<256x64xbf16>
    %c0_6 = arith.constant 0 : index
    %c0_7 = arith.constant 0 : index
    %9 = vector.load %arg5[%c0_6, %c0_7] : memref<64x64xbf16, #tpu.memory_space<vmem>>, vector<64x64xbf16>
    %cst_8 = arith.constant dense<0.000000e+00> : vector<256x64xf32>
    %10 = tpu.matmul %8, %9, %cst_8 {dimension_numbers = #tpu.dot_dimension_numbers<[1], [0], [0], [1], [0, 0, 1, 1], [], []>} : vector<256x64xbf16>, vector<64x64xbf16>, vector<256x64xf32> -> vector<256x64xf32>
    %c0_9 = arith.constant 0 : index
    %c0_10 = arith.constant 0 : index
    %11 = vector.load %arg6[%c0_9, %c0_10] : memref<1x64xf32, #tpu.memory_space<vmem>>, vector<1x64xf32>
    %12 = vector.broadcast %11 : vector<1x64xf32> to vector<256x64xf32>
    %13 = arith.addf %10, %12 : vector<256x64xf32>
    %cst_11 = arith.constant 0.000000e+00 : f32
    %14 = vector.broadcast %cst_11 : f32 to vector<256x64xf32>
    %15 = arith.maximumf %13, %14 : vector<256x64xf32>
    %16 = vector.shape_cast %15 : vector<256x64xf32> to vector<16x16x64xf32>
    %c0_12 = arith.constant 0 : index
    %c0_13 = arith.constant 0 : index
    %17 = vector.load %arg7[%c0_12, %c0_13] : memref<1x64xf32, #tpu.memory_space<vmem>>, vector<1x64xf32>
    %18 = vector.shape_cast %17 : vector<1x64xf32> to vector<1x1x64xf32>
    %19 = vector.broadcast %18 : vector<1x1x64xf32> to vector<16x16x64xf32>
    %20 = arith.mulf %16, %19 : vector<16x16x64xf32>
    %cst_14 = arith.constant dense<0.000000e+00> : vector<16x16xf32>
    %21 = vector.multi_reduction <add>, %20, %cst_14 [2] : vector<16x16x64xf32> to vector<16x16xf32>
    %c0_15 = arith.constant 0 : index
    %c0_16 = arith.constant 0 : index
    %22 = vector.load %arg8[%c0_15, %c0_16] : memref<1x1xf32, #tpu.memory_space<vmem>>, vector<1x1xf32>
    %23 = vector.broadcast %22 : vector<1x1xf32> to vector<16x16xf32>
    %24 = arith.addf %21, %23 : vector<16x16xf32>
    %cst_17 = arith.constant dense<0xFF800000> : vector<16xf32>
    %25 = vector.multi_reduction <maximumf>, %24, %cst_17 [1] : vector<16x16xf32> to vector<16xf32>
    %26 = vector.shape_cast %25 : vector<16xf32> to vector<16x1xf32>
    %27 = vector.broadcast %26 : vector<16x1xf32> to vector<16x16xf32>
    %28 = arith.subf %24, %27 : vector<16x16xf32>
    %29 = math.exp %28 : vector<16x16xf32>
    %cst_18 = arith.constant dense<0.000000e+00> : vector<16xf32>
    %30 = vector.multi_reduction <add>, %29, %cst_18 [1] : vector<16x16xf32> to vector<16xf32>
    %31 = vector.shape_cast %30 : vector<16xf32> to vector<16x1xf32>
    %32 = vector.broadcast %31 : vector<16x1xf32> to vector<16x16xf32>
    %33 = arith.divf %29, %32 : vector<16x16xf32>
    %c0_19 = arith.constant 0 : index
    %c0_20 = arith.constant 0 : index
    %34 = vector.load %arg14[%c0_19, %c0_20] : memref<16x16xf32, #tpu.memory_space<vmem>>, vector<16x16xf32>
    tpu.vector_store %arg14[%c0_19, %c0_20], %33 {strides = array<i32>} : memref<16x16xf32, #tpu.memory_space<vmem>>, vector<16x16xf32>,
    %35 = vector.shape_cast %33 : vector<16x16xf32> to vector<16x16x1xf32>
    %36 = vector.broadcast %35 : vector<16x16x1xf32> to vector<16x16x64xf32>
    %37 = arith.mulf %16, %36 : vector<16x16x64xf32>
    %cst_21 = arith.constant dense<0.000000e+00> : vector<16x64xf32>
    %38 = vector.multi_reduction <add>, %37, %cst_21 [1] : vector<16x16x64xf32> to vector<16x64xf32>
    %39 = arith.truncf %38 : vector<16x64xf32> to vector<16x64xbf16>
    %c0_22 = arith.constant 0 : index
    %c0_23 = arith.constant 0 : index
    %40 = vector.load %arg9[%c0_22, %c0_23] : memref<64x512xbf16, #tpu.memory_space<vmem>>, vector<64x512xbf16>
    %cst_24 = arith.constant dense<0.000000e+00> : vector<16x512xf32>
    %41 = tpu.matmul %39, %40, %cst_24 {dimension_numbers = #tpu.dot_dimension_numbers<[1], [0], [0], [1], [0, 0, 1, 1], [], []>} : vector<16x64xbf16>, vector<64x512xbf16>, vector<16x512xf32> -> vector<16x512xf32>
    %c0_25 = arith.constant 0 : index
    %c0_26 = arith.constant 0 : index
    %42 = vector.load %arg11[%c0_25, %c0_26] : memref<1x512xf32, #tpu.memory_space<vmem>>, vector<1x512xf32>
    %43 = vector.broadcast %42 : vector<1x512xf32> to vector<16x512xf32>
    %44 = arith.addf %41, %43 : vector<16x512xf32>
    %c0_27 = arith.constant 0 : index
    %c0_28 = arith.constant 0 : index
    %45 = vector.load %arg1[%c0_27, %c0_28] : memref<2x128xf32, #tpu.memory_space<vmem>>, vector<2x128xf32>
    %c0_29 = arith.constant 0 : index
    %c0_30 = arith.constant 0 : index
    %46 = vector.load %arg2[%c0_29, %c0_30] : memref<2x128xf32, #tpu.memory_space<vmem>>, vector<2x128xf32>
    %47 = vector.extract_strided_slice %44 {offsets = [0, 0], sizes = [2, 512], strides = [1, 1]} : vector<16x512xf32> to vector<2x512xf32>
    %48 = arith.truncf %45 : vector<2x128xf32> to vector<2x128xbf16>
    %c0_31 = arith.constant 0 : index
    %c0_32 = arith.constant 0 : index
    %49 = vector.load %arg10[%c0_31, %c0_32] : memref<128x512xbf16, #tpu.memory_space<vmem>>, vector<128x512xbf16>
    %cst_33 = arith.constant dense<0.000000e+00> : vector<2x512xf32>
    %50 = tpu.matmul %48, %49, %cst_33 {dimension_numbers = #tpu.dot_dimension_numbers<[1], [0], [0], [1], [0, 0, 1, 1], [], []>} : vector<2x128xbf16>, vector<128x512xbf16>, vector<2x512xf32> -> vector<2x512xf32>
    %51 = arith.addf %47, %50 : vector<2x512xf32>
    %52 = vector.extract_strided_slice %51 {offsets = [0, 0], sizes = [2, 128], strides = [1, 1]} : vector<2x512xf32> to vector<2x128xf32>
    %53 = arith.negf %52 : vector<2x128xf32>
    %54 = math.exp %53 : vector<2x128xf32>
    %cst_34 = arith.constant 1.000000e+00 : f32
    %55 = vector.broadcast %cst_34 : f32 to vector<2x128xf32>
    %56 = arith.addf %55, %54 : vector<2x128xf32>
    %57 = arith.divf %55, %56 : vector<2x128xf32>
    %58 = vector.extract_strided_slice %51 {offsets = [0, 128], sizes = [2, 128], strides = [1, 1]} : vector<2x512xf32> to vector<2x128xf32>
    %59 = arith.negf %58 : vector<2x128xf32>
    %60 = math.exp %59 : vector<2x128xf32>
    %cst_35 = arith.constant 1.000000e+00 : f32
    %61 = vector.broadcast %cst_35 : f32 to vector<2x128xf32>
    %62 = arith.addf %61, %60 : vector<2x128xf32>
    %63 = arith.divf %61, %62 : vector<2x128xf32>
    %64 = vector.extract_strided_slice %51 {offsets = [0, 256], sizes = [2, 128], strides = [1, 1]} : vector<2x512xf32> to vector<2x128xf32>
    %65 = math.tanh %64 : vector<2x128xf32>
    %66 = vector.extract_strided_slice %51 {offsets = [0, 384], sizes = [2, 128], strides = [1, 1]} : vector<2x512xf32> to vector<2x128xf32>
    %67 = arith.negf %66 : vector<2x128xf32>
    %68 = math.exp %67 : vector<2x128xf32>
    %cst_36 = arith.constant 1.000000e+00 : f32
    %69 = vector.broadcast %cst_36 : f32 to vector<2x128xf32>
    %70 = arith.addf %69, %68 : vector<2x128xf32>
    %71 = arith.divf %69, %70 : vector<2x128xf32>
    %72 = arith.mulf %63, %46 : vector<2x128xf32>
    %73 = arith.mulf %57, %65 : vector<2x128xf32>
    %74 = arith.addf %72, %73 : vector<2x128xf32>
    %75 = math.tanh %74 : vector<2x128xf32>
    %76 = arith.mulf %71, %75 : vector<2x128xf32>
    %c0_37 = arith.constant 0 : index
    %c0_38 = arith.constant 0 : index
    %77 = vector.load %arg18[%c0_37, %c0_38] : memref<16x128xf32, #tpu.memory_space<vmem>>, vector<2x128xf32>
    tpu.vector_store %arg18[%c0_37, %c0_38], %76 {strides = array<i32>} : memref<16x128xf32, #tpu.memory_space<vmem>>, vector<2x128xf32>,
    %78 = vector.extract_strided_slice %44 {offsets = [2, 0], sizes = [2, 512], strides = [1, 1]} : vector<16x512xf32> to vector<2x512xf32>
    %79 = arith.truncf %76 : vector<2x128xf32> to vector<2x128xbf16>
    %c0_39 = arith.constant 0 : index
    %c0_40 = arith.constant 0 : index
    %80 = vector.load %arg10[%c0_39, %c0_40] : memref<128x512xbf16, #tpu.memory_space<vmem>>, vector<128x512xbf16>
    %cst_41 = arith.constant dense<0.000000e+00> : vector<2x512xf32>
    %81 = tpu.matmul %79, %80, %cst_41 {dimension_numbers = #tpu.dot_dimension_numbers<[1], [0], [0], [1], [0, 0, 1, 1], [], []>} : vector<2x128xbf16>, vector<128x512xbf16>, vector<2x512xf32> -> vector<2x512xf32>
    %82 = arith.addf %78, %81 : vector<2x512xf32>
    %83 = vector.extract_strided_slice %82 {offsets = [0, 0], sizes = [2, 128], strides = [1, 1]} : vector<2x512xf32> to vector<2x128xf32>
    %84 = arith.negf %83 : vector<2x128xf32>
    %85 = math.exp %84 : vector<2x128xf32>
    %cst_42 = arith.constant 1.000000e+00 : f32
    %86 = vector.broadcast %cst_42 : f32 to vector<2x128xf32>
    %87 = arith.addf %86, %85 : vector<2x128xf32>
    %88 = arith.divf %86, %87 : vector<2x128xf32>
    %89 = vector.extract_strided_slice %82 {offsets = [0, 128], sizes = [2, 128], strides = [1, 1]} : vector<2x512xf32> to vector<2x128xf32>
    %90 = arith.negf %89 : vector<2x128xf32>
    %91 = math.exp %90 : vector<2x128xf32>
    %cst_43 = arith.constant 1.000000e+00 : f32
    %92 = vector.broadcast %cst_43 : f32 to vector<2x128xf32>
    %93 = arith.addf %92, %91 : vector<2x128xf32>
    %94 = arith.divf %92, %93 : vector<2x128xf32>
    %95 = vector.extract_strided_slice %82 {offsets = [0, 256], sizes = [2, 128], strides = [1, 1]} : vector<2x512xf32> to vector<2x128xf32>
    %96 = math.tanh %95 : vector<2x128xf32>
    %97 = vector.extract_strided_slice %82 {offsets = [0, 384], sizes = [2, 128], strides = [1, 1]} : vector<2x512xf32> to vector<2x128xf32>
    %98 = arith.negf %97 : vector<2x128xf32>
    %99 = math.exp %98 : vector<2x128xf32>
    %cst_44 = arith.constant 1.000000e+00 : f32
    %100 = vector.broadcast %cst_44 : f32 to vector<2x128xf32>
    %101 = arith.addf %100, %99 : vector<2x128xf32>
    %102 = arith.divf %100, %101 : vector<2x128xf32>
    %103 = arith.mulf %94, %74 : vector<2x128xf32>
    %104 = arith.mulf %88, %96 : vector<2x128xf32>
    %105 = arith.addf %103, %104 : vector<2x128xf32>
    %106 = math.tanh %105 : vector<2x128xf32>
    %107 = arith.mulf %102, %106 : vector<2x128xf32>
    %c2 = arith.constant 2 : index
    %c0_45 = arith.constant 0 : index
    %108 = vector.load %arg18[%c2, %c0_45] : memref<16x128xf32, #tpu.memory_space<vmem>>, vector<2x128xf32>
    tpu.vector_store %arg18[%c2, %c0_45], %107 {strides = array<i32>} : memref<16x128xf32, #tpu.memory_space<vmem>>, vector<2x128xf32>,
    %109 = vector.extract_strided_slice %44 {offsets = [4, 0], sizes = [2, 512], strides = [1, 1]} : vector<16x512xf32> to vector<2x512xf32>
    %110 = arith.truncf %107 : vector<2x128xf32> to vector<2x128xbf16>
    %c0_46 = arith.constant 0 : index
    %c0_47 = arith.constant 0 : index
    %111 = vector.load %arg10[%c0_46, %c0_47] : memref<128x512xbf16, #tpu.memory_space<vmem>>, vector<128x512xbf16>
    %cst_48 = arith.constant dense<0.000000e+00> : vector<2x512xf32>
    %112 = tpu.matmul %110, %111, %cst_48 {dimension_numbers = #tpu.dot_dimension_numbers<[1], [0], [0], [1], [0, 0, 1, 1], [], []>} : vector<2x128xbf16>, vector<128x512xbf16>, vector<2x512xf32> -> vector<2x512xf32>
    %113 = arith.addf %109, %112 : vector<2x512xf32>
    %114 = vector.extract_strided_slice %113 {offsets = [0, 0], sizes = [2, 128], strides = [1, 1]} : vector<2x512xf32> to vector<2x128xf32>
    %115 = arith.negf %114 : vector<2x128xf32>
    %116 = math.exp %115 : vector<2x128xf32>
    %cst_49 = arith.constant 1.000000e+00 : f32
    %117 = vector.broadcast %cst_49 : f32 to vector<2x128xf32>
    %118 = arith.addf %117, %116 : vector<2x128xf32>
    %119 = arith.divf %117, %118 : vector<2x128xf32>
    %120 = vector.extract_strided_slice %113 {offsets = [0, 128], sizes = [2, 128], strides = [1, 1]} : vector<2x512xf32> to vector<2x128xf32>
    %121 = arith.negf %120 : vector<2x128xf32>
    %122 = math.exp %121 : vector<2x128xf32>
    %cst_50 = arith.constant 1.000000e+00 : f32
    %123 = vector.broadcast %cst_50 : f32 to vector<2x128xf32>
    %124 = arith.addf %123, %122 : vector<2x128xf32>
    %125 = arith.divf %123, %124 : vector<2x128xf32>
    %126 = vector.extract_strided_slice %113 {offsets = [0, 256], sizes = [2, 128], strides = [1, 1]} : vector<2x512xf32> to vector<2x128xf32>
    %127 = math.tanh %126 : vector<2x128xf32>
    %128 = vector.extract_strided_slice %113 {offsets = [0, 384], sizes = [2, 128], strides = [1, 1]} : vector<2x512xf32> to vector<2x128xf32>
    %129 = arith.negf %128 : vector<2x128xf32>
    %130 = math.exp %129 : vector<2x128xf32>
    %cst_51 = arith.constant 1.000000e+00 : f32
    %131 = vector.broadcast %cst_51 : f32 to vector<2x128xf32>
    %132 = arith.addf %131, %130 : vector<2x128xf32>
    %133 = arith.divf %131, %132 : vector<2x128xf32>
    %134 = arith.mulf %125, %105 : vector<2x128xf32>
    %135 = arith.mulf %119, %127 : vector<2x128xf32>
    %136 = arith.addf %134, %135 : vector<2x128xf32>
    %137 = math.tanh %136 : vector<2x128xf32>
    %138 = arith.mulf %133, %137 : vector<2x128xf32>
    %c4 = arith.constant 4 : index
    %c0_52 = arith.constant 0 : index
    %139 = vector.load %arg18[%c4, %c0_52] : memref<16x128xf32, #tpu.memory_space<vmem>>, vector<2x128xf32>
    tpu.vector_store %arg18[%c4, %c0_52], %138 {strides = array<i32>} : memref<16x128xf32, #tpu.memory_space<vmem>>, vector<2x128xf32>,
    %140 = vector.extract_strided_slice %44 {offsets = [6, 0], sizes = [2, 512], strides = [1, 1]} : vector<16x512xf32> to vector<2x512xf32>
    %141 = arith.truncf %138 : vector<2x128xf32> to vector<2x128xbf16>
    %c0_53 = arith.constant 0 : index
    %c0_54 = arith.constant 0 : index
    %142 = vector.load %arg10[%c0_53, %c0_54] : memref<128x512xbf16, #tpu.memory_space<vmem>>, vector<128x512xbf16>
    %cst_55 = arith.constant dense<0.000000e+00> : vector<2x512xf32>
    %143 = tpu.matmul %141, %142, %cst_55 {dimension_numbers = #tpu.dot_dimension_numbers<[1], [0], [0], [1], [0, 0, 1, 1], [], []>} : vector<2x128xbf16>, vector<128x512xbf16>, vector<2x512xf32> -> vector<2x512xf32>
    %144 = arith.addf %140, %143 : vector<2x512xf32>
    %145 = vector.extract_strided_slice %144 {offsets = [0, 0], sizes = [2, 128], strides = [1, 1]} : vector<2x512xf32> to vector<2x128xf32>
    %146 = arith.negf %145 : vector<2x128xf32>
    %147 = math.exp %146 : vector<2x128xf32>
    %cst_56 = arith.constant 1.000000e+00 : f32
    %148 = vector.broadcast %cst_56 : f32 to vector<2x128xf32>
    %149 = arith.addf %148, %147 : vector<2x128xf32>
    %150 = arith.divf %148, %149 : vector<2x128xf32>
    %151 = vector.extract_strided_slice %144 {offsets = [0, 128], sizes = [2, 128], strides = [1, 1]} : vector<2x512xf32> to vector<2x128xf32>
    %152 = arith.negf %151 : vector<2x128xf32>
    %153 = math.exp %152 : vector<2x128xf32>
    %cst_57 = arith.constant 1.000000e+00 : f32
    %154 = vector.broadcast %cst_57 : f32 to vector<2x128xf32>
    %155 = arith.addf %154, %153 : vector<2x128xf32>
    %156 = arith.divf %154, %155 : vector<2x128xf32>
    %157 = vector.extract_strided_slice %144 {offsets = [0, 256], sizes = [2, 128], strides = [1, 1]} : vector<2x512xf32> to vector<2x128xf32>
    %158 = math.tanh %157 : vector<2x128xf32>
    %159 = vector.extract_strided_slice %144 {offsets = [0, 384], sizes = [2, 128], strides = [1, 1]} : vector<2x512xf32> to vector<2x128xf32>
    %160 = arith.negf %159 : vector<2x128xf32>
    %161 = math.exp %160 : vector<2x128xf32>
    %cst_58 = arith.constant 1.000000e+00 : f32
    %162 = vector.broadcast %cst_58 : f32 to vector<2x128xf32>
    %163 = arith.addf %162, %161 : vector<2x128xf32>
    %164 = arith.divf %162, %163 : vector<2x128xf32>
    %165 = arith.mulf %156, %136 : vector<2x128xf32>
    %166 = arith.mulf %150, %158 : vector<2x128xf32>
    %167 = arith.addf %165, %166 : vector<2x128xf32>
    %168 = math.tanh %167 : vector<2x128xf32>
    %169 = arith.mulf %164, %168 : vector<2x128xf32>
    %c6 = arith.constant 6 : index
    %c0_59 = arith.constant 0 : index
    %170 = vector.load %arg18[%c6, %c0_59] : memref<16x128xf32, #tpu.memory_space<vmem>>, vector<2x128xf32>
    tpu.vector_store %arg18[%c6, %c0_59], %169 {strides = array<i32>} : memref<16x128xf32, #tpu.memory_space<vmem>>, vector<2x128xf32>,
    %171 = vector.extract_strided_slice %44 {offsets = [8, 0], sizes = [2, 512], strides = [1, 1]} : vector<16x512xf32> to vector<2x512xf32>
    %172 = arith.truncf %169 : vector<2x128xf32> to vector<2x128xbf16>
    %c0_60 = arith.constant 0 : index
    %c0_61 = arith.constant 0 : index
    %173 = vector.load %arg10[%c0_60, %c0_61] : memref<128x512xbf16, #tpu.memory_space<vmem>>, vector<128x512xbf16>
    %cst_62 = arith.constant dense<0.000000e+00> : vector<2x512xf32>
    %174 = tpu.matmul %172, %173, %cst_62 {dimension_numbers = #tpu.dot_dimension_numbers<[1], [0], [0], [1], [0, 0, 1, 1], [], []>} : vector<2x128xbf16>, vector<128x512xbf16>, vector<2x512xf32> -> vector<2x512xf32>
    %175 = arith.addf %171, %174 : vector<2x512xf32>
    %176 = vector.extract_strided_slice %175 {offsets = [0, 0], sizes = [2, 128], strides = [1, 1]} : vector<2x512xf32> to vector<2x128xf32>
    %177 = arith.negf %176 : vector<2x128xf32>
    %178 = math.exp %177 : vector<2x128xf32>
    %cst_63 = arith.constant 1.000000e+00 : f32
    %179 = vector.broadcast %cst_63 : f32 to vector<2x128xf32>
    %180 = arith.addf %179, %178 : vector<2x128xf32>
    %181 = arith.divf %179, %180 : vector<2x128xf32>
    %182 = vector.extract_strided_slice %175 {offsets = [0, 128], sizes = [2, 128], strides = [1, 1]} : vector<2x512xf32> to vector<2x128xf32>
    %183 = arith.negf %182 : vector<2x128xf32>
    %184 = math.exp %183 : vector<2x128xf32>
    %cst_64 = arith.constant 1.000000e+00 : f32
    %185 = vector.broadcast %cst_64 : f32 to vector<2x128xf32>
    %186 = arith.addf %185, %184 : vector<2x128xf32>
    %187 = arith.divf %185, %186 : vector<2x128xf32>
    %188 = vector.extract_strided_slice %175 {offsets = [0, 256], sizes = [2, 128], strides = [1, 1]} : vector<2x512xf32> to vector<2x128xf32>
    %189 = math.tanh %188 : vector<2x128xf32>
    %190 = vector.extract_strided_slice %175 {offsets = [0, 384], sizes = [2, 128], strides = [1, 1]} : vector<2x512xf32> to vector<2x128xf32>
    %191 = arith.negf %190 : vector<2x128xf32>
    %192 = math.exp %191 : vector<2x128xf32>
    %cst_65 = arith.constant 1.000000e+00 : f32
    %193 = vector.broadcast %cst_65 : f32 to vector<2x128xf32>
    %194 = arith.addf %193, %192 : vector<2x128xf32>
    %195 = arith.divf %193, %194 : vector<2x128xf32>
    %196 = arith.mulf %187, %167 : vector<2x128xf32>
    %197 = arith.mulf %181, %189 : vector<2x128xf32>
    %198 = arith.addf %196, %197 : vector<2x128xf32>
    %199 = math.tanh %198 : vector<2x128xf32>
    %200 = arith.mulf %195, %199 : vector<2x128xf32>
    %c8 = arith.constant 8 : index
    %c0_66 = arith.constant 0 : index
    %201 = vector.load %arg18[%c8, %c0_66] : memref<16x128xf32, #tpu.memory_space<vmem>>, vector<2x128xf32>
    tpu.vector_store %arg18[%c8, %c0_66], %200 {strides = array<i32>} : memref<16x128xf32, #tpu.memory_space<vmem>>, vector<2x128xf32>,
    %202 = vector.extract_strided_slice %44 {offsets = [10, 0], sizes = [2, 512], strides = [1, 1]} : vector<16x512xf32> to vector<2x512xf32>
    %203 = arith.truncf %200 : vector<2x128xf32> to vector<2x128xbf16>
    %c0_67 = arith.constant 0 : index
    %c0_68 = arith.constant 0 : index
    %204 = vector.load %arg10[%c0_67, %c0_68] : memref<128x512xbf16, #tpu.memory_space<vmem>>, vector<128x512xbf16>
    %cst_69 = arith.constant dense<0.000000e+00> : vector<2x512xf32>
    %205 = tpu.matmul %203, %204, %cst_69 {dimension_numbers = #tpu.dot_dimension_numbers<[1], [0], [0], [1], [0, 0, 1, 1], [], []>} : vector<2x128xbf16>, vector<128x512xbf16>, vector<2x512xf32> -> vector<2x512xf32>
    %206 = arith.addf %202, %205 : vector<2x512xf32>
    %207 = vector.extract_strided_slice %206 {offsets = [0, 0], sizes = [2, 128], strides = [1, 1]} : vector<2x512xf32> to vector<2x128xf32>
    %208 = arith.negf %207 : vector<2x128xf32>
    %209 = math.exp %208 : vector<2x128xf32>
    %cst_70 = arith.constant 1.000000e+00 : f32
    %210 = vector.broadcast %cst_70 : f32 to vector<2x128xf32>
    %211 = arith.addf %210, %209 : vector<2x128xf32>
    %212 = arith.divf %210, %211 : vector<2x128xf32>
    %213 = vector.extract_strided_slice %206 {offsets = [0, 128], sizes = [2, 128], strides = [1, 1]} : vector<2x512xf32> to vector<2x128xf32>
    %214 = arith.negf %213 : vector<2x128xf32>
    %215 = math.exp %214 : vector<2x128xf32>
    %cst_71 = arith.constant 1.000000e+00 : f32
    %216 = vector.broadcast %cst_71 : f32 to vector<2x128xf32>
    %217 = arith.addf %216, %215 : vector<2x128xf32>
    %218 = arith.divf %216, %217 : vector<2x128xf32>
    %219 = vector.extract_strided_slice %206 {offsets = [0, 256], sizes = [2, 128], strides = [1, 1]} : vector<2x512xf32> to vector<2x128xf32>
    %220 = math.tanh %219 : vector<2x128xf32>
    %221 = vector.extract_strided_slice %206 {offsets = [0, 384], sizes = [2, 128], strides = [1, 1]} : vector<2x512xf32> to vector<2x128xf32>
    %222 = arith.negf %221 : vector<2x128xf32>
    %223 = math.exp %222 : vector<2x128xf32>
    %cst_72 = arith.constant 1.000000e+00 : f32
    %224 = vector.broadcast %cst_72 : f32 to vector<2x128xf32>
    %225 = arith.addf %224, %223 : vector<2x128xf32>
    %226 = arith.divf %224, %225 : vector<2x128xf32>
    %227 = arith.mulf %218, %198 : vector<2x128xf32>
    %228 = arith.mulf %212, %220 : vector<2x128xf32>
    %229 = arith.addf %227, %228 : vector<2x128xf32>
    %230 = math.tanh %229 : vector<2x128xf32>
    %231 = arith.mulf %226, %230 : vector<2x128xf32>
    %c10 = arith.constant 10 : index
    %c0_73 = arith.constant 0 : index
    %232 = vector.load %arg18[%c10, %c0_73] : memref<16x128xf32, #tpu.memory_space<vmem>>, vector<2x128xf32>
    tpu.vector_store %arg18[%c10, %c0_73], %231 {strides = array<i32>} : memref<16x128xf32, #tpu.memory_space<vmem>>, vector<2x128xf32>,
    %233 = vector.extract_strided_slice %44 {offsets = [12, 0], sizes = [2, 512], strides = [1, 1]} : vector<16x512xf32> to vector<2x512xf32>
    %234 = arith.truncf %231 : vector<2x128xf32> to vector<2x128xbf16>
    %c0_74 = arith.constant 0 : index
    %c0_75 = arith.constant 0 : index
    %235 = vector.load %arg10[%c0_74, %c0_75] : memref<128x512xbf16, #tpu.memory_space<vmem>>, vector<128x512xbf16>
    %cst_76 = arith.constant dense<0.000000e+00> : vector<2x512xf32>
    %236 = tpu.matmul %234, %235, %cst_76 {dimension_numbers = #tpu.dot_dimension_numbers<[1], [0], [0], [1], [0, 0, 1, 1], [], []>} : vector<2x128xbf16>, vector<128x512xbf16>, vector<2x512xf32> -> vector<2x512xf32>
    %237 = arith.addf %233, %236 : vector<2x512xf32>
    %238 = vector.extract_strided_slice %237 {offsets = [0, 0], sizes = [2, 128], strides = [1, 1]} : vector<2x512xf32> to vector<2x128xf32>
    %239 = arith.negf %238 : vector<2x128xf32>
    %240 = math.exp %239 : vector<2x128xf32>
    %cst_77 = arith.constant 1.000000e+00 : f32
    %241 = vector.broadcast %cst_77 : f32 to vector<2x128xf32>
    %242 = arith.addf %241, %240 : vector<2x128xf32>
    %243 = arith.divf %241, %242 : vector<2x128xf32>
    %244 = vector.extract_strided_slice %237 {offsets = [0, 128], sizes = [2, 128], strides = [1, 1]} : vector<2x512xf32> to vector<2x128xf32>
    %245 = arith.negf %244 : vector<2x128xf32>
    %246 = math.exp %245 : vector<2x128xf32>
    %cst_78 = arith.constant 1.000000e+00 : f32
    %247 = vector.broadcast %cst_78 : f32 to vector<2x128xf32>
    %248 = arith.addf %247, %246 : vector<2x128xf32>
    %249 = arith.divf %247, %248 : vector<2x128xf32>
    %250 = vector.extract_strided_slice %237 {offsets = [0, 256], sizes = [2, 128], strides = [1, 1]} : vector<2x512xf32> to vector<2x128xf32>
    %251 = math.tanh %250 : vector<2x128xf32>
    %252 = vector.extract_strided_slice %237 {offsets = [0, 384], sizes = [2, 128], strides = [1, 1]} : vector<2x512xf32> to vector<2x128xf32>
    %253 = arith.negf %252 : vector<2x128xf32>
    %254 = math.exp %253 : vector<2x128xf32>
    %cst_79 = arith.constant 1.000000e+00 : f32
    %255 = vector.broadcast %cst_79 : f32 to vector<2x128xf32>
    %256 = arith.addf %255, %254 : vector<2x128xf32>
    %257 = arith.divf %255, %256 : vector<2x128xf32>
    %258 = arith.mulf %249, %229 : vector<2x128xf32>
    %259 = arith.mulf %243, %251 : vector<2x128xf32>
    %260 = arith.addf %258, %259 : vector<2x128xf32>
    %261 = math.tanh %260 : vector<2x128xf32>
    %262 = arith.mulf %257, %261 : vector<2x128xf32>
    %c12 = arith.constant 12 : index
    %c0_80 = arith.constant 0 : index
    %263 = vector.load %arg18[%c12, %c0_80] : memref<16x128xf32, #tpu.memory_space<vmem>>, vector<2x128xf32>
    tpu.vector_store %arg18[%c12, %c0_80], %262 {strides = array<i32>} : memref<16x128xf32, #tpu.memory_space<vmem>>, vector<2x128xf32>,
    %264 = vector.extract_strided_slice %44 {offsets = [14, 0], sizes = [2, 512], strides = [1, 1]} : vector<16x512xf32> to vector<2x512xf32>
    %265 = arith.truncf %262 : vector<2x128xf32> to vector<2x128xbf16>
    %c0_81 = arith.constant 0 : index
    %c0_82 = arith.constant 0 : index
    %266 = vector.load %arg10[%c0_81, %c0_82] : memref<128x512xbf16, #tpu.memory_space<vmem>>, vector<128x512xbf16>
    %cst_83 = arith.constant dense<0.000000e+00> : vector<2x512xf32>
    %267 = tpu.matmul %265, %266, %cst_83 {dimension_numbers = #tpu.dot_dimension_numbers<[1], [0], [0], [1], [0, 0, 1, 1], [], []>} : vector<2x128xbf16>, vector<128x512xbf16>, vector<2x512xf32> -> vector<2x512xf32>
    %268 = arith.addf %264, %267 : vector<2x512xf32>
    %269 = vector.extract_strided_slice %268 {offsets = [0, 0], sizes = [2, 128], strides = [1, 1]} : vector<2x512xf32> to vector<2x128xf32>
    %270 = arith.negf %269 : vector<2x128xf32>
    %271 = math.exp %270 : vector<2x128xf32>
    %cst_84 = arith.constant 1.000000e+00 : f32
    %272 = vector.broadcast %cst_84 : f32 to vector<2x128xf32>
    %273 = arith.addf %272, %271 : vector<2x128xf32>
    %274 = arith.divf %272, %273 : vector<2x128xf32>
    %275 = vector.extract_strided_slice %268 {offsets = [0, 128], sizes = [2, 128], strides = [1, 1]} : vector<2x512xf32> to vector<2x128xf32>
    %276 = arith.negf %275 : vector<2x128xf32>
    %277 = math.exp %276 : vector<2x128xf32>
    %cst_85 = arith.constant 1.000000e+00 : f32
    %278 = vector.broadcast %cst_85 : f32 to vector<2x128xf32>
    %279 = arith.addf %278, %277 : vector<2x128xf32>
    %280 = arith.divf %278, %279 : vector<2x128xf32>
    %281 = vector.extract_strided_slice %268 {offsets = [0, 256], sizes = [2, 128], strides = [1, 1]} : vector<2x512xf32> to vector<2x128xf32>
    %282 = math.tanh %281 : vector<2x128xf32>
    %283 = vector.extract_strided_slice %268 {offsets = [0, 384], sizes = [2, 128], strides = [1, 1]} : vector<2x512xf32> to vector<2x128xf32>
    %284 = arith.negf %283 : vector<2x128xf32>
    %285 = math.exp %284 : vector<2x128xf32>
    %cst_86 = arith.constant 1.000000e+00 : f32
    %286 = vector.broadcast %cst_86 : f32 to vector<2x128xf32>
    %287 = arith.addf %286, %285 : vector<2x128xf32>
    %288 = arith.divf %286, %287 : vector<2x128xf32>
    %289 = arith.mulf %280, %260 : vector<2x128xf32>
    %290 = arith.mulf %274, %282 : vector<2x128xf32>
    %291 = arith.addf %289, %290 : vector<2x128xf32>
    %292 = math.tanh %291 : vector<2x128xf32>
    %293 = arith.mulf %288, %292 : vector<2x128xf32>
    %c14 = arith.constant 14 : index
    %c0_87 = arith.constant 0 : index
    %294 = vector.load %arg18[%c14, %c0_87] : memref<16x128xf32, #tpu.memory_space<vmem>>, vector<2x128xf32>
    tpu.vector_store %arg18[%c14, %c0_87], %293 {strides = array<i32>} : memref<16x128xf32, #tpu.memory_space<vmem>>, vector<2x128xf32>,
    %c0_88 = arith.constant 0 : index
    %c0_89 = arith.constant 0 : index
    %295 = vector.load %arg16[%c0_88, %c0_89] : memref<2x128xf32, #tpu.memory_space<vmem>>, vector<2x128xf32>
    tpu.vector_store %arg16[%c0_88, %c0_89], %293 {strides = array<i32>} : memref<2x128xf32, #tpu.memory_space<vmem>>, vector<2x128xf32>,
    %c0_90 = arith.constant 0 : index
    %c0_91 = arith.constant 0 : index
    %296 = vector.load %arg17[%c0_90, %c0_91] : memref<2x128xf32, #tpu.memory_space<vmem>>, vector<2x128xf32>
    tpu.vector_store %arg17[%c0_90, %c0_91], %291 {strides = array<i32>} : memref<2x128xf32, #tpu.memory_space<vmem>>, vector<2x128xf32>,
    %c0_92 = arith.constant 0 : index
    %c0_93 = arith.constant 0 : index
    %297 = vector.load %arg18[%c0_92, %c0_93] : memref<16x128xf32, #tpu.memory_space<vmem>>, vector<16x128xf32>
    %298 = arith.truncf %297 : vector<16x128xf32> to vector<16x128xbf16>
    %c0_94 = arith.constant 0 : index
    %c0_95 = arith.constant 0 : index
    %299 = vector.load %arg12[%c0_94, %c0_95] : memref<128x128xbf16, #tpu.memory_space<vmem>>, vector<128x128xbf16>
    %cst_96 = arith.constant dense<0.000000e+00> : vector<16x128xf32>
    %300 = tpu.matmul %298, %299, %cst_96 {dimension_numbers = #tpu.dot_dimension_numbers<[1], [0], [0], [1], [0, 0, 1, 1], [], []>} : vector<16x128xbf16>, vector<128x128xbf16>, vector<16x128xf32> -> vector<16x128xf32>
    %c0_97 = arith.constant 0 : index
    %c0_98 = arith.constant 0 : index
    %301 = vector.load %arg13[%c0_97, %c0_98] : memref<1x128xf32, #tpu.memory_space<vmem>>, vector<1x128xf32>
    %302 = vector.broadcast %301 : vector<1x128xf32> to vector<16x128xf32>
    %303 = arith.addf %300, %302 : vector<16x128xf32>
    %c0_99 = arith.constant 0 : index
    %c0_100 = arith.constant 0 : index
    %304 = vector.load %arg15[%c0_99, %c0_100] : memref<16x128xf32, #tpu.memory_space<vmem>>, vector<16x128xf32>
    tpu.vector_store %arg15[%c0_99, %c0_100], %303 {strides = array<i32>} : memref<16x128xf32, #tpu.memory_space<vmem>>, vector<16x128xf32>,
    return
  }
}

</mosaic_0001>

<bundles_post_ra>
// kernel: global_module_forward.1
= control target key start
LH: loop header
LB: loop body
LE: loop exit
PB: predicated region body
PF: predicated region fallthrough
CT: control target
= control target key end

     0   :  { %s8180_s0 = inlined_call_operand.vmem [shape: bf16[256,8], index: 0, kind: input, shape index: {}]   ;;  %s8181_s1 = inlined_call_operand.vmem [shape: f32[2,128], index: 1, kind: input, shape index: {}]   ;;  %s8182_s2 = inlined_call_operand.vmem [shape: f32[2,128], index: 2, kind: input, shape index: {}]   ;;  %s8183_s3 = inlined_call_operand.vmem [shape: bf16[8,64], index: 3, kind: input, shape index: {}]   ;;  %s8184_s4 = inlined_call_operand.vmem [shape: f32[1,64], index: 4, kind: input, shape index: {}]   ;;  %s8185_s5 = inlined_call_operand.vmem [shape: bf16[64,64], index: 5, kind: input, shape index: {}]   ;;  %s8186_s6 = inlined_call_operand.vmem [shape: f32[1,64], index: 6, kind: input, shape index: {}]   ;;  %s8187_s7 = inlined_call_operand.vmem [shape: f32[1,64], index: 7, kind: input, shape index: {}]   ;;  %s8188_s8 = inlined_call_operand.<no memory space> [shape: f32[1,1], index: 8, kind: input, shape index: {}]   ;;  %s8189_s9 = inlined_call_operand.vmem [shape: bf16[64,512], index: 9, kind: input, shape index: {}]   ;;  %s8190_s10 = inlined_call_operand.vmem [shape: bf16[128,512], index: 10, kind: input, shape index: {}]   ;;  %s8191_s11 = inlined_call_operand.vmem [shape: f32[1,512], index: 11, kind: input, shape index: {}]   ;;  %s8192_s12 = inlined_call_operand.vmem [shape: bf16[128,128], index: 12, kind: input, shape index: {}]   ;;  %s8193_s13 = inlined_call_operand.vmem [shape: f32[1,128], index: 13, kind: input, shape index: {}]   ;;  %s8194_s14 = inlined_call_operand.vmem [shape: f32[16,16], index: 14, kind: output, shape index: {0}]   ;;  %s8195_s15 = inlined_call_operand.vmem [shape: f32[16,128], index: 15, kind: output, shape index: {1}]   ;;  %s8196_s16 = inlined_call_operand.hbm [shape: f32[2,128], index: 16, kind: output, shape index: {2}]   ;;  %s8197_s17 = inlined_call_operand.hbm [shape: f32[2,128], index: 17, kind: output, shape index: {3}]  }
   0x1   :  { %8268 = sst [smem:[#allocation45_spill]] %s8180_s0  ;;  %v23_v0 = vstv %s8188_s8 }
   0x2   :  { %8269 = sst [smem:[#allocation46_spill]] %s8181_s1  ;;  %24 = vst [vmem:[#allocation3] sm:$0x1] %v23_v0 }
   0x3   :  { %25 = vsyncpa [#allocation5], 0  ;;  %v88_v1 = vld [vmem:[%s8183_s3] sm:$0xf]  ;;  %vm225_vm0 = vcmask 1043456   ;;  %s8270_s0 = sld [smem:[#allocation45_spill]] }
   0x4   :  { %5678 = vmatprep.subr.msk.bf16.mxu0 %vm225_vm0, %v88_v1  ;;  %v227_v3 = vsel %vm225_vm0, %v88_v1, 0  ;;  %vm176_vm1 = vcmask 64512   ;;  %5679 = vmatprep.subr.msk.bf16.mxu1 %vm225_vm0, %v88_v1  ;;  %v5703_v13 = vld [vmem:[%s8185_s5] sm:$0xff]   ;;  %v5704_v15 = vld [vmem:[%s8185_s5 + $0x8] sm:$0xff]  }
   0x5   :  { %5583 = vmatpush3.bf16.msra.mxu0 %v227_v3  ;;  %5677 = vmatpush3.bf16.msra.mxu1 %v227_v3 }
   0x6   :  { %5616 = vmatprep.subr.bf16.mxu1 %v5703_v13 }
   0x9   :  { %v5687_v2 = vld [vmem:[%s8270_s0] sm:$0xff]   ;;  %v5688_v4 = vld [vmem:[%s8270_s0 + $0x8] sm:$0xff]   ;;  %v5689_v5 = vld [vmem:[%s8270_s0 + $0x10] sm:$0xff]  }
   0xa   :  { %5584 = vmatprep.mubr.msk.bf16.mxu0 %vm176_vm1, %v5687_v2  ;;  %v5690_v6 = vld [vmem:[%s8270_s0 + $0x18] sm:$0xff]   ;;  %v5691_v7 = vld [vmem:[%s8270_s0 + $0x20] sm:$0xff]   ;;  %v5700_v9 = vld [vmem:[%s8270_s0 + $0x68] sm:$0xff]  }
   0xb   :  { %5585 = vmatmul.mubr.msk.bf16.vlgmr.msra.gmra.mrb[0].mxu0 %vm176_vm1, %v5688_v4  ;;  %v5699_v8 = vld [vmem:[%s8270_s0 + $0x60] sm:$0xff]   ;;  %v5692_v10 = vld [vmem:[%s8270_s0 + $0x28] sm:$0xff]   ;;  %v5701_v11 = vld [vmem:[%s8270_s0 + $0x70] sm:$0xff]  }
   0xc   :  { %5588 = vmatprep.mubr.msk.bf16.mxu0 %vm176_vm1, %v5689_v5  ;;  %5608 = vmatprep.mubr.msk.bf16.mxu1 %vm176_vm1, %v5699_v8  ;;  %v5693_v12 = vld [vmem:[%s8270_s0 + $0x30] sm:$0xff]   ;;  %v5702_v14 = vld [vmem:[%s8270_s0 + $0x78] sm:$0xff]   ;;  %v5695_v17 = vld [vmem:[%s8270_s0 + $0x40] sm:$0xff]  }
   0xd   :  { %5609 = vmatmul.mubr.msk.bf16.vlgmr.msra.gmra.mrb[0].mxu1 %vm176_vm1, %v5700_v9  ;;  %v5694_v16 = vld [vmem:[%s8270_s0 + $0x38] sm:$0xff]   ;;  %v5696_v18 = vld [vmem:[%s8270_s0 + $0x48] sm:$0xff]   ;;  %v5697_v19 = vld [vmem:[%s8270_s0 + $0x50] sm:$0xff]  }
   0xe   :  { %5612 = vmatprep.mubr.msk.bf16.mxu1 %vm176_vm1, %v5701_v11  ;;  %5617 = vmatpush3.bf16.msra.mxu1 %v5703_v13  ;;  %v5698_v20 = vld [vmem:[%s8270_s0 + $0x58] sm:$0xff]  }
   0xf   :  { %5618 = vmatprep.subr.bf16.mxu1 %v5704_v15 }
  0x12   :  { %5619 = vmatpush3.bf16.msra.mxu1 %v5704_v15 }
  0x13   :  { %5589 = vmatmul.mubr.msk.bf16.gmra.mrb[4].mxu0 %vm176_vm1, %v5690_v6 }
  0x14   :  { %5592 = vmatprep.mubr.msk.bf16.mxu0 %vm176_vm1, %v5691_v7 }
  0x15   :  { %5613 = vmatmul.mubr.msk.bf16.gmra.mrb[4].mxu1 %vm176_vm1, %v5702_v14 }
  0x1b   :  { %5593 = vmatmul.mubr.msk.bf16.gmra.mrb[8].mxu0 %vm176_vm1, %v5692_v10 }
  0x1c   :  { %5596 = vmatprep.mubr.msk.bf16.mxu0 %vm176_vm1, %v5693_v12 }
  0x23   :  { %5597 = vmatmul.mubr.msk.bf16.gmra.mrb[12].mxu0 %vm176_vm1, %v5694_v16 }
  0x24   :  { %5600 = vmatprep.mubr.msk.bf16.mxu0 %vm176_vm1, %v5695_v17 }
  0x2b   :  { %5601 = vmatmul.mubr.msk.bf16.gmra.mrb[16].mxu0 %vm176_vm1, %v5696_v18 }
  0x2c   :  { %5604 = vmatprep.mubr.msk.bf16.mxu0 %vm176_vm1, %v5697_v19 }
  0x33   :  { %5605 = vmatmul.mubr.msk.bf16.gmra.mrb[20].mxu0 %vm176_vm1, %v5698_v20 }
  0x34   :  { %26 = vsyncpa [#allocation7], 0  ;;  %v5705_v21 = vld [vmem:[%s8185_s5 + $0x10] sm:$0xff]   ;;  %v5706_v22 = vld [vmem:[%s8185_s5 + $0x18] sm:$0xff]   ;;  %vm477_vm2 = vcmask 523264   ;;  %vm939_vm3 = vcmask 130112  }
  0x35   :  { %5620 = vmatprep.subr.bf16.mxu1 %v5705_v21  ;;  %v6289_v23 = vld [vmem:[%s8184_s4] ss:$0 sm:$0xff]  ;;  %vm1076_vm4 = vcmask 1041409   ;;  %vm1078_vm5 = vcmask 1042434   ;;  %vm1080_vm6 = vcmask 1043459   ;;  %vm1082_vm7 = vcmask 1044484  }
  0x36   :  { %5621 = vmatpush3.bf16.msra.mxu1 %v5705_v21  ;;  %vm1084_vm8 = vcmask 1045509   ;;  %vm1086_vm9 = vcmask 1046534   ;;  %vm1088_vm10 = vcmask 1047559   ;;  %vm1099_vm11 = vcmask 130048   ;;  %s8374_s19 = sld [smem:[#allocation46_spill]] }
  0x37   :  { %5622 = vmatprep.subr.bf16.mxu1 %v5706_v22  ;;  %vm6111_vm12 = vmmov 0  }
  0x3a   :  { %5623 = vmatpush3.bf16.msra.mxu1 %v5706_v22 }
  0xde   :  { %v5586_v24 = vpop.f32.mrb[0].mxu0 }
  0xdf   :  { %v272_v25 = vadd.f32 %v5586_v24, %v6289_v23  ;;  %v263_v26 = vpop.f32.mrb[1].mxu0 }
  0xe0   :  { %v264_v27 = vadd.f32 %v6289_v23, %v263_v26  ;;  %v5587_v28 = vpop.f32.mrb[2].mxu0  ;;  %v5610_v46 = vpop.f32.mrb[0].mxu1 }
  0xe1   :  { %v275_v29 = vadd.f32 %v5587_v28, %v6289_v23  ;;  %v266_v30 = vpop.f32.mrb[3].mxu0  ;;  %v392_v32 = vmax.f32 %v272_v25, 0.0  ;;  %v368_v48 = vadd.f32 %v5610_v46, %v6289_v23  ;;  %v359_v49 = vpop.f32.mrb[1].mxu1 }
  0xe2   :  { %v267_v31 = vadd.f32 %v6289_v23, %v266_v30  ;;  %v390_v34 = vmax.f32 %v264_v27, 0.0  ;;  %v360_v51 = vadd.f32 %v6289_v23, %v359_v49  ;;  %v5611_v52 = vpop.f32.mrb[2].mxu1 }
  0xe3   :  { %v393_v33 = vmax.f32 %v275_v29, 0.0  ;;  %v416_v55 = vmax.f32 %v368_v48, 0.0  ;;  %v371_v56 = vadd.f32 %v5611_v52, %v6289_v23  ;;  %v362_v57 = vpop.f32.mrb[3].mxu1 }
  0xe4   :  { %v391_v35 = vmax.f32 %v267_v31, 0.0  ;;  %v414_v59 = vmax.f32 %v360_v51, 0.0  ;;  %v363_v60 = vadd.f32 %v6289_v23, %v362_v57 }
  0xe5   :  { %v423_v36 = vpack.c.bf16 %v393_v33, %v392_v32  ;;  %v417_v63 = vmax.f32 %v371_v56, 0.0 }
  0xe6   :  { %v422_v37 = vpack.c.bf16 %v391_v35, %v390_v34  ;;  %v5590_v38 = vpop.f32.mrb[4].mxu0  ;;  %v415_v2 = vmax.f32 %v363_v60, 0.0 }
  0xe7   :  { %v288_v39 = vadd.f32 %v5590_v38, %v6289_v23  ;;  %v279_v40 = vpop.f32.mrb[5].mxu0  ;;  %v6308_v5 = vpack.c.bf16 %v417_v63, %v416_v55 }
  0xe8   :  { %v280_v41 = vadd.f32 %v6289_v23, %v279_v40  ;;  %v5591_v42 = vpop.f32.mrb[6].mxu0  ;;  %5624 = vmatprep.mubr.msk.bf16.mxu1 %vm477_vm2, %v422_v37  ;;  %v6312_v9 = vpack.c.bf16 %v415_v2, %v414_v59  ;;  %v5614_v10 = vpop.f32.mrb[4].mxu1 }
  0xe9   :  { %v396_v43 = vmax.f32 %v288_v39, 0.0  ;;  %v291_v44 = vadd.f32 %v5591_v42, %v6289_v23  ;;  %v282_v45 = vpop.f32.mrb[7].mxu0  ;;  %5625 = vmatmul.mubr.msk.bf16.vlgmr.msra.gmra.mrb[8].mxu1 %vm477_vm2, %v423_v36  ;;  %v384_v12 = vadd.f32 %v5614_v10, %v6289_v23  ;;  %v375_v13 = vpop.f32.mrb[5].mxu1 }
  0xea   :  { %v283_v47 = vadd.f32 %v6289_v23, %v282_v45  ;;  %v394_v53 = vmax.f32 %v280_v41, 0.0  ;;  %v376_v15 = vadd.f32 %v6289_v23, %v375_v13  ;;  %v5615_v16 = vpop.f32.mrb[6].mxu1 }
  0xeb   :  { %v397_v50 = vmax.f32 %v291_v44, 0.0  ;;  %v420_v19 = vmax.f32 %v384_v12, 0.0  ;;  %v387_v20 = vadd.f32 %v5615_v16, %v6289_v23  ;;  %v378_v21 = vpop.f32.mrb[7].mxu1 }
  0xec   :  { %v395_v54 = vmax.f32 %v283_v47, 0.0  ;;  %v418_v24 = vmax.f32 %v376_v15, 0.0  ;;  %v379_v25 = vadd.f32 %v6289_v23, %v378_v21  ;;  %v6363_v15 = vld [vmem:[%s8187_s7] ss:$0 sm:$0xff]  ;;  %s6113_s7 = smov [#allocation6]  }
  0xed   :  { %v425_v58 = vpack.c.bf16 %v397_v50, %v396_v43  ;;  %v421_v28 = vmax.f32 %v387_v20, 0.0  ;;  %s5157_s23 = sshll.u32 %s6113_s7, 4  ;;  %s5158_s23 = int_to_ptr.vmem [resolvable:$true] %s5157_s23 }
  0xee   :  { %v424_v61 = vpack.c.bf16 %v395_v54, %v394_v53  ;;  %v5594_v62 = vpop.f32.mrb[8].mxu0  ;;  %v419_v31 = vmax.f32 %v379_v25, 0.0 }
  0xef   :  { %v304_v0 = vadd.f32 %v5594_v62, %v6289_v23  ;;  %v295_v1 = vpop.f32.mrb[9].mxu0  ;;  %v437_v34 = vpack.c.bf16 %v421_v28, %v420_v19 }
  0xf0   :  { %v296_v3 = vadd.f32 %v6289_v23, %v295_v1  ;;  %v5595_v4 = vpop.f32.mrb[10].mxu0  ;;  %5628 = vmatprep.mubr.msk.bf16.mxu1 %vm477_vm2, %v424_v61  ;;  %v436_v38 = vpack.c.bf16 %v419_v31, %v418_v24 }
  0xf1   :  { %v400_v6 = vmax.f32 %v304_v0, 0.0  ;;  %v307_v7 = vadd.f32 %v5595_v4, %v6289_v23  ;;  %v298_v8 = vpop.f32.mrb[11].mxu0  ;;  %5629 = vmatmul.mubr.msk.bf16.gmra.mrb[12].mxu1 %vm477_vm2, %v425_v58 }
  0xf2   :  { %v299_v11 = vadd.f32 %v6289_v23, %v298_v8  ;;  %v398_v17 = vmax.f32 %v296_v3, 0.0 }
  0xf3   :  { %v401_v14 = vmax.f32 %v307_v7, 0.0 }
  0xf4   :  { %v399_v18 = vmax.f32 %v299_v11, 0.0 }
  0xf5   :  { %v427_v22 = vpack.c.bf16 %v401_v14, %v400_v6 }
  0xf6   :  { %v426_v26 = vpack.c.bf16 %v399_v18, %v398_v17  ;;  %v5598_v27 = vpop.f32.mrb[12].mxu0 }
  0xf7   :  { %v320_v29 = vadd.f32 %v5598_v27, %v6289_v23  ;;  %v311_v30 = vpop.f32.mrb[13].mxu0 }
  0xf8   :  { %v312_v32 = vadd.f32 %v6289_v23, %v311_v30  ;;  %v5599_v33 = vpop.f32.mrb[14].mxu0  ;;  %5632 = vmatprep.mubr.msk.bf16.mxu1 %vm477_vm2, %v426_v26 }
  0xf9   :  { %v404_v35 = vmax.f32 %v320_v29, 0.0  ;;  %v323_v36 = vadd.f32 %v5599_v33, %v6289_v23  ;;  %v314_v37 = vpop.f32.mrb[15].mxu0  ;;  %5633 = vmatmul.mubr.msk.bf16.gmra.mrb[16].mxu1 %vm477_vm2, %v427_v22 }
  0xfa   :  { %v315_v39 = vadd.f32 %v6289_v23, %v314_v37  ;;  %v402_v41 = vmax.f32 %v312_v32, 0.0 }
  0xfb   :  { %v405_v40 = vmax.f32 %v323_v36, 0.0 }
  0xfc   :  { %v403_v42 = vmax.f32 %v315_v39, 0.0 }
  0xfd   :  { %v429_v43 = vpack.c.bf16 %v405_v40, %v404_v35 }
  0xfe   :  { %v428_v44 = vpack.c.bf16 %v403_v42, %v402_v41  ;;  %v5602_v45 = vpop.f32.mrb[16].mxu0 }
  0xff   :  { %v336_v46 = vadd.f32 %v5602_v45, %v6289_v23  ;;  %v327_v47 = vpop.f32.mrb[17].mxu0 }
 0x100   :  { %v328_v48 = vadd.f32 %v6289_v23, %v327_v47  ;;  %v5603_v49 = vpop.f32.mrb[18].mxu0  ;;  %5636 = vmatprep.mubr.msk.bf16.mxu1 %vm477_vm2, %v428_v44 }
 0x101   :  { %v408_v50 = vmax.f32 %v336_v46, 0.0  ;;  %v339_v51 = vadd.f32 %v5603_v49, %v6289_v23  ;;  %v330_v52 = vpop.f32.mrb[19].mxu0  ;;  %5637 = vmatmul.mubr.msk.bf16.gmra.mrb[20].mxu1 %vm477_vm2, %v429_v43 }
 0x102   :  { %v331_v53 = vadd.f32 %v6289_v23, %v330_v52  ;;  %v406_v55 = vmax.f32 %v328_v48, 0.0 }
 0x103   :  { %v409_v54 = vmax.f32 %v339_v51, 0.0 }
 0x104   :  { %v407_v56 = vmax.f32 %v331_v53, 0.0 }
 0x105   :  { %v431_v57 = vpack.c.bf16 %v409_v54, %v408_v50 }
 0x106   :  { %v430_v58 = vpack.c.bf16 %v407_v56, %v406_v55  ;;  %v5606_v59 = vpop.f32.mrb[20].mxu0 }
 0x107   :  { %v352_v60 = vadd.f32 %v5606_v59, %v6289_v23  ;;  %v343_v61 = vpop.f32.mrb[21].mxu0 }
 0x108   :  { %v344_v62 = vadd.f32 %v6289_v23, %v343_v61  ;;  %v5607_v63 = vpop.f32.mrb[22].mxu0  ;;  %5640 = vmatprep.mubr.msk.bf16.mxu1 %vm477_vm2, %v430_v58 }
 0x109   :  { %v412_v0 = vmax.f32 %v352_v60, 0.0  ;;  %v355_v1 = vadd.f32 %v5607_v63, %v6289_v23  ;;  %v346_v2 = vpop.f32.mrb[23].mxu0  ;;  %5641 = vmatmul.mubr.msk.bf16.gmra.mrb[24].mxu1 %vm477_vm2, %v431_v57 }
 0x10a   :  { %v347_v3 = vadd.f32 %v6289_v23, %v346_v2  ;;  %v410_v6 = vmax.f32 %v344_v62, 0.0  ;;  %v8199_v23 = vmov 0  }
 0x10b   :  { %v413_v4 = vmax.f32 %v355_v1, 0.0  ;;  %5685 = vset.pattern.permute.xlu0 %v8199_v23  ;;  %5686 = vset.pattern.permute.xlu1 %v8199_v23 }
 0x10c   :  { %v411_v7 = vmax.f32 %v347_v3, 0.0  ;;  %2422 = vmatprep.mubr.bf16.mxu0 %v8199_v23 }
 0x10d   :  { %v433_v8 = vpack.c.bf16 %v413_v4, %v412_v0 }
 0x10e   :  { %v432_v10 = vpack.c.bf16 %v411_v7, %v410_v6 }
 0x110   :  { %5644 = vmatprep.mubr.msk.bf16.mxu1 %vm477_vm2, %v432_v10 }
 0x111   :  { %5645 = vmatmul.mubr.msk.bf16.gmra.mrb[28].mxu1 %vm477_vm2, %v433_v8 }
 0x112   :  { %5648 = vmatprep.mubr.msk.bf16.mxu1 %vm477_vm2, %v6312_v9  ;;  %v6352_v9 = vld [vmem:[%s8186_s6] ss:$0 sm:$0xff] }
 0x119   :  { %5649 = vmatmul.mubr.msk.bf16.gmra.mrb[32].mxu1 %vm477_vm2, %v6308_v5 }
 0x11a   :  { %5652 = vmatprep.mubr.msk.bf16.mxu1 %vm477_vm2, %v436_v38 }
 0x121   :  { %5653 = vmatmul.mubr.msk.bf16.gmra.mrb[36].mxu1 %vm477_vm2, %v437_v34 }
 0x122   :  { %2465 = vmatprep.mubr.bf16.mxu1 %v8199_v23 }
 0x1bc   :  { %v5626_v11 = vpop.f32.mrb[8].mxu1 }
 0x1bd   :  { %v6355_v5 = vadd.f32 %v5626_v11, %v6352_v9  ;;  %v560_v12 = vpop.f32.mrb[9].mxu1 }
 0x1be   :  { %v6358_v13 = vadd.f32 %v6352_v9, %v560_v12  ;;  %v5627_v14 = vpop.f32.mrb[10].mxu1 }
 0x1bf   :  { %8271 = vst [vmem:[#allocation10_spill] sm:$0xff] %v6355_v5  ;;  %v8230_v16 = vmax.f32 %v6355_v5, 0.0  ;;  %v6367_v17 = vadd.f32 %v5627_v14, %v6352_v9  ;;  %v563_v18 = vpop.f32.mrb[11].mxu1 }
 0x1c0   :  { %8272 = vst [vmem:[#allocation11_spill] sm:$0xff] %v6358_v13  ;;  %v8232_v19 = vmax.f32 %v6358_v13, 0.0  ;;  %v6371_v20 = vadd.f32 %v6352_v9, %v563_v18 }
 0x1c1   :  { %8273 = vst [vmem:[#allocation12_spill] sm:$0xff] %v6367_v17  ;;  %v8229_v21 = vmax.f32 %v6367_v17, 0.0  ;;  %v728_v22 = vmul.f32 %v6363_v15, %v8230_v16 }
 0x1c2   :  { %8274 = vst [vmem:[#allocation13_spill] sm:$0xff] %v6371_v20  ;;  %v8231_v24 = vmax.f32 %v6371_v20, 0.0  ;;  %v726_v25 = vmul.f32 %v6363_v15, %v8232_v19 }
 0x1c3   :  { %v764_v26 = vsel %vm477_vm2, %v728_v22, 0.0  ;;  %v729_v27 = vmul.f32 %v6363_v15, %v8229_v21 }
 0x1c4   :  { %765 = vadd.xlane.f32.xlu1 %v764_v26  ;;  %v5630_v28 = vpop.f32.mrb[12].mxu1  ;;  %v758_v29 = vsel %vm477_vm2, %v726_v25, 0.0  ;;  %v727_v30 = vmul.f32 %v6363_v15, %v8231_v24 }
 0x1c5   :  { %v6390_v31 = vadd.f32 %v5630_v28, %v6352_v9  ;;  %v576_v32 = vpop.f32.mrb[13].mxu1  ;;  %759 = vadd.xlane.f32.xlu0 %v758_v29  ;;  %v767_v38 = vsel %vm477_vm2, %v729_v27, 0.0 }
 0x1c6   :  { %v6393_v33 = vadd.f32 %v6352_v9, %v576_v32  ;;  %v5631_v34 = vpop.f32.mrb[14].mxu1  ;;  %v761_v41 = vsel %vm477_vm2, %v727_v30, 0.0 }
 0x1c7   :  { %8275 = vst [vmem:[#allocation14_spill] sm:$0xff] %v6390_v31  ;;  %v8226_v35 = vmax.f32 %v6390_v31, 0.0  ;;  %v6397_v36 = vadd.f32 %v5631_v34, %v6352_v9  ;;  %v579_v37 = vpop.f32.mrb[15].mxu1 }
 0x1c8   :  { %8276 = vst [vmem:[#allocation15_spill] sm:$0xff] %v6393_v33  ;;  %v8228_v39 = vmax.f32 %v6393_v33, 0.0  ;;  %v6402_v40 = vadd.f32 %v6352_v9, %v579_v37  ;;  %768 = vadd.xlane.f32.xlu1 %v767_v38 }
 0x1c9   :  { %8277 = vst [vmem:[#allocation16_spill] sm:$0xff] %v6397_v36  ;;  %v8225_v42 = vmax.f32 %v6397_v36, 0.0  ;;  %762 = vadd.xlane.f32.xlu0 %v761_v41  ;;  %v732_v43 = vmul.f32 %v6363_v15, %v8226_v35  ;;  %v928_v35 = vlaneseq }
 0x1ca   :  { %8278 = vst [vmem:[#allocation17_spill] sm:$0xff] %v6402_v40  ;;  %v8227_v44 = vmax.f32 %v6402_v40, 0.0  ;;  %v730_v48 = vmul.f32 %v6363_v15, %v8228_v39 }
 0x1cb   :  { %v776_v45 = vsel %vm477_vm2, %v732_v43, 0.0  ;;  %v733_v46 = vmul.f32 %v6363_v15, %v8225_v42  ;;  %v929_v39 = vand.u32 127, %v928_v35  ;;  %v6637_v16 = vshrl.u32 %v928_v35, 7 }
 0x1cc   :  { %v5634_v47 = vpop.f32.mrb[16].mxu1  ;;  %v731_v52 = vmul.f32 %v6363_v15, %v8227_v44  ;;  %v770_v60 = vsel %vm477_vm2, %v730_v48, 0.0 }
 0x1cd   :  { %v6418_v49 = vadd.f32 %v5634_v47, %v6352_v9  ;;  %v592_v50 = vpop.f32.mrb[17].mxu1  ;;  %777 = vadd.xlane.f32.xlu0 %v776_v45  ;;  %v779_v51 = vsel %vm477_vm2, %v733_v46, 0.0  ;;  %v934_v19 = vadd.s32 4294967288, %v929_v39 }
 0x1ce   :  { %v6425_v53 = vadd.f32 %v6352_v9, %v592_v50  ;;  %780 = vadd.xlane.f32.xlu1 %v779_v51  ;;  %v5635_v54 = vpop.f32.mrb[18].mxu1  ;;  %v773_v62 = vsel %vm477_vm2, %v731_v52, 0.0 }
 0x1cf   :  { %8279 = vst [vmem:[#allocation18_spill] sm:$0xff] %v6418_v49  ;;  %v8222_v55 = vmax.f32 %v6418_v49, 0.0  ;;  %v6429_v56 = vadd.f32 %v5635_v54, %v6352_v9  ;;  %v595_v57 = vpop.f32.mrb[19].mxu1 }
 0x1d0   :  { %8280 = vst [vmem:[#allocation19_spill] sm:$0xff] %v6425_v53  ;;  %v8224_v58 = vmax.f32 %v6425_v53, 0.0  ;;  %v6433_v59 = vadd.f32 %v6352_v9, %v595_v57 }
 0x1d1   :  { %8281 = vst [vmem:[#allocation20_spill] sm:$0xff] %v6429_v56  ;;  %v8221_v61 = vmax.f32 %v6429_v56, 0.0  ;;  %771 = vadd.xlane.f32.xlu0 %v770_v60  ;;  %v736_v63 = vmul.f32 %v6363_v15, %v8222_v55 }
 0x1d2   :  { %8282 = vst [vmem:[#allocation21_spill] sm:$0xff] %v6433_v59  ;;  %v8223_v0 = vmax.f32 %v6433_v59, 0.0  ;;  %774 = vadd.xlane.f32.xlu1 %v773_v62  ;;  %v734_v4 = vmul.f32 %v6363_v15, %v8224_v58 }
 0x1d3   :  { %v788_v1 = vsel %vm477_vm2, %v736_v63, 0.0  ;;  %v737_v2 = vmul.f32 %v6363_v15, %v8221_v61 }
 0x1d4   :  { %v5638_v3 = vpop.f32.mrb[20].mxu1  ;;  %v735_v10 = vmul.f32 %v6363_v15, %v8223_v0  ;;  %v782_v27 = vsel %vm477_vm2, %v734_v4, 0.0 }
 0x1d5   :  { %v6450_v6 = vadd.f32 %v5638_v3, %v6352_v9  ;;  %v608_v7 = vpop.f32.mrb[21].mxu1  ;;  %789 = vadd.xlane.f32.xlu0 %v788_v1  ;;  %v791_v8 = vsel %vm477_vm2, %v737_v2, 0.0 }
 0x1d6   :  { %v6457_v11 = vadd.f32 %v6352_v9, %v608_v7  ;;  %v5639_v12 = vpop.f32.mrb[22].mxu1  ;;  %792 = vadd.xlane.f32.xlu1 %v791_v8  ;;  %v785_v29 = vsel %vm477_vm2, %v735_v10, 0.0 }
 0x1d7   :  { %8283 = vst [vmem:[#allocation22_spill] sm:$0xff] %v6450_v6  ;;  %v8217_v14 = vmax.f32 %v6450_v6, 0.0  ;;  %v6461_v18 = vadd.f32 %v5639_v12, %v6352_v9  ;;  %v611_v22 = vpop.f32.mrb[23].mxu1 }
 0x1d8   :  { %8284 = vst [vmem:[#allocation23_spill] sm:$0xff] %v6457_v11  ;;  %v8220_v25 = vmax.f32 %v6457_v11, 0.0  ;;  %v6465_v26 = vadd.f32 %v6352_v9, %v611_v22 }
 0x1d9   :  { %8285 = vst [vmem:[#allocation24_spill] sm:$0xff] %v6461_v18  ;;  %v8216_v28 = vmax.f32 %v6461_v18, 0.0  ;;  %783 = vadd.xlane.f32.xlu0 %v782_v27  ;;  %v740_v30 = vmul.f32 %v6363_v15, %v8217_v14 }
 0x1da   :  { %8286 = vst [vmem:[#allocation25_spill] sm:$0xff] %v6465_v26  ;;  %v8219_v32 = vmax.f32 %v6465_v26, 0.0  ;;  %786 = vadd.xlane.f32.xlu1 %v785_v29  ;;  %v738_v41 = vmul.f32 %v6363_v15, %v8220_v25 }
 0x1db   :  { %v800_v34 = vsel %vm477_vm2, %v740_v30, 0.0  ;;  %v741_v37 = vmul.f32 %v6363_v15, %v8216_v28 }
 0x1dc   :  { %v5642_v38 = vpop.f32.mrb[24].mxu1  ;;  %v739_v47 = vmul.f32 %v6363_v15, %v8219_v32  ;;  %v794_v62 = vsel %vm477_vm2, %v738_v41, 0.0 }
 0x1dd   :  { %v6482_v43 = vadd.f32 %v5642_v38, %v6352_v9  ;;  %v624_v45 = vpop.f32.mrb[25].mxu1  ;;  %801 = vadd.xlane.f32.xlu0 %v800_v34  ;;  %v803_v46 = vsel %vm477_vm2, %v741_v37, 0.0 }
 0x1de   :  { %v6489_v48 = vadd.f32 %v6352_v9, %v624_v45  ;;  %v5643_v50 = vpop.f32.mrb[26].mxu1  ;;  %804 = vadd.xlane.f32.xlu1 %v803_v46  ;;  %v797_v1 = vsel %vm477_vm2, %v739_v47, 0.0 }
 0x1df   :  { %8287 = vst [vmem:[#allocation26_spill] sm:$0xff] %v6482_v43  ;;  %v8212_v51 = vmax.f32 %v6482_v43, 0.0  ;;  %v6493_v52 = vadd.f32 %v5643_v50, %v6352_v9  ;;  %v627_v54 = vpop.f32.mrb[27].mxu1 }
 0x1e0   :  { %8288 = vst [vmem:[#allocation27_spill] sm:$0xff] %v6489_v48  ;;  %v8215_v57 = vmax.f32 %v6489_v48, 0.0  ;;  %v6497_v60 = vadd.f32 %v6352_v9, %v627_v54 }
 0x1e1   :  { %8289 = vst [vmem:[#allocation28_spill] sm:$0xff] %v6493_v52  ;;  %v8209_v63 = vmax.f32 %v6493_v52, 0.0  ;;  %795 = vadd.xlane.f32.xlu0 %v794_v62  ;;  %v744_v2 = vmul.f32 %v6363_v15, %v8212_v51 }
 0x1e2   :  { %8290 = vst [vmem:[#allocation29_spill] sm:$0xff] %v6497_v60  ;;  %v8214_v3 = vmax.f32 %v6497_v60, 0.0  ;;  %798 = vadd.xlane.f32.xlu1 %v797_v1  ;;  %v742_v10 = vmul.f32 %v6363_v15, %v8215_v57 }
 0x1e3   :  { %v812_v4 = vsel %vm477_vm2, %v744_v2, 0.0  ;;  %v745_v7 = vmul.f32 %v6363_v15, %v8209_v63 }
 0x1e4   :  { %v5646_v8 = vpop.f32.mrb[28].mxu1  ;;  %v743_v29 = vmul.f32 %v6363_v15, %v8214_v3  ;;  %v806_v47 = vsel %vm477_vm2, %v742_v10, 0.0 }
 0x1e5   :  { %v6514_v12 = vadd.f32 %v5646_v8, %v6352_v9  ;;  %v640_v22 = vpop.f32.mrb[29].mxu1  ;;  %813 = vadd.xlane.f32.xlu0 %v812_v4  ;;  %v815_v27 = vsel %vm477_vm2, %v745_v7, 0.0 }
 0x1e6   :  { %v6521_v30 = vadd.f32 %v6352_v9, %v640_v22  ;;  %v5647_v34 = vpop.f32.mrb[30].mxu1  ;;  %816 = vadd.xlane.f32.xlu1 %v815_v27  ;;  %v809_v54 = vsel %vm477_vm2, %v743_v29, 0.0 }
 0x1e7   :  { %8291 = vst [vmem:[#allocation30_spill] sm:$0xff] %v6514_v12  ;;  %v8202_v37 = vmax.f32 %v6514_v12, 0.0  ;;  %v6525_v38 = vadd.f32 %v5647_v34, %v6352_v9  ;;  %v643_v41 = vpop.f32.mrb[31].mxu1 }
 0x1e8   :  { %8292 = vst [vmem:[#allocation31_spill] sm:$0xff] %v6521_v30  ;;  %v8207_v45 = vmax.f32 %v6521_v30, 0.0  ;;  %v6529_v46 = vadd.f32 %v6352_v9, %v643_v41 }
 0x1e9   :  { %8293 = vst [vmem:[#allocation32_spill] sm:$0xff] %v6525_v38  ;;  %v8201_v50 = vmax.f32 %v6525_v38, 0.0  ;;  %807 = vadd.xlane.f32.xlu0 %v806_v47  ;;  %v748_v62 = vmul.f32 %v6363_v15, %v8202_v37 }
 0x1ea   :  { %8294 = vst [vmem:[#allocation33_spill] sm:$0xff] %v6529_v46  ;;  %v8205_v1 = vmax.f32 %v6529_v46, 0.0  ;;  %810 = vadd.xlane.f32.xlu1 %v809_v54  ;;  %v746_v8 = vmul.f32 %v6363_v15, %v8207_v45 }
 0x1eb   :  { %v824_v2 = vsel %vm477_vm2, %v748_v62, 0.0  ;;  %v749_v4 = vmul.f32 %v6363_v15, %v8201_v50 }
 0x1ec   :  { %v5650_v7 = vpop.f32.mrb[32].mxu1  ;;  %v747_v29 = vmul.f32 %v6363_v15, %v8205_v1 }
 0x1ed   :  { %v6546_v10 = vadd.f32 %v5650_v7, %v6352_v9  ;;  %v656_v22 = vpop.f32.mrb[33].mxu1  ;;  %825 = vadd.xlane.f32.xlu0 %v824_v2  ;;  %v827_v27 = vsel %vm477_vm2, %v749_v4, 0.0  ;;  %v818_v4 = vsel %vm477_vm2, %v746_v8, 0.0 }
 0x1ee   :  { %v6553_v34 = vadd.f32 %v6352_v9, %v656_v22  ;;  %v5651_v41 = vpop.f32.mrb[34].mxu1  ;;  %828 = vadd.xlane.f32.xlu1 %v827_v27  ;;  %v821_v22 = vsel %vm477_vm2, %v747_v29, 0.0 }
 0x1ef   :  { %8295 = vst [vmem:[#allocation34_spill] sm:$0xff] %v6546_v10  ;;  %v8203_v47 = vmax.f32 %v6546_v10, 0.0  ;;  %v6557_v54 = vadd.f32 %v5651_v41, %v6352_v9  ;;  %v659_v62 = vpop.f32.mrb[35].mxu1 }
 0x1f0   :  { %8296 = vst [vmem:[#allocation35_spill] sm:$0xff] %v6553_v34  ;;  %v8206_v7 = vmax.f32 %v6553_v34, 0.0  ;;  %v6561_v2 = vadd.f32 %v6352_v9, %v659_v62 }
 0x1f1   :  { %8297 = vst [vmem:[#allocation36_spill] sm:$0xff] %v6557_v54  ;;  %v8204_v23 = vmax.f32 %v6557_v54, 0.0  ;;  %819 = vadd.xlane.f32.xlu0 %v818_v4  ;;  %v752_v27 = vmul.f32 %v6363_v15, %v8203_v47 }
 0x1f2   :  { %8298 = vst [vmem:[#allocation37_spill] sm:$0xff] %v6561_v2  ;;  %v8208_v41 = vmax.f32 %v6561_v2, 0.0  ;;  %822 = vadd.xlane.f32.xlu1 %v821_v22  ;;  %v750_v8 = vmul.f32 %v6363_v15, %v8206_v7 }
 0x1f3   :  { %v836_v50 = vsel %vm477_vm2, %v752_v27, 0.0  ;;  %v753_v62 = vmul.f32 %v6363_v15, %v8204_v23 }
 0x1f4   :  { %v5654_v37 = vpop.f32.mrb[36].mxu1  ;;  %v751_v22 = vmul.f32 %v6363_v15, %v8208_v41 }
 0x1f5   :  { %v6578_v29 = vadd.f32 %v5654_v37, %v6352_v9  ;;  %v672_v4 = vpop.f32.mrb[37].mxu1  ;;  %837 = vadd.xlane.f32.xlu0 %v836_v50  ;;  %v839_v47 = vsel %vm477_vm2, %v753_v62, 0.0  ;;  %v830_v62 = vsel %vm477_vm2, %v750_v8, 0.0 }
 0x1f6   :  { %v6585_v27 = vadd.f32 %v6352_v9, %v672_v4  ;;  %v5655_v23 = vpop.f32.mrb[38].mxu1  ;;  %840 = vadd.xlane.f32.xlu1 %v839_v47  ;;  %v833_v41 = vsel %vm477_vm2, %v751_v22, 0.0 }
 0x1f7   :  { %8299 = vst [vmem:[#allocation38_spill] sm:$0xff] %v6578_v29  ;;  %v8210_v1 = vmax.f32 %v6578_v29, 0.0  ;;  %v6589_v7 = vadd.f32 %v5655_v23, %v6352_v9  ;;  %v675_v37 = vpop.f32.mrb[39].mxu1  ;;  %v6644_v29 = vsub.s32 %v929_v39, %v6637_v16 }
 0x1f8   :  { %8300 = vst [vmem:[#allocation39_spill] sm:$0xff] %v6585_v27  ;;  %v8213_v45 = vmax.f32 %v6585_v27, 0.0  ;;  %v6593_v50 = vadd.f32 %v6352_v9, %v675_v37  ;;  %v6649_v27 = vsub.s32 %v934_v19, %v6637_v16 }
 0x1f9   :  { %8301 = vst [vmem:[#allocation40_spill] sm:$0xff] %v6589_v7  ;;  %831 = vadd.xlane.f32.xlu0 %v830_v62  ;;  %v756_v47 = vmul.f32 %v6363_v15, %v8210_v1  ;;  %v8218_v4 = vmax.f32 %v6589_v7, 0.0 }
 0x1fa   :  { %8302 = vst [vmem:[#allocation41_spill] sm:$0xff] %v6593_v50  ;;  %v8211_v23 = vmax.f32 %v6593_v50, 0.0  ;;  %834 = vadd.xlane.f32.xlu1 %v833_v41  ;;  %v754_v8 = vmul.f32 %v6363_v15, %v8213_v45 }
 0x1fb   :  { %v848_v63 = vsel %vm477_vm2, %v756_v47, 0.0  ;;  %v757_v37 = vmul.f32 %v6363_v15, %v8218_v4  ;;  %v5228_v47 = vld [vmem:[#allocation3] ss:$0 sm:$0xff] }
 0x1fc   :  { %v755_v9 = vmul.f32 %v6363_v15, %v8211_v23  ;;  %v842_v41 = vsel %vm477_vm2, %v754_v8, 0.0 }
 0x1fd   :  { %849 = vadd.xlane.f32.xlu0 %v848_v63  ;;  %v851_v62 = vsel %vm477_vm2, %v757_v37, 0.0 }
 0x1fe   :  { %v845_v22 = vsel %vm477_vm2, %v755_v9, 0.0 }
 0x1ff   :  { %846 = vadd.xlane.f32.xlu1 %v845_v22 }
 0x201   :  { %843 = vadd.xlane.f32.xlu0 %v842_v41 }
 0x203   :  { %852 = vadd.xlane.f32.xlu1 %v851_v62 }
 0x217   :  { %861 = vperm.xlu0 %5685, %v5228_v47  }
 0x251   :  { %v766_v1 = vpop.xlane.xlu1 %765 }
 0x252   :  { %v760_v23 = vpop.xlane.xlu0 %759 }
 0x255   :  { %v769_v45 = vpop.xlane.xlu1 %768 }
 0x256   :  { %v763_v51 = vpop.xlane.xlu0 %762 }
 0x25a   :  { %v778_v63 = vpop.xlane.xlu0 %777 }
 0x25b   :  { %v781_v3 = vpop.xlane.xlu1 %780 }
 0x25e   :  { %v772_v9 = vpop.xlane.xlu0 %771 }
 0x25f   :  { %v775_v57 = vpop.xlane.xlu1 %774 }
 0x262   :  { %v790_v28 = vpop.xlane.xlu0 %789 }
 0x263   :  { %v793_v14 = vpop.xlane.xlu1 %792 }
 0x266   :  { %v784_v15 = vpop.xlane.xlu0 %783 }
 0x267   :  { %v787_v4 = vpop.xlane.xlu1 %786 }
 0x26a   :  { %v802_v22 = vpop.xlane.xlu0 %801 }
 0x26b   :  { %v805_v41 = vpop.xlane.xlu1 %804 }
 0x26e   :  { %v796_v8 = vpop.xlane.xlu0 %795 }
 0x26f   :  { %v799_v62 = vpop.xlane.xlu1 %798 }
 0x272   :  { %v6615_v32 = vpop.xlane.xlu0 %813 }
 0x273   :  { %v6621_v25 = vpop.xlane.xlu1 %816 }
 0x276   :  { %v6617_v37 = vpop.xlane.xlu0 %807 }
 0x277   :  { %v6627_v0 = vpop.xlane.xlu1 %810 }
 0x27a   :  { %v6619_v47 = vpop.xlane.xlu0 %825 }
 0x27b   :  { %v6631_v42 = vpop.xlane.xlu1 %828 }
 0x27e   :  { %v6623_v61 = vpop.xlane.xlu0 %819 }
 0x27f   :  { %v6635_v21 = vpop.xlane.xlu1 %822 }
 0x282   :  { %v6625_v55 = vpop.xlane.xlu0 %837 }
 0x283   :  { %v6641_v7 = vpop.xlane.xlu1 %840 }
 0x286   :  { %v6629_v58 = vpop.xlane.xlu0 %831 }
 0x28a   :  { %v6633_v44 = vpop.xlane.xlu0 %849 }
 0x28e   :  { %v6639_v24 = vpop.xlane.xlu0 %843 }
 0x296   :  { %v6646_v50 = vpop.permute.xlu0 %861 }
 0x297   :  { %v6652_v54 = vadd.f32 %v6646_v50, %v760_v23  ;;  %v6655_v35 = vadd.f32 %v6646_v50, %v763_v51  ;;  %v6658_v10 = vadd.f32 %v6646_v50, %v766_v1  ;;  %v6661_v39 = vadd.f32 %v6646_v50, %v769_v45 }
 0x298   :  { %v6664_v2 = vadd.f32 %v6646_v50, %v772_v9  ;;  %v6667_v19 = vadd.f32 %v6646_v50, %v775_v57  ;;  %v6670_v34 = vadd.f32 %v6646_v50, %v778_v63  ;;  %v6673_v23 = vadd.f32 %v6646_v50, %v781_v3 }
 0x299   :  { %v6676_v51 = vadd.f32 %v6646_v50, %v784_v15  ;;  %v6679_v45 = vadd.f32 %v6646_v50, %v787_v4  ;;  %v6682_v1 = vadd.f32 %v6646_v50, %v790_v28  ;;  %v6685_v9 = vadd.f32 %v6646_v50, %v793_v14  ;;  %v835_v4 = vpop.xlane.xlu1 %834 }
 0x29a   :  { %v6688_v57 = vadd.f32 %v6646_v50, %v796_v8  ;;  %v6691_v3 = vadd.f32 %v6646_v50, %v799_v62  ;;  %v6694_v63 = vadd.f32 %v6646_v50, %v802_v22  ;;  %v6697_v15 = vadd.f32 %v6646_v50, %v805_v41 }
 0x29b   :  { %v933_v28 = vrot.slane %v6652_v54, %v6644_v29  ;;  %v938_v14 = vrot.slane %v6655_v35, %v6649_v27  ;;  %v944_v8 = vrot.slane %v6658_v10, %v6644_v29  ;;  %v948_v62 = vrot.slane %v6661_v39, %v6649_v27 }
 0x29c   :  { %v953_v22 = vrot.slane %v6664_v2, %v6644_v29  ;;  %v957_v41 = vrot.slane %v6667_v19, %v6649_v27  ;;  %v962_v38 = vrot.slane %v6670_v34, %v6644_v29  ;;  %v966_v12 = vrot.slane %v6673_v23, %v6649_v27 }
 0x29d   :  { %v940_v46 = vsel %vm939_vm3, %v938_v14, %v933_v28  ;;  %v949_v30 = vsel %vm939_vm3, %v948_v62, %v944_v8  ;;  %v971_v52 = vrot.slane %v6676_v51, %v6644_v29  ;;  %v975_v43 = vrot.slane %v6679_v45, %v6649_v27  ;;  %v847_v26 = vpop.xlane.xlu1 %846 }
 0x29e   :  { %v958_v60 = vsel %vm939_vm3, %v957_v41, %v953_v22  ;;  %v980_v48 = vrot.slane %v6682_v1, %v6644_v29  ;;  %v984_v18 = vrot.slane %v6685_v9, %v6649_v27  ;;  %v989_v28 = vrot.slane %v6688_v57, %v6644_v29 }
 0x29f   :  { %v993_v14 = vrot.slane %v6691_v3, %v6649_v27  ;;  %v998_v8 = vrot.slane %v6694_v63, %v6644_v29  ;;  %v967_v62 = vsel %vm939_vm3, %v966_v12, %v962_v38  ;;  %v976_v22 = vsel %vm939_vm3, %v975_v43, %v971_v52 }
 0x2a0   :  { %v1002_v41 = vrot.slane %v6697_v15, %v6649_v27  ;;  %v1077_v6 = vsel %vm1076_vm4, %v949_v30, %v940_v46  ;;  %v985_v11 = vsel %vm939_vm3, %v984_v18, %v980_v48  ;;  %v6742_v59 = vadd.f32 %v6646_v50, %v6617_v37 }
 0x2a1   :  { %v994_v56 = vsel %vm939_vm3, %v993_v14, %v989_v28  ;;  %v1079_v49 = vsel %vm1078_vm5, %v958_v60, %v1077_v6  ;;  %v6748_v52 = vadd.f32 %v6646_v50, %v6627_v0  ;;  %v6752_v30 = vadd.f32 %v6646_v50, %v6615_v32  ;;  %v853_v37 = vpop.xlane.xlu1 %852 }
 0x2a2   :  { %v1003_v12 = vsel %vm939_vm3, %v1002_v41, %v998_v8  ;;  %v1081_v43 = vsel %vm1080_vm6, %v967_v62, %v1079_v49  ;;  %v6757_v6 = vadd.f32 %v6646_v50, %v6621_v25  ;;  %v6761_v48 = vadd.f32 %v6646_v50, %v6623_v61 }
 0x2a3   :  { %v1083_v18 = vsel %vm1082_vm7, %v976_v22, %v1081_v43  ;;  %v6765_v49 = vadd.f32 %v6646_v50, %v6635_v21  ;;  %v6770_v32 = vadd.f32 %v6646_v50, %v6619_v47  ;;  %v6774_v60 = vadd.f32 %v6646_v50, %v6631_v42 }
 0x2a4   :  { %v1085_v0 = vsel %vm1084_vm8, %v985_v11, %v1083_v18  ;;  %v6778_v25 = vadd.f32 %v6646_v50, %v6629_v58  ;;  %v6782_v38 = vadd.f32 %v6646_v50, %v835_v4  ;;  %v6786_v21 = vadd.f32 %v6646_v50, %v6625_v55 }
 0x2a5   :  { %v1087_v61 = vsel %vm1086_vm9, %v994_v56, %v1085_v0  ;;  %v6790_v11 = vadd.f32 %v6646_v50, %v6641_v7  ;;  %v6795_v46 = vadd.f32 %v6646_v50, %v6639_v24  ;;  %v6798_v58 = vadd.f32 %v6646_v50, %v847_v26 }
 0x2a6   :  { %v1089_v42 = vsel %vm1088_vm10, %v1003_v12, %v1087_v61  ;;  %v1007_v56 = vrot.slane %v6742_v59, %v6644_v29  ;;  %v1011_v47 = vrot.slane %v6748_v52, %v6649_v27  ;;  %v1016_v7 = vrot.slane %v6752_v30, %v6644_v29 }
 0x2a7   :  { %v1100_v55 = vsel %vm1099_vm11, %v1089_v42, -inf  ;;  %v1020_v4 = vrot.slane %v6757_v6, %v6649_v27  ;;  %v6811_v24 = vadd.f32 %v6646_v50, %v6633_v44  ;;  %v6814_v26 = vadd.f32 %v6646_v50, %v853_v37 }
 0x2a8   :  { %1101 = vmax.xlane.f32.xlu1 %v1100_v55  ;;  %v1025_v28 = vrot.slane %v6761_v48, %v6644_v29  ;;  %v1029_v14 = vrot.slane %v6765_v49, %v6649_v27  ;;  %v1012_v8 = vsel %vm939_vm3, %v1011_v47, %v1007_v56  ;;  %v1034_v22 = vrot.slane %v6770_v32, %v6644_v29 }
 0x2a9   :  { %v1021_v62 = vsel %vm939_vm3, %v1020_v4, %v1016_v7  ;;  %v1038_v44 = vrot.slane %v6774_v60, %v6649_v27  ;;  %v1043_v50 = vrot.slane %v6778_v25, %v6644_v29  ;;  %v1047_v12 = vrot.slane %v6782_v38, %v6649_v27 }
 0x2aa   :  { %v1030_v41 = vsel %vm939_vm3, %v1029_v14, %v1025_v28  ;;  %v1052_v43 = vrot.slane %v6786_v21, %v6644_v29  ;;  %v1056_v18 = vrot.slane %v6790_v11, %v6649_v27  ;;  %v1061_v0 = vrot.slane %v6795_v46, %v6644_v29 }
 0x2ab   :  { %v1065_v61 = vrot.slane %v6798_v58, %v6649_v27  ;;  %v1090_v42 = vsel %vm1076_vm4, %v1021_v62, %v1012_v8  ;;  %v1039_v56 = vsel %vm939_vm3, %v1038_v44, %v1034_v22  ;;  %v1070_v37 = vrot.slane %v6811_v24, %v6644_v29 }
 0x2ac   :  { %v1074_v55 = vrot.slane %v6814_v26, %v6649_v27  ;;  %v1091_v47 = vsel %vm1078_vm5, %v1030_v41, %v1090_v42  ;;  %v1048_v7 = vsel %vm939_vm3, %v1047_v12, %v1043_v50  ;;  %v1057_v28 = vsel %vm939_vm3, %v1056_v18, %v1052_v43 }
 0x2ad   :  { %v1092_v4 = vsel %vm1080_vm6, %v1039_v56, %v1091_v47  ;;  %v1066_v8 = vsel %vm939_vm3, %v1065_v61, %v1061_v0  ;;  %v6857_v50 = vsub.s32 0, %v6637_v16  ;;  %v6860_v12 = vsub.s32 2, %v6637_v16 }
 0x2ae   :  { %v1093_v14 = vsel %vm1082_vm7, %v1048_v7, %v1092_v4  ;;  %v1075_v22 = vsel %vm939_vm3, %v1074_v55, %v1070_v37  ;;  %v6863_v43 = vsub.s32 1, %v6637_v16  ;;  %v6866_v0 = vsub.s32 3, %v6637_v16 }
 0x2af   :  { %v1094_v62 = vsel %vm1084_vm8, %v1057_v28, %v1093_v14  ;;  %v6874_v55 = vsub.s32 4, %v6637_v16  ;;  %v6879_v28 = vsub.s32 5, %v6637_v16 }
 0x2b0   :  { %v1095_v44 = vsel %vm1086_vm9, %v1066_v8, %v1094_v62 }
 0x2b1   :  { %v1096_v53 = vsel %vm1088_vm10, %v1075_v22, %v1095_v44  ;;  %v6885_v22 = vsub.s32 6, %v6637_v16 }
 0x2b2   :  { %v1103_v41 = vsel %vm1099_vm11, %v1096_v53, -inf }
 0x2b3   :  { %1104 = vmax.xlane.f32.xlu1 %v1103_v41 }
 0x335   :  { %v1102_v18 = vpop.xlane.xlu1 %1101 }
 0x336   :  { %v1111_v61 = vrot.slane %v1102_v18, %v6857_v50  ;;  %v1119_v42 = vrot.slane %v1102_v18, %v6860_v12  ;;  %v1115_v56 = vrot.slane %v1102_v18, %v6863_v43  ;;  %v1123_v47 = vrot.slane %v1102_v18, %v6866_v0 }
 0x337   :  { %v1131_v41 = vrot.slane %v1102_v18, %v6879_v28 }
 0x338   :  { %v1188_v53 = vsub.f32 %v6652_v54, %v1111_v61  ;;  %v1189_v37 = vsub.f32 %v6655_v35, %v1111_v61  ;;  %v1192_v7 = vsub.f32 %v6664_v2, %v1119_v42  ;;  %v1190_v14 = vsub.f32 %v6658_v10, %v1115_v56 }
 0x339   :  { %v1127_v54 = vrot.slane %v1102_v18, %v6874_v55  ;;  %v1194_v62 = vsub.f32 %v6670_v34, %v1123_v47  ;;  %v1191_v44 = vsub.f32 %v6661_v39, %v1115_v56  ;;  %v1193_v34 = vsub.f32 %v6667_v19, %v1119_v42 }
 0x33a   :  { %v1220_v4 = vmul.f32 1.442695, %v1188_v53  ;;  %v1222_v8 = vmul.f32 1.442695, %v1189_v37  ;;  %v1228_v35 = vmul.f32 1.442695, %v1192_v7  ;;  %v1135_v7 = vrot.slane %v1102_v18, %v6885_v22 }
 0x33b   :  { %v1224_v2 = vmul.f32 1.442695, %v1190_v14  ;;  %v1196_v61 = vsub.f32 %v6676_v51, %v1127_v54  ;;  %v1232_v10 = vmul.f32 1.442695, %v1194_v62  ;;  %v6891_v53 = vsub.s32 7, %v6637_v16 }
 0x33c   :  { %5835 = vpow2.f32 %v1220_v4  ;;  %v1226_v37 = vmul.f32 1.442695, %v1191_v44  ;;  %v1198_v4 = vsub.f32 %v6682_v1, %v1131_v41  ;;  %v1195_v14 = vsub.f32 %v6673_v23, %v1123_v47 }
 0x33d   :  { %5837 = vpow2.f32 %v1222_v8  ;;  %v1236_v39 = vmul.f32 1.442695, %v1196_v61  ;;  %v1230_v51 = vmul.f32 1.442695, %v1193_v34  ;;  %v1139_v16 = vrot.slane %v1102_v18, %v6891_v53 }
 0x33e   :  { %5839 = vpow2.f32 %v1228_v35  ;;  %v1200_v19 = vsub.f32 %v6688_v57, %v1135_v7  ;;  %v1240_v42 = vmul.f32 1.442695, %v1198_v4  ;;  %v1197_v35 = vsub.f32 %v6679_v45, %v1127_v54 }
 0x33f   :  { %5841 = vpow2.f32 %v1224_v2  ;;  %v1234_v23 = vmul.f32 1.442695, %v1195_v14  ;;  %v1202_v18 = vsub.f32 %v6694_v63, %v1139_v16  ;;  %v1199_v45 = vsub.f32 %v6685_v9, %v1131_v41 }
 0x340   :  { %5843 = vpow2.f32 %v1232_v10  ;;  %v6904_v62 = vpop.xlane.xlu1 %1104  ;;  %v1244_v57 = vmul.f32 1.442695, %v1200_v19  ;;  %v1238_v54 = vmul.f32 1.442695, %v1197_v35  ;;  %v1201_v9 = vsub.f32 %v6691_v3, %v1135_v7 }
 0x341   :  { %5845 = vpow2.f32 %v1226_v37  ;;  %v6914_v47 = vrot.slane %v6904_v62, %v6863_v43  ;;  %v1248_v63 = vmul.f32 1.442695, %v1202_v18  ;;  %v6925_v61 = vrot.slane %v6904_v62, %v6860_v12 }
 0x342   :  { %5847 = vpow2.f32 %v1236_v39  ;;  %v1242_v41 = vmul.f32 1.442695, %v1199_v45  ;;  %v6938_v4 = vrot.slane %v6904_v62, %v6866_v0  ;;  %v1203_v3 = vsub.f32 %v6697_v15, %v1139_v16 }
 0x343   :  { %5849 = vpow2.f32 %v1230_v51  ;;  %v1206_v10 = vsub.f32 %v6752_v30, %v6914_v47  ;;  %v1208_v30 = vsub.f32 %v6761_v48, %v6925_v61  ;;  %v1246_v7 = vmul.f32 1.442695, %v1201_v9 }
 0x344   :  { %5851 = vpow2.f32 %v1240_v42  ;;  %v1143_v19 = vrot.slane %v6904_v62, %v6857_v50  ;;  %v6953_v42 = vrot.slane %v6904_v62, %v6874_v55  ;;  %v1210_v48 = vsub.f32 %v6770_v32, %v6938_v4 }
 0x345   :  { %5853 = vpow2.f32 %v1234_v23  ;;  %v1256_v39 = vmul.f32 1.442695, %v1206_v10  ;;  %v1260_v35 = vmul.f32 1.442695, %v1208_v30  ;;  %v1250_v16 = vmul.f32 1.442695, %v1203_v3 }
 0x346   :  { %v6896_v56 = vpop.eup %5835  ;;  %5855 = vpow2.f32 %v1244_v57  ;;  %v1204_v18 = vsub.f32 %v6742_v59, %v1143_v19  ;;  %v6966_v57 = vrot.slane %v6904_v62, %v6879_v28  ;;  %v1212_v32 = vsub.f32 %v6778_v25, %v6953_v42 }
 0x347   :  { %1317 = vperm.xlu1 %5686, %v6896_v56   ;;  %v6902_v8 = vpop.eup %5837  ;;  %5857 = vpow2.f32 %v1238_v54  ;;  %v1264_v45 = vmul.f32 1.442695, %v1210_v48  ;;  %v1205_v59 = vsub.f32 %v6748_v52, %v1143_v19  ;;  %v1167_v9 = vrot.slane %v6904_v62, %v6885_v22 }
 0x348   :  { %v6906_v1 = vpop.eup %5839  ;;  %5859 = vpow2.f32 %v1248_v63  ;;  %v1252_v10 = vmul.f32 1.442695, %v1204_v18  ;;  %v1214_v25 = vsub.f32 %v6786_v21, %v6966_v57  ;;  %v1207_v52 = vsub.f32 %v6757_v6, %v6914_v47 }
 0x349   :  { %1329 = vperm.xlu0 %5685, %v6906_v1   ;;  %v6916_v44 = vpop.eup %5841  ;;  %5861 = vpow2.f32 %v1242_v41  ;;  %v1268_v41 = vmul.f32 1.442695, %v1212_v32  ;;  %v1254_v3 = vmul.f32 1.442695, %v1205_v59  ;;  %v1216_v21 = vsub.f32 %v6795_v46, %v1167_v9 }
 0x34a   :  { %v6918_v2 = vpop.eup %5843  ;;  %5863 = vpow2.f32 %v1256_v39  ;;  %v1272_v19 = vmul.f32 1.442695, %v1214_v25  ;;  %v1209_v6 = vsub.f32 %v6765_v49, %v6925_v61  ;;  %v1258_v47 = vmul.f32 1.442695, %v1207_v52 }
 0x34b   :  { %1320 = vperm.xlu1 %5686, %v6902_v8   ;;  %v6929_v34 = vpop.eup %5845  ;;  %5865 = vpow2.f32 %v1246_v7  ;;  %v1171_v7 = vrot.slane %v6904_v62, %v6891_v53  ;;  %v1276_v62 = vmul.f32 1.442695, %v1216_v21  ;;  %v1211_v49 = vsub.f32 %v6774_v60, %v6938_v4 }
 0x34c   :  { %v6931_v37 = vpop.eup %5847  ;;  %5867 = vpow2.f32 %v1260_v35  ;;  %v1262_v32 = vmul.f32 1.442695, %v1209_v6  ;;  %v1213_v59 = vsub.f32 %v6782_v38, %v6953_v42  ;;  %v1215_v60 = vsub.f32 %v6790_v11, %v6966_v57 }
 0x34d   :  { %1335 = vperm.xlu0 %5685, %v6918_v2   ;;  %v6942_v14 = vpop.eup %5849  ;;  %5869 = vpow2.f32 %v1250_v16  ;;  %v1218_v16 = vsub.f32 %v6811_v24, %v1171_v7  ;;  %v1217_v38 = vsub.f32 %v6798_v58, %v1167_v9  ;;  %v1219_v11 = vsub.f32 %v6814_v26, %v1171_v7 }
 0x34e   :  { %v6944_v51 = vpop.eup %5851  ;;  %5871 = vpow2.f32 %v1264_v45  ;;  %v1270_v4 = vmul.f32 1.442695, %v1213_v59  ;;  %v1274_v42 = vmul.f32 1.442695, %v1215_v60 }
 0x34f   :  { %1323 = vperm.xlu1 %5686, %v6916_v44   ;;  %v6957_v23 = vpop.eup %5853  ;;  %5873 = vpow2.f32 %v1252_v10  ;;  %v1280_v61 = vmul.f32 1.442695, %v1218_v16  ;;  %v1266_v10 = vmul.f32 1.442695, %v1211_v49  ;;  %v1278_v57 = vmul.f32 1.442695, %v1217_v38 }
 0x350   :  { %v6959_v15 = vpop.eup %5855  ;;  %5875 = vpow2.f32 %v1268_v41  ;;  %v1282_v58 = vmul.f32 1.442695, %v1219_v11 }
 0x351   :  { %1341 = vperm.xlu0 %5685, %v6931_v37   ;;  %v6970_v54 = vpop.eup %5857  ;;  %5877 = vpow2.f32 %v1254_v3 }
 0x352   :  { %v6972_v63 = vpop.eup %5859  ;;  %5879 = vpow2.f32 %v1272_v19 }
 0x353   :  { %1326 = vperm.xlu1 %5686, %v6929_v34   ;;  %v6981_v30 = vpop.eup %5861  ;;  %5881 = vpow2.f32 %v1258_v47 }
 0x354   :  { %v6983_v39 = vpop.eup %5863  ;;  %5883 = vpow2.f32 %v1276_v62 }
 0x355   :  { %1347 = vperm.xlu0 %5685, %v6944_v51   ;;  %v6992_v48 = vpop.eup %5865  ;;  %5885 = vpow2.f32 %v1262_v32 }
 0x356   :  { %v6994_v35 = vpop.eup %5867  ;;  %5887 = vpow2.f32 %v1280_v61 }
 0x357   :  { %1332 = vperm.xlu1 %5686, %v6942_v14   ;;  %v7001_v46 = vpop.eup %5869  ;;  %5889 = vpow2.f32 %v1266_v10 }
 0x358   :  { %v7003_v18 = vpop.eup %5871  ;;  %5891 = vpow2.f32 %v1270_v4 }
 0x359   :  { %1353 = vperm.xlu0 %5685, %v6959_v15   ;;  %v7009_v45 = vpop.eup %5873  ;;  %5893 = vpow2.f32 %v1274_v42 }
 0x35a   :  { %v7011_v24 = vpop.eup %5875  ;;  %5895 = vpow2.f32 %v1278_v57 }
 0x35b   :  { %1338 = vperm.xlu1 %5686, %v6957_v23   ;;  %v7017_v25 = vpop.eup %5877  ;;  %5897 = vpow2.f32 %v1282_v58 }
 0x35c   :  { %v7019_v41 = vpop.eup %5879 }
 0x35d   :  { %1359 = vperm.xlu0 %5685, %v6972_v63   ;;  %v7025_v52 = vpop.eup %5881 }
 0x35e   :  { %v7027_v3 = vpop.eup %5883 }
 0x35f   :  { %1344 = vperm.xlu1 %5686, %v6970_v54   ;;  %8303 = vst [vmem:[#allocation42_spill] sm:$0xff] %v7027_v3  ;;  %v7032_v21 = vpop.eup %5885 }
 0x360   :  { %v7034_v19 = vpop.eup %5887 }
 0x361   :  { %1371 = vperm.xlu0 %5685, %v6983_v39   ;;  %8304 = vst [vmem:[#allocation43_spill] sm:$0xff] %v7034_v19  ;;  %v7039_v6 = vpop.eup %5889 }
 0x362   :  { %v7042_v9 = vpop.eup %5891 }
 0x363   :  { %1350 = vperm.xlu1 %5686, %v6981_v30   ;;  %v7045_v47 = vpop.eup %5893 }
 0x364   :  { %v7048_v16 = vpop.eup %5895 }
 0x365   :  { %1377 = vperm.xlu0 %5685, %v6994_v35   ;;  %v7051_v26 = vpop.eup %5897 }
 0x366   :  { %8305 = vst [vmem:[#allocation44_spill] sm:$0xff] %v7051_v26 }
 0x367   :  { %1356 = vperm.xlu1 %5686, %v6992_v48  }
 0x369   :  { %1383 = vperm.xlu0 %5685, %v7003_v18  }
 0x36b   :  { %1362 = vperm.xlu1 %5686, %v7001_v46  }
 0x36d   :  { %1389 = vperm.xlu0 %5685, %v7011_v24  }
 0x36f   :  { %1365 = vperm.xlu1 %5686, %v7009_v45  }
 0x371   :  { %1395 = vperm.xlu0 %5685, %v7019_v41  }
 0x373   :  { %1368 = vperm.xlu1 %5686, %v7017_v25  }
 0x375   :  { %1401 = vperm.xlu0 %5685, %v7027_v3  }
 0x377   :  { %1374 = vperm.xlu1 %5686, %v7025_v52  }
 0x379   :  { %1407 = vperm.xlu0 %5685, %v7034_v19  }
 0x37b   :  { %1380 = vperm.xlu1 %5686, %v7032_v21  }
 0x37f   :  { %1386 = vperm.xlu1 %5686, %v7039_v6  }
 0x383   :  { %1392 = vperm.xlu1 %5686, %v7042_v9  }
 0x387   :  { %1398 = vperm.xlu1 %5686, %v7045_v47  }
 0x38b   :  { %1404 = vperm.xlu1 %5686, %v7048_v16  }
 0x38f   :  { %1410 = vperm.xlu1 %5686, %v7051_v26  }
 0x3c6   :  { %v1318_v7 = vpop.permute.xlu1 %1317 }
 0x3c7   :  { %v1415_v13 = vrot.slane %v1318_v7, %v6644_v29 }
 0x3c8   :  { %v1330_v62 = vpop.permute.xlu0 %1329 }
 0x3c9   :  { %v1433_v5 = vrot.slane %v1330_v62, %v6644_v29 }
 0x3ca   :  { %v1321_v32 = vpop.permute.xlu1 %1320 }
 0x3cb   :  { %v1419_v40 = vrot.slane %v1321_v32, %v6649_v27 }
 0x3cc   :  { %v1336_v49 = vpop.permute.xlu0 %1335 }
 0x3cd   :  { %v1442_v19 = vrot.slane %v1336_v49, %v6644_v29 }
 0x3ce   :  { %v1324_v61 = vpop.permute.xlu1 %1323 }
 0x3cf   :  { %v1424_v33 = vrot.slane %v1324_v61, %v6644_v29  ;;  %v1420_v61 = vsel %vm939_vm3, %v1419_v40, %v1415_v13 }
 0x3d0   :  { %v1342_v59 = vpop.permute.xlu0 %1341 }
 0x3d1   :  { %v1451_v26 = vrot.slane %v1342_v59, %v6644_v29 }
 0x3d2   :  { %v1327_v10 = vpop.permute.xlu1 %1326 }
 0x3d3   :  { %v1428_v57 = vrot.slane %v1327_v10, %v6649_v27 }
 0x3d4   :  { %v1348_v60 = vpop.permute.xlu0 %1347 }
 0x3d5   :  { %v1429_v10 = vsel %vm939_vm3, %v1428_v57, %v1424_v33 }
 0x3d6   :  { %v1333_v4 = vpop.permute.xlu1 %1332  ;;  %v1556_v7 = vsel %vm1076_vm4, %v1429_v10, %v1420_v61 }
 0x3d7   :  { %v1437_v58 = vrot.slane %v1333_v4, %v6649_v27 }
 0x3d8   :  { %v1354_v42 = vpop.permute.xlu0 %1353 }
 0x3d9   :  { %v1438_v32 = vsel %vm939_vm3, %v1437_v58, %v1433_v5  ;;  %v1469_v49 = vrot.slane %v1354_v42, %v6644_v29 }
 0x3da   :  { %v1339_v38 = vpop.permute.xlu1 %1338  ;;  %v1557_v59 = vsel %vm1078_vm5, %v1438_v32, %v1556_v7 }
 0x3db   :  { %v1446_v17 = vrot.slane %v1339_v38, %v6649_v27  ;;  %v1460_v38 = vrot.slane %v1348_v60, %v6644_v29 }
 0x3dc   :  { %v1360_v36 = vpop.permute.xlu0 %1359 }
 0x3dd   :  { %v1447_v62 = vsel %vm939_vm3, %v1446_v17, %v1442_v19  ;;  %v1478_v17 = vrot.slane %v1360_v36, %v6644_v29 }
 0x3de   :  { %v1345_v11 = vpop.permute.xlu1 %1344  ;;  %v1558_v57 = vsel %vm1080_vm6, %v1447_v62, %v1557_v59 }
 0x3df   :  { %v1455_v20 = vrot.slane %v1345_v11, %v6649_v27 }
 0x3e0   :  { %v1372_v33 = vpop.permute.xlu0 %1371 }
 0x3e2   :  { %v1351_v31 = vpop.permute.xlu1 %1350 }
 0x3e3   :  { %v1464_v4 = vrot.slane %v1351_v31, %v6649_v27  ;;  %v1456_v31 = vsel %vm939_vm3, %v1455_v20, %v1451_v26 }
 0x3e4   :  { %v1378_v26 = vpop.permute.xlu0 %1377 }
 0x3e5   :  { %v1465_v5 = vsel %vm939_vm3, %v1464_v4, %v1460_v38 }
 0x3e6   :  { %v1357_v3 = vpop.permute.xlu1 %1356 }
 0x3e7   :  { %v1473_v11 = vrot.slane %v1357_v3, %v6649_v27  ;;  %v1559_v3 = vsel %vm1082_vm7, %v1456_v31, %v1558_v57 }
 0x3e8   :  { %v1560_v60 = vsel %vm1084_vm8, %v1465_v5, %v1559_v3  ;;  %v1384_v61 = vpop.permute.xlu0 %1383  ;;  %v1505_v3 = vrot.slane %v1378_v26, %v6644_v29 }
 0x3e9   :  { %v1474_v13 = vsel %vm939_vm3, %v1473_v11, %v1469_v49 }
 0x3ea   :  { %v1363_v40 = vpop.permute.xlu1 %1362  ;;  %v1561_v20 = vsel %vm1086_vm9, %v1474_v13, %v1560_v60  ;;  %v1496_v13 = vrot.slane %v1372_v33, %v6644_v29  ;;  %v1514_v60 = vrot.slane %v1384_v61, %v6644_v29 }
 0x3eb   :  { %v1482_v19 = vrot.slane %v1363_v40, %v6649_v27 }
 0x3ec   :  { %v1390_v38 = vpop.permute.xlu0 %1389 }
 0x3ed   :  { %v1483_v42 = vsel %vm939_vm3, %v1482_v19, %v1478_v17 }
 0x3ee   :  { %v1366_v58 = vpop.permute.xlu1 %1365  ;;  %v1562_v10 = vsel %vm1088_vm10, %v1483_v42, %v1561_v20 }
 0x3ef   :  { %v1572_v4 = vsel %vm1099_vm11, %v1562_v10, 0.0  ;;  %v1487_v42 = vrot.slane %v1366_v58, %v6644_v29 }
 0x3f0   :  { %1573 = vadd.xlane.f32.xlu0 %v1572_v4  ;;  %v1396_v7 = vpop.permute.xlu0 %1395  ;;  %v1523_v4 = vrot.slane %v1390_v38, %v6644_v29 }
 0x3f2   :  { %v1369_v32 = vpop.permute.xlu1 %1368 }
 0x3f3   :  { %v1491_v40 = vrot.slane %v1369_v32, %v6649_v27  ;;  %v1532_v32 = vrot.slane %v1396_v7, %v6644_v29 }
 0x3f4   :  { %v1402_v59 = vpop.permute.xlu0 %1401 }
 0x3f5   :  { %v1541_v61 = vrot.slane %v1402_v59, %v6644_v29 }
 0x3f6   :  { %v1375_v36 = vpop.permute.xlu1 %1374 }
 0x3f7   :  { %v1500_v31 = vrot.slane %v1375_v36, %v6649_v27 }
 0x3f8   :  { %v1408_v58 = vpop.permute.xlu0 %1407 }
 0x3f9   :  { %v1501_v20 = vsel %vm939_vm3, %v1500_v31, %v1496_v13 }
 0x3fa   :  { %v1381_v62 = vpop.permute.xlu1 %1380 }
 0x3fb   :  { %v1509_v5 = vrot.slane %v1381_v62, %v6649_v27  ;;  %v1492_v62 = vsel %vm939_vm3, %v1491_v40, %v1487_v42  ;;  %v1550_v40 = vrot.slane %v1408_v58, %v6644_v29 }
 0x3fd   :  { %v1510_v33 = vsel %vm939_vm3, %v1509_v5, %v1505_v3 }
 0x3fe   :  { %v1387_v11 = vpop.permute.xlu1 %1386 }
 0x3ff   :  { %v1518_v17 = vrot.slane %v1387_v11, %v6649_v27 }
 0x401   :  { %v1519_v26 = vsel %vm939_vm3, %v1518_v17, %v1514_v60 }
 0x402   :  { %v1393_v49 = vpop.permute.xlu1 %1392 }
 0x403   :  { %v1527_v19 = vrot.slane %v1393_v49, %v6649_v27  ;;  %v1563_v49 = vsel %vm1076_vm4, %v1501_v20, %v1492_v62 }
 0x404   :  { %v1564_v38 = vsel %vm1078_vm5, %v1510_v33, %v1563_v49 }
 0x405   :  { %v1528_v31 = vsel %vm939_vm3, %v1527_v19, %v1523_v4 }
 0x406   :  { %v1399_v57 = vpop.permute.xlu1 %1398 }
 0x407   :  { %v1536_v10 = vrot.slane %v1399_v57, %v6649_v27  ;;  %v1565_v57 = vsel %vm1080_vm6, %v1519_v26, %v1564_v38 }
 0x408   :  { %v1566_v17 = vsel %vm1082_vm7, %v1528_v31, %v1565_v57 }
 0x409   :  { %v1537_v5 = vsel %vm939_vm3, %v1536_v10, %v1532_v32 }
 0x40a   :  { %v1405_v36 = vpop.permute.xlu1 %1404  ;;  %v1567_v3 = vsel %vm1084_vm8, %v1537_v5, %v1566_v17 }
 0x40b   :  { %v1545_v11 = vrot.slane %v1405_v36, %v6649_v27 }
 0x40d   :  { %v1546_v7 = vsel %vm939_vm3, %v1545_v11, %v1541_v61 }
 0x40e   :  { %v1411_v13 = vpop.permute.xlu1 %1410  ;;  %v1568_v19 = vsel %vm1086_vm9, %v1546_v7, %v1567_v3 }
 0x40f   :  { %v1554_v59 = vrot.slane %v1411_v13, %v6649_v27 }
 0x411   :  { %v1555_v60 = vsel %vm939_vm3, %v1554_v59, %v1550_v40 }
 0x412   :  { %v1569_v42 = vsel %vm1088_vm10, %v1555_v60, %v1568_v19 }
 0x413   :  { %v1575_v20 = vsel %vm1099_vm11, %v1569_v42, 0.0 }
 0x414   :  { %1576 = vadd.xlane.f32.xlu1 %v1575_v20 }
 0x47d   :  { %v1574_v10 = vpop.xlane.xlu0 %1573 }
 0x47e   :  { %v1583_v4 = vrot.slane %v1574_v10, %v6857_v50  ;;  %v1587_v33 = vrot.slane %v1574_v10, %v6863_v43  ;;  %v1591_v36 = vrot.slane %v1574_v10, %v6860_v12  ;;  %v1595_v32 = vrot.slane %v1574_v10, %v6866_v0 }
 0x47f   :  { %v1599_v26 = vrot.slane %v1574_v10, %v6874_v55  ;;  %v1603_v49 = vrot.slane %v1574_v10, %v6879_v28  ;;  %v1607_v57 = vrot.slane %v1574_v10, %v6885_v22  ;;  %v1611_v13 = vrot.slane %v1574_v10, %v6891_v53 }
 0x480   :  { %5899 = vrcp.f32 %v1583_v4 }
 0x481   :  { %5901 = vrcp.f32 %v1587_v33 }
 0x482   :  { %5903 = vrcp.f32 %v1591_v36 }
 0x483   :  { %5905 = vrcp.f32 %v1595_v32 }
 0x484   :  { %5907 = vrcp.f32 %v1599_v26 }
 0x485   :  { %5909 = vrcp.f32 %v1603_v49 }
 0x486   :  { %5911 = vrcp.f32 %v1607_v57  ;;  %v8308_v57 = vld [vmem:[#allocation43_spill] sm:$0xff] }
 0x487   :  { %5913 = vrcp.f32 %v1611_v13  ;;  %v5718_v13 = vld [vmem:[%s8189_s9 + $0x2c] ss:$16 sps:$4 sm:$0xff]  }
 0x48a   :  { %v5900_v62 = vpop.eup %5899 }
 0x48b   :  { %v1661_v11 = vmul.f32 %v5900_v62, %v6896_v56  ;;  %v1662_v61 = vmul.f32 %v5900_v62, %v6902_v8  ;;  %v5902_v58 = vpop.eup %5901 }
 0x48c   :  { %v1664_v31 = vmul.f32 %v5902_v58, %v6916_v44  ;;  %v1665_v38 = vmul.f32 %v5902_v58, %v6929_v34  ;;  %v5904_v5 = vpop.eup %5903 }
 0x48d   :  { %1741 = vperm.xlu0 %5685, %v1661_v11   ;;  %1744 = vperm.xlu1 %5686, %v1662_v61   ;;  %v1667_v56 = vmul.f32 %v5904_v5, %v6906_v1  ;;  %v1668_v8 = vmul.f32 %v5904_v5, %v6942_v14  ;;  %v5906_v7 = vpop.eup %5905 }
 0x48e   :  { %v1670_v44 = vmul.f32 %v5906_v7, %v6918_v2  ;;  %v1671_v34 = vmul.f32 %v5906_v7, %v6957_v23  ;;  %v5908_v40 = vpop.eup %5907  ;;  %v5716_v7 = vld [vmem:[%s8189_s9 + $0x28] ss:$16 sps:$4 sm:$0xff]  }
 0x48f   :  { %v1673_v17 = vmul.f32 %v5908_v40, %v6931_v37  ;;  %v1674_v1 = vmul.f32 %v5908_v40, %v6970_v54  ;;  %v5910_v59 = vpop.eup %5909  ;;  %v5722_v40 = vld [vmem:[%s8189_s9 + $0x48] ss:$16 sps:$4 sm:$0xff]  }
 0x490   :  { %v1676_v14 = vmul.f32 %v5910_v59, %v6944_v51  ;;  %v1677_v3 = vmul.f32 %v5910_v59, %v6981_v30  ;;  %v5912_v60 = vpop.eup %5911  ;;  %v5727_v59 = vld [vmem:[%s8189_s9 + $0x64] ss:$16 sps:$4 sm:$0xff]  }
 0x491   :  { %1747 = vperm.xlu0 %5685, %v1664_v31   ;;  %1750 = vperm.xlu1 %5686, %v1665_v38   ;;  %v1679_v42 = vmul.f32 %v5912_v60, %v6959_v15  ;;  %v1680_v37 = vmul.f32 %v5912_v60, %v6992_v48  ;;  %v5914_v54 = vpop.eup %5913  ;;  %v8307_v38 = vld [vmem:[#allocation44_spill] sm:$0xff] }
 0x492   :  { %v1682_v30 = vmul.f32 %v5914_v54, %v6972_v63  ;;  %v1683_v20 = vmul.f32 %v5914_v54, %v7001_v46  ;;  %v5728_v60 = vld [vmem:[%s8189_s9 + $0x68] ss:$16 sps:$4 sm:$0xff]  }
 0x495   :  { %1753 = vperm.xlu0 %5685, %v1667_v56   ;;  %1756 = vperm.xlu1 %5686, %v1668_v8   ;;  %v5713_v8 = vld [vmem:[%s8189_s9 + $0x20] ss:$16 sps:$4 sm:$0xff]  }
 0x499   :  { %1759 = vperm.xlu0 %5685, %v1670_v44   ;;  %1762 = vperm.xlu1 %5686, %v1671_v34   ;;  %v5719_v44 = vld [vmem:[%s8189_s9 + $0x40] ss:$16 sps:$4 sm:$0xff]   ;;  %v5721_v34 = vld [vmem:[%s8189_s9 + $0x44] ss:$16 sps:$4 sm:$0xff]  }
 0x49d   :  { %1765 = vperm.xlu0 %5685, %v1673_v17   ;;  %1768 = vperm.xlu1 %5686, %v1674_v1   ;;  %v5724_v17 = vld [vmem:[%s8189_s9 + $0x4c] ss:$16 sps:$4 sm:$0xff]   ;;  %v5725_v1 = vld [vmem:[%s8189_s9 + $0x60] ss:$16 sps:$4 sm:$0xff]  }
 0x4a1   :  { %1771 = vperm.xlu0 %5685, %v1676_v14   ;;  %1774 = vperm.xlu1 %5686, %v1677_v3   ;;  %v1577_v2 = vpop.xlane.xlu1 %1576  ;;  %v5730_v14 = vld [vmem:[%s8189_s9 + $0x6c] ss:$16 sps:$4 sm:$0xff]   ;;  %v7214_v3 = vld [vmem:[%s8190_s10 + $0x4] ss:$16 sps:$4 sm:$0xff]  }
 0x4a2   :  { %v1615_v23 = vrot.slane %v1577_v2, %v6857_v50  ;;  %v1619_v19 = vrot.slane %v1577_v2, %v6863_v43  ;;  %v1623_v51 = vrot.slane %v1577_v2, %v6860_v12  ;;  %v1627_v10 = vrot.slane %v1577_v2, %v6866_v0 }
 0x4a3   :  { %v1631_v15 = vrot.slane %v1577_v2, %v6874_v55  ;;  %v1635_v63 = vrot.slane %v1577_v2, %v6879_v28  ;;  %v1639_v55 = vrot.slane %v1577_v2, %v6885_v22  ;;  %v1643_v28 = vrot.slane %v1577_v2, %v6891_v53  ;;  %v7222_v2 = vld [vmem:[%s8190_s10 + $0xc] ss:$16 sps:$4 sm:$0xff]  }
 0x4a4   :  { %5915 = vrcp.f32 %v1615_v23 }
 0x4a5   :  { %1777 = vperm.xlu0 %5685, %v1679_v42   ;;  %1780 = vperm.xlu1 %5686, %v1680_v37   ;;  %5917 = vrcp.f32 %v1619_v19  ;;  %v8309_v42 = vld [vmem:[#allocation11_spill] sm:$0xff] }
 0x4a6   :  { %5919 = vrcp.f32 %v1623_v51  ;;  %v8310_v37 = vmax.f32 %v8309_v42, 0.0  ;;  %v8311_v51 = vld [vmem:[#allocation13_spill] sm:$0xff] }
 0x4a7   :  { %5921 = vrcp.f32 %v1627_v10 }
 0x4a8   :  { %5923 = vrcp.f32 %v1631_v15  ;;  %v8313_v15 = vld [vmem:[#allocation10_spill] sm:$0xff] }
 0x4a9   :  { %1783 = vperm.xlu0 %5685, %v1682_v30   ;;  %1786 = vperm.xlu1 %5686, %v1683_v20   ;;  %5925 = vrcp.f32 %v1635_v63  ;;  %v8312_v30 = vmax.f32 %v8311_v51, 0.0 }
 0x4aa   :  { %5927 = vrcp.f32 %v1639_v55 }
 0x4ab   :  { %5929 = vrcp.f32 %v1643_v28 }
 0x4ae   :  { %v5916_v4 = vpop.eup %5915 }
 0x4af   :  { %v1686_v48 = vmul.f32 %v5916_v4, %v7017_v25  ;;  %v1685_v33 = vmul.f32 %v5916_v4, %v7009_v45  ;;  %v5918_v36 = vpop.eup %5917 }
 0x4b0   :  { %v1689_v46 = vmul.f32 %v5918_v36, %v7025_v52  ;;  %v1688_v32 = vmul.f32 %v5918_v36, %v6983_v39  ;;  %v5920_v62 = vpop.eup %5919  ;;  %v8315_v36 = vld [vmem:[#allocation12_spill] sm:$0xff] }
 0x4b1   :  { %1792 = vperm.xlu1 %5686, %v1686_v48   ;;  %1789 = vperm.xlu0 %5685, %v1685_v33   ;;  %v1692_v25 = vmul.f32 %v5920_v62, %v7032_v21  ;;  %v1691_v45 = vmul.f32 %v5920_v62, %v6994_v35  ;;  %v5922_v26 = vpop.eup %5921  ;;  %v8314_v48 = vmax.f32 %v8313_v15, 0.0  ;;  %v8316_v63 = vmax.f32 %v8315_v36, 0.0 }
 0x4b2   :  { %v1695_v52 = vmul.f32 %v5922_v26, %v7039_v6  ;;  %v1694_v39 = vmul.f32 %v5922_v26, %v7003_v18  ;;  %v5924_v11 = vpop.eup %5923  ;;  %v5707_v18 = vld [vmem:[%s8189_s9 + $0x8] ss:$16 sps:$4 sm:$0xff]   ;;  %v5709_v6 = vld [vmem:[%s8189_s9 + $0xc] ss:$16 sps:$4 sm:$0xff]  }
 0x4b3   :  { %v1698_v22 = vmul.f32 %v5924_v11, %v7042_v9  ;;  %v1697_v21 = vmul.f32 %v5924_v11, %v7011_v24  ;;  %v5926_v61 = vpop.eup %5925  ;;  %v5710_v24 = vld [vmem:[%s8189_s9] ss:$16 sps:$4 sm:$0xff]   ;;  %v5712_v9 = vld [vmem:[%s8189_s9 + $0x4] ss:$16 sps:$4 sm:$0xff]   ;;  %2433 = vmatprep.subr.bf16.mxu1 %v5709_v6 }
 0x4b4   :  { %v1701_v35 = vmul.f32 %v5926_v61, %v7045_v47  ;;  %v1700_v58 = vmul.f32 %v5926_v61, %v7019_v41  ;;  %v5928_v53 = vpop.eup %5927  ;;  %v8306_v47 = vld [vmem:[#allocation42_spill] sm:$0xff]  ;;  %2390 = vmatprep.subr.bf16.mxu0 %v5712_v9  ;;  %2434 = vmatpush1.bf16.msra.mxu1 %v5707_v18 }
 0x4b5   :  { %1798 = vperm.xlu1 %5686, %v1689_v46   ;;  %1795 = vperm.xlu0 %5685, %v1688_v32   ;;  %v1704_v41 = vmul.f32 %v5928_v53, %v7048_v16  ;;  %v1703_v49 = vmul.f32 %v5928_v53, %v8306_v47  ;;  %v5930_v31 = vpop.eup %5929  ;;  %v5715_v16 = vld [vmem:[%s8189_s9 + $0x24] ss:$16 sps:$4 sm:$0xff]  }
 0x4b6   :  { %2391 = vmatpush1.bf16.msra.mxu0 %v5710_v24  ;;  %v1707_v5 = vmul.f32 %v5930_v31, %v8307_v38  ;;  %v1706_v56 = vmul.f32 %v5930_v31, %v8308_v57  ;;  %2435 = vmatprep.subr.bf16.mxu1 %v5718_v13  ;;  %v8321_v13 = vld [vmem:[#allocation14_spill] sm:$0xff] }
 0x4b7   :  { %2392 = vmatprep.subr.bf16.mxu0 %v5715_v16 }
 0x4b8   :  { %2436 = vmatpush1.bf16.msra.mxu1 %v5716_v7 }
 0x4b9   :  { %1804 = vperm.xlu1 %5686, %v1692_v25   ;;  %1801 = vperm.xlu0 %5685, %v1691_v45  }
 0x4ba   :  { %2393 = vmatpush1.bf16.msra.mxu0 %v5713_v8  ;;  %2437 = vmatprep.subr.bf16.mxu1 %v5724_v17 }
 0x4bb   :  { %2394 = vmatprep.subr.bf16.mxu0 %v5721_v34 }
 0x4bc   :  { %2438 = vmatpush1.bf16.msra.mxu1 %v5722_v40  ;;  %v8323_v40 = vld [vmem:[#allocation16_spill] sm:$0xff] }
 0x4bd   :  { %1810 = vperm.xlu1 %5686, %v1695_v52   ;;  %1807 = vperm.xlu0 %5685, %v1694_v39   ;;  %v8324_v17 = vmax.f32 %v8323_v40, 0.0 }
 0x4be   :  { %2395 = vmatpush1.bf16.msra.mxu0 %v5719_v44  ;;  %2439 = vmatprep.subr.bf16.mxu1 %v5730_v14  ;;  %v8322_v44 = vmax.f32 %v8321_v13, 0.0 }
 0x4bf   :  { %2396 = vmatprep.subr.bf16.mxu0 %v5727_v59 }
 0x4c0   :  { %2440 = vmatpush1.bf16.msra.mxu1 %v5728_v60 }
 0x4c1   :  { %1816 = vperm.xlu1 %5686, %v1698_v22   ;;  %1813 = vperm.xlu0 %5685, %v1697_v21   ;;  %v8317_v21 = vld [vmem:[#allocation15_spill] sm:$0xff] }
 0x4c2   :  { %2397 = vmatpush1.bf16.msra.mxu0 %v5725_v1  ;;  %2712 = vmatprep.subr.bf16.mxu1 %v7222_v2  ;;  %v8318_v61 = vmax.f32 %v8317_v21, 0.0 }
 0x4c3   :  { %2671 = vmatprep.subr.bf16.mxu0 %v7214_v3 }
 0x4c5   :  { %1822 = vperm.xlu1 %5686, %v1701_v35   ;;  %1819 = vperm.xlu0 %5685, %v1700_v58   ;;  %v8319_v58 = vld [vmem:[#allocation17_spill] sm:$0xff] }
 0x4c6   :  { %v8320_v53 = vmax.f32 %v8319_v58, 0.0 }
 0x4c9   :  { %1828 = vperm.xlu1 %5686, %v1704_v41   ;;  %1825 = vperm.xlu0 %5685, %v1703_v49  }
 0x4cd   :  { %1834 = vperm.xlu1 %5686, %v1707_v5   ;;  %1831 = vperm.xlu0 %5685, %v1706_v56  }
 0x50c   :  { %v1742_v23 = vpop.permute.xlu0 %1741  ;;  %v1745_v19 = vpop.permute.xlu1 %1744 }
 0x50d   :  { %v2030_v54 = vmul.f32 %v1742_v23, %v8310_v37  ;;  %v2031_v20 = vmul.f32 %v1745_v19, %v8312_v30  ;;  %v1839_v49 = vrot.slane %v1742_v23, %v6644_v29  ;;  %v1843_v31 = vrot.slane %v1745_v19, %v6649_v27  ;;  %v8325_v30 = vld [vmem:[#allocation19_spill] sm:$0xff] }
 0x50f   :  { %v2062_v32 = vsel %vm477_vm2, %v2030_v54, 0.0  ;;  %v2063_v62 = vsel %vm477_vm2, %v2031_v20, 0.0  ;;  %v1844_v23 = vsel %vm939_vm3, %v1843_v31, %v1839_v49  ;;  %v8326_v20 = vmax.f32 %v8325_v30, 0.0 }
 0x510   :  { %v1748_v10 = vpop.permute.xlu0 %1747  ;;  %v1751_v4 = vpop.permute.xlu1 %1750  ;;  %v2064_v28 = vadd.f32 %v2063_v62, %v2062_v32 }
 0x511   :  { %v2032_v33 = vmul.f32 %v1748_v10, %v8314_v48  ;;  %v2033_v46 = vmul.f32 %v1751_v4, %v8316_v63  ;;  %v1848_v41 = vrot.slane %v1748_v10, %v6644_v29  ;;  %v1852_v47 = vrot.slane %v1751_v4, %v6649_v27  ;;  %v8327_v4 = vld [vmem:[#allocation21_spill] sm:$0xff] }
 0x512   :  { %v2065_v22 = vrot.slane %v2064_v28, 4  ;;  %v8328_v15 = vmax.f32 %v8327_v4, 0.0 }
 0x513   :  { %v2071_v45 = vsel %vm477_vm2, %v2032_v33, 0.0  ;;  %v2072_v26 = vsel %vm477_vm2, %v2033_v46, 0.0  ;;  %v1853_v7 = vsel %vm939_vm3, %v1852_v47, %v1848_v41  ;;  %v8331_v41 = vld [vmem:[#allocation20_spill] sm:$0xff] }
 0x514   :  { %v1754_v55 = vpop.permute.xlu0 %1753  ;;  %v1757_v25 = vpop.permute.xlu1 %1756  ;;  %v2073_v52 = vadd.f32 %v2072_v26, %v2071_v45  ;;  %v2066_v38 = vadd.f32 %v2065_v22, %v2064_v28  ;;  %v1980_v54 = vsel %vm1076_vm4, %v1853_v7, %v1844_v23  ;;  %v8332_v47 = vmax.f32 %v8331_v41, 0.0  ;;  %v8341_v41 = vld [vmem:[#allocation27_spill] sm:$0xff] }
 0x515   :  { %v2034_v35 = vmul.f32 %v1754_v55, %v8318_v61  ;;  %v2035_v18 = vmul.f32 %v1757_v25, %v8320_v53  ;;  %v1857_v59 = vrot.slane %v1754_v55, %v6644_v29  ;;  %v1861_v14 = vrot.slane %v1757_v25, %v6649_v27 }
 0x516   :  { %v2074_v6 = vrot.slane %v2073_v52, 4  ;;  %v2067_v19 = vrot.slane %v2066_v38, 2 }
 0x517   :  { %v2080_v5 = vsel %vm477_vm2, %v2034_v35, 0.0  ;;  %v2081_v57 = vsel %vm477_vm2, %v2035_v18, 0.0  ;;  %v1862_v55 = vsel %vm939_vm3, %v1861_v14, %v1857_v59  ;;  %v8329_v35 = vld [vmem:[#allocation18_spill] sm:$0xff] }
 0x518   :  { %v1760_v39 = vpop.permute.xlu0 %1759  ;;  %v1763_v11 = vpop.permute.xlu1 %1762  ;;  %v2075_v56 = vadd.f32 %v2074_v6, %v2073_v52  ;;  %v2082_v60 = vadd.f32 %v2081_v57, %v2080_v5  ;;  %v2068_v28 = vadd.f32 %v2067_v19, %v2066_v38  ;;  %v8330_v58 = vmax.f32 %v8329_v35, 0.0  ;;  %v8333_v57 = vld [vmem:[#allocation23_spill] sm:$0xff] }
 0x519   :  { %v2036_v34 = vmul.f32 %v1760_v39, %v8322_v44  ;;  %v2037_v1 = vmul.f32 %v1763_v11, %v8324_v17  ;;  %v1866_v42 = vrot.slane %v1760_v39, %v6644_v29  ;;  %v1870_v37 = vrot.slane %v1763_v11, %v6649_v27  ;;  %v8335_v44 = vld [vmem:[#allocation25_spill] sm:$0xff] }
 0x51a   :  { %v2076_v51 = vrot.slane %v2075_v56, 2  ;;  %v2083_v25 = vrot.slane %v2082_v60, 4  ;;  %v8334_v7 = vmax.f32 %v8333_v57, 0.0 }
 0x51b   :  { %v2089_v63 = vsel %vm477_vm2, %v2036_v34, 0.0  ;;  %v2090_v46 = vsel %vm477_vm2, %v2037_v1, 0.0  ;;  %v1871_v52 = vsel %vm939_vm3, %v1870_v37, %v1866_v42  ;;  %v8336_v34 = vmax.f32 %v8335_v44, 0.0  ;;  %v8337_v42 = vld [vmem:[#allocation22_spill] sm:$0xff] }
 0x51c   :  { %v1766_v24 = vpop.permute.xlu0 %1765  ;;  %v1769_v9 = vpop.permute.xlu1 %1768  ;;  %v2091_v22 = vadd.f32 %v2090_v46, %v2089_v63  ;;  %v2077_v6 = vadd.f32 %v2076_v51, %v2075_v56  ;;  %v2084_v38 = vadd.f32 %v2083_v25, %v2082_v60  ;;  %v8338_v37 = vmax.f32 %v8337_v42, 0.0  ;;  %v8339_v51 = vld [vmem:[#allocation24_spill] sm:$0xff] }
 0x51d   :  { %v2038_v10 = vmul.f32 %v1766_v24, %v8326_v20  ;;  %v2039_v48 = vmul.f32 %v1769_v9, %v8328_v15  ;;  %v1875_v32 = vrot.slane %v1766_v24, %v6644_v29  ;;  %v1879_v62 = vrot.slane %v1769_v9, %v6649_v27 }
 0x51e   :  { %v1981_v24 = vsel %vm1078_vm5, %v1862_v55, %v1980_v54  ;;  %v2092_v59 = vrot.slane %v2091_v22, 4  ;;  %v8340_v30 = vmax.f32 %v8339_v51, 0.0  ;;  %v8349_v51 = vld [vmem:[#allocation31_spill] sm:$0xff] }
 0x51f   :  { %v2098_v21 = vsel %vm477_vm2, %v2038_v10, 0.0  ;;  %v2099_v61 = vsel %vm477_vm2, %v2039_v48, 0.0  ;;  %v1880_v9 = vsel %vm939_vm3, %v1879_v62, %v1875_v32  ;;  %v2085_v32 = vrot.slane %v2084_v38, 2 }
 0x520   :  { %v1772_v8 = vpop.permute.xlu0 %1771  ;;  %v1775_v16 = vpop.permute.xlu1 %1774  ;;  %v2100_v56 = vadd.f32 %v2099_v61, %v2098_v21 }
 0x521   :  { %v1884_v45 = vrot.slane %v1772_v8, %v6644_v29  ;;  %v1888_v26 = vrot.slane %v1775_v16, %v6649_v27  ;;  %v2040_v53 = vmul.f32 %v1772_v8, %v8330_v58  ;;  %v2041_v49 = vmul.f32 %v1775_v16, %v8332_v47 }
 0x522   :  { %v1982_v8 = vsel %vm1080_vm6, %v1871_v52, %v1981_v24  ;;  %v2101_v63 = vrot.slane %v2100_v56, 4  ;;  %v2086_v35 = vadd.f32 %v2085_v32, %v2084_v38  ;;  %v8342_v47 = vmax.f32 %v8341_v41, 0.0  ;;  %v8353_v41 = vld [vmem:[#allocation30_spill] sm:$0xff] }
 0x523   :  { %v1889_v5 = vsel %vm939_vm3, %v1888_v26, %v1884_v45  ;;  %v1983_v16 = vsel %vm1082_vm7, %v1880_v9, %v1982_v8  ;;  %v2107_v14 = vsel %vm477_vm2, %v2040_v53, 0.0  ;;  %v2108_v19 = vsel %vm477_vm2, %v2041_v49, 0.0 }
 0x524   :  { %v1778_v33 = vpop.permute.xlu0 %1777  ;;  %v1781_v36 = vpop.permute.xlu1 %1780  ;;  %v1984_v23 = vsel %vm1084_vm8, %v1889_v5, %v1983_v16  ;;  %v2109_v25 = vadd.f32 %v2108_v19, %v2107_v14  ;;  %v2102_v61 = vadd.f32 %v2101_v63, %v2100_v56  ;;  %v2087_v56 = vrot.slane %v2086_v35, 1 }
 0x525   :  { %v1893_v39 = vrot.slane %v1778_v33, %v6644_v29  ;;  %v1897_v11 = vrot.slane %v1781_v36, %v6649_v27  ;;  %v2042_v13 = vmul.f32 %v1778_v33, %v8334_v7  ;;  %v2043_v40 = vmul.f32 %v1781_v36, %v8336_v34 }
 0x526   :  { %v2069_v33 = vrot.slane %v2068_v28, 1  ;;  %v2078_v36 = vrot.slane %v2077_v6, 1  ;;  %v2110_v24 = vrot.slane %v2109_v25, 4  ;;  %v2103_v8 = vrot.slane %v2102_v61, 2 }
 0x527   :  { %v1898_v17 = vsel %vm939_vm3, %v1897_v11, %v1893_v39  ;;  %v2116_v10 = vsel %vm477_vm2, %v2042_v13, 0.0  ;;  %v2117_v15 = vsel %vm477_vm2, %v2043_v40, 0.0  ;;  %v2093_v39 = vadd.f32 %v2092_v59, %v2091_v22  ;;  %v8345_v13 = vld [vmem:[#allocation26_spill] sm:$0xff] }
 0x528   :  { %v1784_v18 = vpop.permute.xlu0 %1783  ;;  %v1787_v31 = vpop.permute.xlu1 %1786  ;;  %v1985_v4 = vsel %vm1086_vm9, %v1898_v17, %v1984_v23  ;;  %v2118_v45 = vadd.f32 %v2117_v15, %v2116_v10  ;;  %v2070_v11 = vadd.f32 %v2069_v33, %v2068_v28  ;;  %v2079_v21 = vadd.f32 %v2078_v36, %v2077_v6  ;;  %v8347_v6 = vld [vmem:[#allocation28_spill] sm:$0xff] }
 0x529   :  { %v1902_v1 = vrot.slane %v1784_v18, %v6644_v29  ;;  %v1906_v60 = vrot.slane %v1787_v31, %v6649_v27  ;;  %v2044_v54 = vmul.f32 %v1784_v18, %v8338_v37  ;;  %v2045_v20 = vmul.f32 %v1787_v31, %v8340_v30  ;;  %v8343_v31 = vld [vmem:[#allocation29_spill] sm:$0xff] }
 0x52a   :  { %v2119_v9 = vrot.slane %v2118_v45, 4  ;;  %v8344_v5 = vmax.f32 %v8343_v31, 0.0  ;;  %v2094_v7 = vrot.slane %v2093_v39, 2  ;;  %v8346_v22 = vmax.f32 %v8345_v13, 0.0 }
 0x52b   :  { %v1907_v48 = vsel %vm939_vm3, %v1906_v60, %v1902_v1  ;;  %v2125_v26 = vsel %vm477_vm2, %v2044_v54, 0.0  ;;  %v2126_v52 = vsel %vm477_vm2, %v2045_v20, 0.0  ;;  %v8348_v44 = vmax.f32 %v8347_v6, 0.0 }
 0x52c   :  { %v1986_v46 = vsel %vm1088_vm10, %v1907_v48, %v1985_v4  ;;  %v2127_v58 = vadd.f32 %v2126_v52, %v2125_v26  ;;  %v2206_v34 = vpack.c.bf16 %v2070_v11, %v2070_v11  ;;  %v2207_v40 = vpack.c.bf16 %v2079_v21, %v2079_v21  ;;  %v8351_v48 = vld [vmem:[#allocation33_spill] sm:$0xff] }
 0x52d   :  { %1996 = vst.msk [vmem:[%s8194_s14] sm:$0xff] %vm1099_vm11, %v1986_v46  ;;  %v2111_v60 = vadd.f32 %v2110_v24, %v2109_v25  ;;  %v2120_v23 = vadd.f32 %v2119_v9, %v2118_v45  ;;  %v7327_v37 = vadd.f32 %v2094_v7, %v2093_v39  ;;  %v8350_v30 = vmax.f32 %v8349_v51, 0.0  ;;  %v8355_v7 = vld [vmem:[#allocation32_spill] sm:$0xff] }
 0x52e   :  { %v2128_v17 = vrot.slane %v2127_v58, 4  ;;  %v7331_v10 = vunpack.c.l.b16 %v2206_v34  ;;  %v7333_v4 = vunpack.c.l.b16 %v2207_v40  ;;  %v7335_v15 = vadd.f32 %v2103_v8, %v2102_v61 }
 0x52f   :  { %v8352_v33 = vmax.f32 %v8351_v48, 0.0  ;;  %v7339_v63 = vadd.f32 %v2087_v56, %v2086_v35  ;;  %v2112_v52 = vrot.slane %v2111_v60, 2  ;;  %v2121_v39 = vrot.slane %v2120_v23, 2 }
 0x530   :  { %v7307_v62 = vpop.permute.xlu0 %1789  ;;  %v7309_v55 = vpop.permute.xlu1 %1792  ;;  %v2129_v46 = vadd.f32 %v2128_v17, %v2127_v58  ;;  %v2096_v61 = vrot.slane %v7327_v37, 1  ;;  %v8354_v35 = vmax.f32 %v8353_v41, 0.0  ;;  %v2105_v58 = vrot.slane %v7335_v15, 1  ;;  %v8361_v41 = vld [vmem:[#allocation34_spill] sm:$0xff] }
 0x531   :  { %v2046_v49 = vmul.f32 %v7307_v62, %v8342_v47  ;;  %v2047_v57 = vmul.f32 %v7309_v55, %v8344_v5  ;;  %v1915_v31 = vrot.slane %v7309_v55, %v6649_v27  ;;  %v8356_v13 = vmax.f32 %v8355_v7, 0.0 }
 0x533   :  { %v2134_v19 = vsel %vm477_vm2, %v2046_v49, 0.0  ;;  %v2135_v42 = vsel %vm477_vm2, %v2047_v57, 0.0  ;;  %v1911_v49 = vrot.slane %v7307_v62, %v6644_v29 }
 0x534   :  { %v1796_v53 = vpop.permute.xlu0 %1795  ;;  %v1799_v18 = vpop.permute.xlu1 %1798  ;;  %v2136_v32 = vadd.f32 %v2135_v42, %v2134_v19  ;;  %v8357_v19 = vld [vmem:[#allocation35_spill] sm:$0xff] }
 0x535   :  { %v2048_v28 = vmul.f32 %v1796_v53, %v8346_v22  ;;  %v2049_v38 = vmul.f32 %v1799_v18, %v8348_v44  ;;  %v1920_v11 = vrot.slane %v1796_v53, %v6644_v29  ;;  %v1924_v21 = vrot.slane %v1799_v18, %v6649_v27 }
 0x536   :  { %v2130_v53 = vrot.slane %v2129_v46, 2  ;;  %v2137_v57 = vrot.slane %v2136_v32, 4  ;;  %v7356_v44 = vadd.f32 %v2112_v52, %v2111_v60  ;;  %v8358_v60 = vmax.f32 %v8357_v19, 0.0 }
 0x537   :  { %v2143_v1 = vsel %vm477_vm2, %v2048_v28, 0.0  ;;  %v2144_v59 = vsel %vm477_vm2, %v2049_v38, 0.0  ;;  %v7358_v38 = vadd.f32 %v2121_v39, %v2120_v23  ;;  %v1925_v34 = vsel %vm939_vm3, %v1924_v21, %v1920_v11 }
 0x538   :  { %v1802_v16 = vpop.permute.xlu0 %1801  ;;  %v1805_v14 = vpop.permute.xlu1 %1804  ;;  %v2145_v54 = vadd.f32 %v2144_v59, %v2143_v1  ;;  %v7368_v23 = vadd.f32 %v2130_v53, %v2129_v46  ;;  %v1916_v51 = vsel %vm939_vm3, %v1915_v31, %v1911_v49  ;;  %v8363_v31 = vld [vmem:[#allocation36_spill] sm:$0xff] }
 0x539   :  { %v2050_v20 = vmul.f32 %v1802_v16, %v8350_v30  ;;  %v2051_v36 = vmul.f32 %v1805_v14, %v8352_v33  ;;  %v1929_v55 = vrot.slane %v1802_v16, %v6644_v29  ;;  %v1933_v8 = vrot.slane %v1805_v14, %v6649_v27 }
 0x53a   :  { %v2146_v24 = vrot.slane %v2145_v54, 4  ;;  %v2138_v30 = vadd.f32 %v2137_v57, %v2136_v32  ;;  %v1987_v33 = vsel %vm1076_vm4, %v1925_v34, %v1916_v51 }
 0x53b   :  { %v2152_v25 = vsel %vm477_vm2, %v2050_v20, 0.0  ;;  %v2153_v9 = vsel %vm477_vm2, %v2051_v36, 0.0 }
 0x53c   :  { %v1808_v45 = vpop.permute.xlu0 %1807  ;;  %v1811_v26 = vpop.permute.xlu1 %1810  ;;  %v2154_v5 = vadd.f32 %v2153_v9, %v2152_v25  ;;  %v2147_v40 = vadd.f32 %v2146_v24, %v2145_v54  ;;  %v8359_v54 = vld [vmem:[#allocation37_spill] sm:$0xff]  ;;  %v2139_v7 = vrot.slane %v2138_v30, 2 }
 0x53d   :  { %v2052_v47 = vmul.f32 %v1808_v45, %v8354_v35  ;;  %v2053_v22 = vmul.f32 %v1811_v26, %v8356_v13  ;;  %v1938_v17 = vrot.slane %v1808_v45, %v6644_v29  ;;  %v1942_v1 = vrot.slane %v1811_v26, %v6649_v27 }
 0x53e   :  { %v2155_v62 = vrot.slane %v2154_v5, 4  ;;  %v8360_v20 = vmax.f32 %v8359_v54, 0.0  ;;  %v1934_v26 = vsel %vm939_vm3, %v1933_v8, %v1929_v55  ;;  %v2148_v32 = vrot.slane %v2147_v40, 2 }
 0x53f   :  { %v2161_v18 = vsel %vm477_vm2, %v2052_v47, 0.0  ;;  %v2162_v56 = vsel %vm477_vm2, %v2053_v22, 0.0  ;;  %v1943_v11 = vsel %vm939_vm3, %v1942_v1, %v1938_v17  ;;  %v8362_v35 = vmax.f32 %v8361_v41, 0.0 }
 0x540   :  { %v1814_v28 = vpop.permute.xlu0 %1813  ;;  %v1817_v6 = vpop.permute.xlu1 %1816  ;;  %v2163_v59 = vadd.f32 %v2162_v56, %v2161_v18  ;;  %v2156_v36 = vadd.f32 %v2155_v62, %v2154_v5  ;;  %v8364_v5 = vmax.f32 %v8363_v31, 0.0  ;;  %v1988_v13 = vsel %vm1078_vm5, %v1934_v26, %v1987_v33  ;;  %v8367_v33 = vld [vmem:[#allocation41_spill] sm:$0xff] }
 0x541   :  { %v2054_v42 = vmul.f32 %v1814_v28, %v8358_v60  ;;  %v2055_v16 = vmul.f32 %v1817_v6, %v8360_v20  ;;  %v1947_v52 = vrot.slane %v1814_v28, %v6644_v29  ;;  %v1951_v46 = vrot.slane %v1817_v6, %v6649_v27  ;;  %v8365_v60 = vld [vmem:[#allocation39_spill] sm:$0xff] }
 0x542   :  { %v2164_v25 = vrot.slane %v2163_v59, 4  ;;  %v2157_v22 = vrot.slane %v2156_v36, 2  ;;  %v2149_v8 = vadd.f32 %v2148_v32, %v2147_v40  ;;  %v1989_v56 = vsel %vm1080_vm6, %v1943_v11, %v1988_v13 }
 0x543   :  { %v2170_v45 = vsel %vm477_vm2, %v2054_v42, 0.0  ;;  %v2171_v39 = vsel %vm477_vm2, %v2055_v16, 0.0  ;;  %v1952_v6 = vsel %vm939_vm3, %v1951_v46, %v1947_v52  ;;  %v8366_v42 = vmax.f32 %v8365_v60, 0.0 }
 0x544   :  { %v1820_v48 = vpop.permute.xlu0 %1819  ;;  %v1823_v14 = vpop.permute.xlu1 %1822  ;;  %v2165_v21 = vadd.f32 %v2164_v25, %v2163_v59  ;;  %v2172_v24 = vadd.f32 %v2171_v39, %v2170_v45  ;;  %v2158_v16 = vadd.f32 %v2157_v22, %v2156_v36  ;;  %v8368_v25 = vmax.f32 %v8367_v33, 0.0 }
 0x545   :  { %v1956_v9 = vrot.slane %v1820_v48, %v6644_v29  ;;  %v2056_v47 = vmul.f32 %v1820_v48, %v8362_v35  ;;  %v1960_v49 = vrot.slane %v1823_v14, %v6649_v27  ;;  %v2057_v53 = vmul.f32 %v1823_v14, %v8364_v5  ;;  %v8369_v35 = vld [vmem:[#allocation38_spill] sm:$0xff] }
 0x546   :  { %v2173_v28 = vrot.slane %v2172_v24, 4  ;;  %v2166_v17 = vrot.slane %v2165_v21, 2  ;;  %v1990_v48 = vsel %vm1082_vm7, %v1952_v6, %v1989_v56  ;;  %v2140_v32 = vadd.f32 %v2139_v7, %v2138_v30 }
 0x547   :  { %v2179_v34 = vsel %vm477_vm2, %v2056_v47, 0.0  ;;  %v2180_v62 = vsel %vm477_vm2, %v2057_v53, 0.0  ;;  %v1961_v59 = vsel %vm939_vm3, %v1960_v49, %v1956_v9  ;;  %v8370_v47 = vmax.f32 %v8369_v35, 0.0 }
 0x548   :  { %v1826_v57 = vpop.permute.xlu0 %1825  ;;  %v1829_v18 = vpop.permute.xlu1 %1828  ;;  %v2174_v1 = vadd.f32 %v2173_v28, %v2172_v24  ;;  %v2181_v19 = vadd.f32 %v2180_v62, %v2179_v34  ;;  %v2167_v11 = vadd.f32 %v2166_v17, %v2165_v21  ;;  %v1991_v9 = vsel %vm1084_vm8, %v1961_v59, %v1990_v48  ;;  %v8371_v21 = vld [vmem:[#allocation40_spill] sm:$0xff] }
 0x549   :  { %v1965_v55 = vrot.slane %v1826_v57, %v6644_v29  ;;  %v2058_v51 = vmul.f32 %v1826_v57, %v8366_v42  ;;  %v1969_v54 = vrot.slane %v1829_v18, %v6649_v27  ;;  %v2059_v40 = vmul.f32 %v1829_v18, %v8368_v25 }
 0x54a   :  { %v2175_v14 = vrot.slane %v2174_v1, 2  ;;  %v2182_v26 = vrot.slane %v2181_v19, 4  ;;  %v2150_v5 = vrot.slane %v2149_v8, 1  ;;  %v2159_v53 = vrot.slane %v2158_v16, 1 }
 0x54b   :  { %v2188_v52 = vsel %vm477_vm2, %v2058_v51, 0.0  ;;  %v1970_v46 = vsel %vm939_vm3, %v1969_v54, %v1965_v55  ;;  %v2189_v41 = vsel %vm477_vm2, %v2059_v40, 0.0  ;;  %v8372_v7 = vmax.f32 %v8371_v21, 0.0 }
 0x54c   :  { %v1832_v20 = vpop.permute.xlu0 %1831  ;;  %v1835_v45 = vpop.permute.xlu1 %1834  ;;  %v2176_v24 = vadd.f32 %v2175_v14, %v2174_v1  ;;  %v2183_v36 = vadd.f32 %v2182_v26, %v2181_v19  ;;  %v1992_v57 = vsel %vm1086_vm9, %v1970_v46, %v1991_v9  ;;  %v2190_v18 = vadd.f32 %v2189_v41, %v2188_v52 }
 0x54d   :  { %v1974_v39 = vrot.slane %v1832_v20, %v6644_v29  ;;  %v2060_v49 = vmul.f32 %v1832_v20, %v8370_v47  ;;  %v1978_v31 = vrot.slane %v1835_v45, %v6649_v27  ;;  %v2061_v22 = vmul.f32 %v1835_v45, %v8372_v7 }
 0x54e   :  { %v2184_v13 = vrot.slane %v2183_v36, 2  ;;  %v2141_v28 = vrot.slane %v2140_v32, 1  ;;  %v2168_v6 = vrot.slane %v2167_v11, 1  ;;  %v2191_v34 = vrot.slane %v2190_v18, 4 }
 0x54f   :  { %v2197_v29 = vsel %vm477_vm2, %v2060_v49, 0.0  ;;  %v1979_v30 = vsel %vm939_vm3, %v1978_v31, %v1974_v39  ;;  %v2114_v27 = vrot.slane %v7356_v44, 1  ;;  %v2177_v55 = vrot.slane %v2176_v24, 1 }
 0x550   :  { %v1993_v62 = vsel %vm1088_vm10, %v1979_v30, %v1992_v57  ;;  %v2185_v56 = vadd.f32 %v2184_v13, %v2183_v36  ;;  %v2198_v17 = vsel %vm477_vm2, %v2061_v22, 0.0  ;;  %v2097_v1 = vadd.f32 %v2096_v61, %v7327_v37 }
 0x551   :  { %1997 = vst.msk [vmem:[%s8194_s14 + $0x8] sm:$0xff] %vm1099_vm11, %v1993_v62  ;;  %v2151_v59 = vadd.f32 %v2150_v5, %v2149_v8  ;;  %v2192_v19 = vadd.f32 %v2191_v34, %v2190_v18  ;;  %v2199_v60 = vadd.f32 %v2198_v17, %v2197_v29  ;;  %v2123_v42 = vrot.slane %v7358_v38, 1 }
 0x552   :  { %v2132_v51 = vrot.slane %v7368_v23, 1  ;;  %v2160_v54 = vadd.f32 %v2159_v53, %v2158_v16  ;;  %v2186_v20 = vrot.slane %v2185_v56, 1  ;;  %v2142_v48 = vadd.f32 %v2141_v28, %v2140_v32 }
 0x553   :  { %v2169_v14 = vadd.f32 %v2168_v6, %v2167_v11  ;;  %v2193_v33 = vrot.slane %v2192_v19, 2  ;;  %v2200_v25 = vrot.slane %v2199_v60, 4  ;;  %v2208_v40 = vpack.c.bf16 %v7339_v63, %v7339_v63 }
 0x554   :  { %v2106_v37 = vadd.f32 %v2105_v58, %v7335_v15  ;;  %v2115_v61 = vadd.f32 %v2114_v27, %v7356_v44  ;;  %v2178_v8 = vadd.f32 %v2177_v55, %v2176_v24  ;;  %v2215_v45 = vpack.c.bf16 %v2151_v59, %v2151_v59 }
 0x555   :  { %v2187_v26 = vadd.f32 %v2186_v20, %v2185_v56  ;;  %v2194_v52 = vadd.f32 %v2193_v33, %v2192_v19  ;;  %v2201_v46 = vadd.f32 %v2200_v25, %v2199_v60  ;;  %v2209_v16 = vpack.c.bf16 %v2097_v1, %v2097_v1  ;;  %v7451_v33 = vld [vmem:[%s8190_s10] ss:$16 sps:$4 sm:$0xff]   ;;  %v7456_v25 = vld [vmem:[%s8190_s10 + $0x8] ss:$16 sps:$4 sm:$0xff]  }
 0x556   :  { %v2124_v39 = vadd.f32 %v2123_v42, %v7358_v38  ;;  %v2133_v32 = vadd.f32 %v2132_v51, %v7368_v23  ;;  %v2216_v11 = vpack.c.bf16 %v2160_v54, %v2160_v54  ;;  %v2214_v9 = vpack.c.bf16 %v2142_v48, %v2142_v48 }
 0x557   :  { %v2217_v36 = vpack.c.bf16 %v2169_v14, %v2169_v14  ;;  %v2195_v63 = vrot.slane %v2194_v52, 1  ;;  %v2202_v41 = vrot.slane %v2201_v46, 2  ;;  %v2278_v35 = vunpack.c.l.b16 %v2208_v40 }
 0x558   :  { %v2210_v47 = vpack.c.bf16 %v2106_v37, %v2106_v37  ;;  %v2211_v15 = vpack.c.bf16 %v2115_v61, %v2115_v61  ;;  %v2218_v58 = vpack.c.bf16 %v2178_v8, %v2178_v8  ;;  %v2285_v44 = vunpack.c.l.b16 %v2215_v45  ;;  %v7461_v37 = vld [vmem:[%s8190_s10 + $0x24] ss:$16 sps:$4 sm:$0xff]   ;;  %v7466_v61 = vld [vmem:[%s8190_s10 + $0x2c] ss:$16 sps:$4 sm:$0xff]   ;;  %v7475_v8 = vld [vmem:[%s8190_s10 + $0x20] ss:$16 sps:$4 sm:$0xff]  }
 0x559   :  { %v2219_v24 = vpack.c.bf16 %v2187_v26, %v2187_v26  ;;  %v2196_v49 = vadd.f32 %v2195_v63, %v2194_v52  ;;  %v2203_v31 = vadd.f32 %v2202_v41, %v2201_v46  ;;  %v2279_v5 = vunpack.c.l.b16 %v2209_v16  ;;  %v7480_v45 = vld [vmem:[%s8190_s10 + $0x28] ss:$16 sps:$4 sm:$0xff]   ;;  %v7487_v26 = vld [vmem:[%s8190_s10 + $0x44] ss:$16 sps:$4 sm:$0xff]   ;;  %v7492_v52 = vld [vmem:[%s8190_s10 + $0x4c] ss:$16 sps:$4 sm:$0xff]  }
 0x55a   :  { %v2212_v53 = vpack.c.bf16 %v2124_v39, %v2124_v39  ;;  %v2213_v57 = vpack.c.bf16 %v2133_v32, %v2133_v32  ;;  %v2286_v18 = vunpack.c.l.b16 %v2216_v11  ;;  %v2284_v38 = vunpack.c.l.b16 %v2214_v9  ;;  %v7501_v16 = vld [vmem:[%s8190_s10 + $0x40] ss:$16 sps:$4 sm:$0xff]   ;;  %v7506_v39 = vld [vmem:[%s8190_s10 + $0x48] ss:$16 sps:$4 sm:$0xff]   ;;  %v7513_v32 = vld [vmem:[%s8190_s10 + $0x64] ss:$16 sps:$4 sm:$0xff]  }
 0x55b   :  { %v2287_v13 = vunpack.c.l.b16 %v2217_v36  ;;  %v2220_v23 = vpack.c.bf16 %v2196_v49, %v2196_v49  ;;  %v2204_v29 = vrot.slane %v2203_v31, 1  ;;  %v2292_v30 = vsel %vm1076_vm4, %v7333_v4, %v7331_v10  ;;  %v7518_v11 = vld [vmem:[%s8190_s10 + $0x6c] ss:$16 sps:$4 sm:$0xff]   ;;  %v7525_v9 = vld [vmem:[%s8190_s10 + $0x60] ss:$16 sps:$4 sm:$0xff]  }
 0x55c   :  { %v2280_v21 = vunpack.c.l.b16 %v2210_v47  ;;  %v2288_v7 = vunpack.c.l.b16 %v2218_v58  ;;  %v2281_v22 = vunpack.c.l.b16 %v2211_v15  ;;  %v2299_v28 = vsel %vm1076_vm4, %v2285_v44, %v2284_v38  ;;  %v7530_v36 = vld [vmem:[%s8190_s10 + $0x68] ss:$16 sps:$4 sm:$0xff]   ;;  %v7537_v63 = vld [vmem:[%s8190_s10 + $0x84] ss:$16 sps:$4 sm:$0xff]   ;;  %v7542_v41 = vld [vmem:[%s8190_s10 + $0x8c] ss:$16 sps:$4 sm:$0xff]  }
 0x55d   :  { %v2289_v6 = vunpack.c.l.b16 %v2219_v24  ;;  %v2205_v34 = vadd.f32 %v2204_v29, %v2203_v31  ;;  %v2293_v62 = vsel %vm1078_vm5, %v2278_v35, %v2292_v30  ;;  %v2282_v27 = vunpack.c.l.b16 %v2212_v53  ;;  %v7549_v35 = vld [vmem:[%s8190_s10 + $0x80] ss:$16 sps:$4 sm:$0xff]   ;;  %v7554_v47 = vld [vmem:[%s8190_s10 + $0x88] ss:$16 sps:$4 sm:$0xff]   ;;  %v7561_v15 = vld [vmem:[%s8190_s10 + $0xa4] ss:$16 sps:$4 sm:$0xff]  }
 0x55e   :  { %v2300_v55 = vsel %vm1078_vm5, %v2286_v18, %v2299_v28  ;;  %v2290_v56 = vunpack.c.l.b16 %v2220_v23  ;;  %v2294_v17 = vsel %vm1080_vm6, %v2279_v5, %v2293_v62  ;;  %v2283_v1 = vunpack.c.l.b16 %v2213_v57  ;;  %v7566_v58 = vld [vmem:[%s8190_s10 + $0xac] ss:$16 sps:$4 sm:$0xff]   ;;  %v7573_v44 = vld [vmem:[%s8190_s10 + $0xa0] ss:$16 sps:$4 sm:$0xff]   ;;  %v7578_v24 = vld [vmem:[%s8190_s10 + $0xa8] ss:$16 sps:$4 sm:$0xff]  }
 0x55f   :  { %v2301_v59 = vsel %vm1080_vm6, %v2287_v13, %v2300_v55  ;;  %v2221_v19 = vpack.c.bf16 %v2205_v34, %v2205_v34  ;;  %v2295_v10 = vsel %vm1082_vm7, %v2280_v21, %v2294_v17  ;;  %v8373_v46 = vmov 0   ;;  %v7585_v49 = vld [vmem:[%s8190_s10 + $0xc4] ss:$16 sps:$4 sm:$0xff]   ;;  %v7590_v31 = vld [vmem:[%s8190_s10 + $0xcc] ss:$16 sps:$4 sm:$0xff]  }
 0x560   :  { %v2302_v4 = vsel %vm1082_vm7, %v2288_v7, %v2301_v59  ;;  %v2296_v60 = vsel %vm1084_vm8, %v2281_v22, %v2295_v10  ;;  %v7597_v5 = vld [vmem:[%s8190_s10 + $0xc0] ss:$16 sps:$4 sm:$0xff]   ;;  %v7602_v53 = vld [vmem:[%s8190_s10 + $0xc8] ss:$16 sps:$4 sm:$0xff]   ;;  %v7609_v57 = vld [vmem:[%s8190_s10 + $0xe4] ss:$16 sps:$4 sm:$0xff]  }
 0x561   :  { %v2303_v42 = vsel %vm1084_vm8, %v2289_v6, %v2302_v4  ;;  %v2291_v51 = vunpack.c.l.b16 %v2221_v19  ;;  %v2297_v54 = vsel %vm1086_vm9, %v2282_v27, %v2296_v60  ;;  %v7614_v18 = vld [vmem:[%s8190_s10 + $0xec] ss:$16 sps:$4 sm:$0xff]   ;;  %v7621_v38 = vld [vmem:[%s8190_s10 + $0xe0] ss:$16 sps:$4 sm:$0xff]   ;;  %v7626_v13 = vld [vmem:[%s8190_s10 + $0xe8] ss:$16 sps:$4 sm:$0xff]  }
 0x562   :  { %v2304_v20 = vsel %vm1086_vm9, %v2290_v56, %v2303_v42  ;;  %v2298_v48 = vsel %vm1088_vm10, %v2283_v1, %v2297_v54  ;;  %v2476_v23 = vld [vmem:[%s8374_s19] sm:$0x3] }
 0x563   :  { %v2305_v14 = vsel %vm1088_vm10, %v2291_v51, %v2304_v20  ;;  %v2478_v29 = vpack.c.bf16 %v2476_v23, %v2476_v23  ;;  %v2238_v30 = vld [vmem:[%s8191_s11] sm:$0xf] }
 0x564   :  { %v2306_v40 = vpack.c.b16 %v2305_v14, %v2298_v48  ;;  %v2243_v22 = vrot.slane %v2238_v30, %v6857_v50  ;;  %v2251_v28 = vrot.slane %v2238_v30, %v6860_v12  ;;  %v2247_v62 = vrot.slane %v2238_v30, %v6863_v43 }
 0x565   :  { %v2255_v27 = vrot.slane %v2238_v30, %v6866_v0 }
 0x566   :  { %5245 = vmatmul.mubr.msk.bf16.vlgmr.msra.gmra.mrb[24].mxu0 %vm477_vm2, %v2306_v40  ;;  %5246 = vmatmul.mubr.msk.bf16.vlgmr.msra.gmra.mrb[40].mxu1 %vm477_vm2, %v2306_v40 }
 0x567   :  { %2672 = vmatpush1.bf16.msra.mxu0 %v7451_v33  ;;  %2713 = vmatpush1.bf16.msra.mxu1 %v7456_v25 }
 0x568   :  { %2673 = vmatprep.subr.bf16.mxu0 %v7461_v37  ;;  %2714 = vmatprep.subr.bf16.mxu1 %v7466_v61 }
 0x569   :  { %2703 = vmatprep.mubr.bf16.mxu0 %v8373_v46  ;;  %2744 = vmatprep.mubr.bf16.mxu1 %v8373_v46 }
 0x56b   :  { %2674 = vmatpush1.bf16.msra.mxu0 %v7475_v8  ;;  %2715 = vmatpush1.bf16.msra.mxu1 %v7480_v45 }
 0x56c   :  { %2675 = vmatprep.subr.bf16.mxu0 %v7487_v26  ;;  %2716 = vmatprep.subr.bf16.mxu1 %v7492_v52 }
 0x56f   :  { %2676 = vmatpush1.bf16.msra.mxu0 %v7501_v16  ;;  %2717 = vmatpush1.bf16.msra.mxu1 %v7506_v39 }
 0x570   :  { %2677 = vmatprep.subr.bf16.mxu0 %v7513_v32  ;;  %2718 = vmatprep.subr.bf16.mxu1 %v7518_v11 }
 0x573   :  { %2678 = vmatpush1.bf16.msra.mxu0 %v7525_v9  ;;  %2719 = vmatpush1.bf16.msra.mxu1 %v7530_v36 }
 0x574   :  { %2679 = vmatprep.subr.bf16.mxu0 %v7537_v63  ;;  %2720 = vmatprep.subr.bf16.mxu1 %v7542_v41 }
 0x577   :  { %2680 = vmatpush1.bf16.msra.mxu0 %v7549_v35  ;;  %2721 = vmatpush1.bf16.msra.mxu1 %v7554_v47 }
 0x578   :  { %2681 = vmatprep.subr.bf16.mxu0 %v7561_v15  ;;  %2722 = vmatprep.subr.bf16.mxu1 %v7566_v58 }
 0x57b   :  { %2682 = vmatpush1.bf16.msra.mxu0 %v7573_v44  ;;  %2723 = vmatpush1.bf16.msra.mxu1 %v7578_v24 }
 0x57c   :  { %2683 = vmatprep.subr.bf16.mxu0 %v7585_v49  ;;  %2724 = vmatprep.subr.bf16.mxu1 %v7590_v31 }
 0x57f   :  { %2684 = vmatpush1.bf16.msra.mxu0 %v7597_v5  ;;  %2725 = vmatpush1.bf16.msra.mxu1 %v7602_v53 }
 0x580   :  { %2685 = vmatprep.subr.bf16.mxu0 %v7609_v57  ;;  %2726 = vmatprep.subr.bf16.mxu1 %v7614_v18 }
 0x583   :  { %2686 = vmatpush1.bf16.msra.mxu0 %v7621_v38  ;;  %2727 = vmatpush1.bf16.msra.mxu1 %v7626_v13 }
 0x584   :  { %2975 = vmatprep.subr.bf16.mxu0 %v7214_v3  ;;  %3016 = vmatprep.subr.bf16.mxu1 %v7222_v2 }
 0x586   :  { %2704 = vmatmul.mubr.bf16.vlgmr.msra.gmra.mrb[28].mxu0 %v2478_v29  ;;  %2745 = vmatmul.mubr.bf16.vlgmr.msra.gmra.mrb[44].mxu1 %v2478_v29 }
 0x587   :  { %2976 = vmatpush1.bf16.msra.mxu0 %v7451_v33  ;;  %3017 = vmatpush1.bf16.msra.mxu1 %v7456_v25 }
 0x588   :  { %2977 = vmatprep.subr.bf16.mxu0 %v7461_v37  ;;  %3018 = vmatprep.subr.bf16.mxu1 %v7466_v61 }
 0x589   :  { %3007 = vmatprep.mubr.bf16.mxu0 %v8373_v46  ;;  %3048 = vmatprep.mubr.bf16.mxu1 %v8373_v46 }
 0x58b   :  { %2978 = vmatpush1.bf16.msra.mxu0 %v7475_v8  ;;  %3019 = vmatpush1.bf16.msra.mxu1 %v7480_v45 }
 0x58c   :  { %2979 = vmatprep.subr.bf16.mxu0 %v7487_v26  ;;  %3020 = vmatprep.subr.bf16.mxu1 %v7492_v52 }
 0x58f   :  { %2980 = vmatpush1.bf16.msra.mxu0 %v7501_v16  ;;  %3021 = vmatpush1.bf16.msra.mxu1 %v7506_v39 }
 0x590   :  { %2981 = vmatprep.subr.bf16.mxu0 %v7513_v32  ;;  %3022 = vmatprep.subr.bf16.mxu1 %v7518_v11 }
 0x593   :  { %2982 = vmatpush1.bf16.msra.mxu0 %v7525_v9  ;;  %3023 = vmatpush1.bf16.msra.mxu1 %v7530_v36 }
 0x594   :  { %2983 = vmatprep.subr.bf16.mxu0 %v7537_v63  ;;  %3024 = vmatprep.subr.bf16.mxu1 %v7542_v41 }
 0x597   :  { %2984 = vmatpush1.bf16.msra.mxu0 %v7549_v35  ;;  %3025 = vmatpush1.bf16.msra.mxu1 %v7554_v47 }
 0x598   :  { %2985 = vmatprep.subr.bf16.mxu0 %v7561_v15  ;;  %3026 = vmatprep.subr.bf16.mxu1 %v7566_v58 }
 0x59b   :  { %2986 = vmatpush1.bf16.msra.mxu0 %v7573_v44  ;;  %3027 = vmatpush1.bf16.msra.mxu1 %v7578_v24 }
 0x59c   :  { %2987 = vmatprep.subr.bf16.mxu0 %v7585_v49  ;;  %3028 = vmatprep.subr.bf16.mxu1 %v7590_v31 }
 0x59f   :  { %2988 = vmatpush1.bf16.msra.mxu0 %v7597_v5  ;;  %3029 = vmatpush1.bf16.msra.mxu1 %v7602_v53 }
 0x5a0   :  { %2989 = vmatprep.subr.bf16.mxu0 %v7609_v57  ;;  %3030 = vmatprep.subr.bf16.mxu1 %v7614_v18 }
 0x5a3   :  { %2990 = vmatpush1.bf16.msra.mxu0 %v7621_v38  ;;  %3031 = vmatpush1.bf16.msra.mxu1 %v7626_v13 }
 0x5a4   :  { %3297 = vmatprep.subr.bf16.mxu0 %v7214_v3  ;;  %3338 = vmatprep.subr.bf16.mxu1 %v7222_v2 }
 0x639   :  { %v2424_v21 = vpop.f32.mrb[24].mxu0  ;;  %v2467_v7 = vpop.f32.mrb[40].mxu1 }
 0x63a   :  { %v2426_v6 = vpop.f32.mrb[25].mxu0  ;;  %v2469_v34 = vpop.f32.mrb[41].mxu1  ;;  %v7686_v50 = vadd.f32 %v2424_v21, %v2243_v22  ;;  %v7695_v30 = vadd.f32 %v2467_v7, %v2251_v28 }
 0x63b   :  { %v2428_v55 = vpop.f32.mrb[26].mxu0  ;;  %v2471_v3 = vpop.f32.mrb[42].mxu1  ;;  %v7688_v12 = vadd.f32 %v2426_v6, %v2247_v62  ;;  %v7692_v23 = vadd.f32 %v2469_v34, %v2255_v27  ;;  %v2477_v34 = vld [vmem:[%s8182_s2] sm:$0x3] }
 0x63c   :  { %v7678_v56 = vadd.f32 %v2428_v55, %v2243_v22  ;;  %v7680_v2 = vadd.f32 %v2471_v3, %v2251_v28  ;;  %v2430_v17 = vpop.f32.mrb[27].mxu0  ;;  %v2473_v1 = vpop.f32.mrb[43].mxu1 }
 0x63d   :  { %v7682_v59 = vadd.f32 %v2430_v17, %v2247_v62  ;;  %v7684_v19 = vadd.f32 %v2473_v1, %v2255_v27 }
 0x659   :  { %v2705_v10 = vpop.f32.mrb[28].mxu0  ;;  %v2746_v43 = vpop.f32.mrb[44].mxu1 }
 0x65a   :  { %v2753_v0 = vadd.f32 %v2705_v10, %v7686_v50  ;;  %v2707_v4 = vpop.f32.mrb[29].mxu0  ;;  %v2748_v60 = vpop.f32.mrb[45].mxu1  ;;  %v2755_v22 = vadd.f32 %v2746_v43, %v7695_v30 }
 0x65b   :  { %v2754_v42 = vadd.f32 %v2707_v4, %v7688_v12  ;;  %v2709_v51 = vpop.f32.mrb[30].mxu0  ;;  %v2750_v54 = vpop.f32.mrb[46].mxu1  ;;  %v2756_v29 = vadd.f32 %v2748_v60, %v7692_v23 }
 0x65c   :  { %v5279_v20 = vmul.f32 -1.442695, %v2753_v0  ;;  %v2710_v48 = vpop.f32.mrb[31].mxu0  ;;  %v2751_v14 = vpop.f32.mrb[47].mxu1  ;;  %v6059_v54 = vld [vmem:[%s8190_s10 + $0x4] ss:$16 sps:$4 sm:$0xff]  }
 0x65d   :  { %v5280_v40 = vmul.f32 -1.442695, %v2754_v42  ;;  %v5281_v21 = vmul.f32 -1.442695, %v2756_v29 }
 0x65e   :  { %5931 = vpow2.f32 %v5279_v20  ;;  %v6060_v20 = vld [vmem:[%s8190_s10 + $0xc] ss:$16 sps:$4 sm:$0xff]  }
 0x65f   :  { %5933 = vpow2.f32 %v5280_v40 }
 0x660   :  { %5935 = vpow2.f32 %v5281_v21 }
 0x661   :  { %5937 = vtanh.f32 %v2755_v22 }
 0x668   :  { %v5932_v6 = vpop.eup %5931 }
 0x669   :  { %v5934_v62 = vpop.eup %5933  ;;  %v2760_v55 = vadd.f32 1.0, %v5932_v6 }
 0x66a   :  { %v2766_v3 = vadd.f32 1.0, %v5934_v62  ;;  %v5936_v17 = vpop.eup %5935 }
 0x66b   :  { %5939 = vrcp.f32 %v2760_v55  ;;  %v5938_v1 = vpop.eup %5937  ;;  %v2773_v10 = vadd.f32 1.0, %v5936_v17 }
 0x66c   :  { %5941 = vrcp.f32 %v2766_v3 }
 0x66d   :  { %5943 = vrcp.f32 %v2773_v10 }
 0x675   :  { %v5940_v27 = vpop.eup %5939 }
 0x676   :  { %v5942_v7 = vpop.eup %5941  ;;  %v2777_v28 = vmul.f32 %v5940_v27, %v5938_v1 }
 0x677   :  { %v2776_v0 = vmul.f32 %v5942_v7, %v2477_v34  ;;  %v5944_v4 = vpop.eup %5943 }
 0x679   :  { %v7701_v43 = vadd.f32 %v2777_v28, %v2776_v0 }
 0x67b   :  { %5945 = vtanh.f32 %v7701_v43 }
 0x685   :  { %v5946_v60 = vpop.eup %5945 }
 0x686   :  { %v2780_v42 = vmul.f32 %v5946_v60, %v5944_v4 }
 0x688   :  { %2781 = vst [vmem:[#allocation2] sm:$0x3] %v2780_v42  ;;  %v2782_v51 = vpack.c.bf16 %v2780_v42, %v2780_v42 }
 0x68a   :  { %3008 = vmatmul.mubr.bf16.vlgmr.msra.gmra.mrb[32].mxu0 %v2782_v51  ;;  %3049 = vmatmul.mubr.bf16.vlgmr.msra.gmra.mrb[48].mxu1 %v2782_v51 }
 0x68b   :  { %3298 = vmatpush1.bf16.msra.mxu0 %v7451_v33  ;;  %3339 = vmatpush1.bf16.msra.mxu1 %v7456_v25 }
 0x68c   :  { %3299 = vmatprep.subr.bf16.mxu0 %v7461_v37  ;;  %3340 = vmatprep.subr.bf16.mxu1 %v7466_v61 }
 0x68d   :  { %3329 = vmatprep.mubr.bf16.mxu0 %v8373_v46  ;;  %3370 = vmatprep.mubr.bf16.mxu1 %v8373_v46 }
 0x68f   :  { %3300 = vmatpush1.bf16.msra.mxu0 %v7475_v8  ;;  %3341 = vmatpush1.bf16.msra.mxu1 %v7480_v45 }
 0x690   :  { %3301 = vmatprep.subr.bf16.mxu0 %v7487_v26  ;;  %3342 = vmatprep.subr.bf16.mxu1 %v7492_v52 }
 0x693   :  { %3302 = vmatpush1.bf16.msra.mxu0 %v7501_v16  ;;  %3343 = vmatpush1.bf16.msra.mxu1 %v7506_v39 }
 0x694   :  { %3303 = vmatprep.subr.bf16.mxu0 %v7513_v32  ;;  %3344 = vmatprep.subr.bf16.mxu1 %v7518_v11 }
 0x697   :  { %3304 = vmatpush1.bf16.msra.mxu0 %v7525_v9  ;;  %3345 = vmatpush1.bf16.msra.mxu1 %v7530_v36 }
 0x698   :  { %3305 = vmatprep.subr.bf16.mxu0 %v7537_v63  ;;  %3346 = vmatprep.subr.bf16.mxu1 %v7542_v41 }
 0x69b   :  { %3306 = vmatpush1.bf16.msra.mxu0 %v7549_v35  ;;  %3347 = vmatpush1.bf16.msra.mxu1 %v7554_v47 }
 0x69c   :  { %3307 = vmatprep.subr.bf16.mxu0 %v7561_v15  ;;  %3348 = vmatprep.subr.bf16.mxu1 %v7566_v58 }
 0x69f   :  { %3308 = vmatpush1.bf16.msra.mxu0 %v7573_v44  ;;  %3349 = vmatpush1.bf16.msra.mxu1 %v7578_v24 }
 0x6a0   :  { %3309 = vmatprep.subr.bf16.mxu0 %v7585_v49  ;;  %3350 = vmatprep.subr.bf16.mxu1 %v7590_v31 }
 0x6a3   :  { %3310 = vmatpush1.bf16.msra.mxu0 %v7597_v5  ;;  %3351 = vmatpush1.bf16.msra.mxu1 %v7602_v53 }
 0x6a4   :  { %3311 = vmatprep.subr.bf16.mxu0 %v7609_v57  ;;  %3352 = vmatprep.subr.bf16.mxu1 %v7614_v18 }
 0x6a7   :  { %3312 = vmatpush1.bf16.msra.mxu0 %v7621_v38  ;;  %3353 = vmatpush1.bf16.msra.mxu1 %v7626_v13 }
 0x6a8   :  { %3619 = vmatprep.subr.bf16.mxu0 %v6059_v54  ;;  %3660 = vmatprep.subr.bf16.mxu1 %v6060_v20 }
 0x75d   :  { %v3009_v48 = vpop.f32.mrb[32].mxu0  ;;  %v3050_v14 = vpop.f32.mrb[48].mxu1 }
 0x75e   :  { %v3061_v40 = vrot.slane %v3009_v48, 6  ;;  %v3011_v29 = vpop.f32.mrb[33].mxu0  ;;  %v3052_v21 = vpop.f32.mrb[49].mxu1  ;;  %v3063_v10 = vrot.slane %v3050_v14, 6 }
 0x75f   :  { %v3062_v22 = vrot.slane %v3011_v29, 6  ;;  %v3013_v6 = vpop.f32.mrb[34].mxu0  ;;  %v3054_v62 = vpop.f32.mrb[50].mxu1  ;;  %v3064_v7 = vrot.slane %v3052_v21, 6  ;;  %v3093_v29 = vrot.slane %v7701_v43, 6 }
 0x760   :  { %v3069_v55 = vadd.f32 %v3061_v40, %v7686_v50  ;;  %v3014_v3 = vpop.f32.mrb[35].mxu0  ;;  %v3055_v17 = vpop.f32.mrb[51].mxu1  ;;  %v3071_v4 = vadd.f32 %v3063_v10, %v7695_v30 }
 0x761   :  { %v3070_v1 = vadd.f32 %v3062_v22, %v7688_v12  ;;  %v3072_v28 = vadd.f32 %v3064_v7, %v7692_v23 }
 0x762   :  { %v5314_v34 = vmul.f32 -1.442695, %v3069_v55 }
 0x763   :  { %v5315_v27 = vmul.f32 -1.442695, %v3070_v1  ;;  %v5316_v0 = vmul.f32 -1.442695, %v3072_v28 }
 0x764   :  { %5947 = vpow2.f32 %v5314_v34 }
 0x765   :  { %5949 = vpow2.f32 %v5315_v27 }
 0x766   :  { %5951 = vpow2.f32 %v5316_v0 }
 0x767   :  { %5953 = vtanh.f32 %v3071_v4 }
 0x76e   :  { %v5948_v60 = vpop.eup %5947 }
 0x76f   :  { %v5950_v42 = vpop.eup %5949  ;;  %v3076_v51 = vadd.f32 1.0, %v5948_v60  ;;  %v7795_v60 = vld [vmem:[%s8190_s10] ss:$16 sps:$4 sm:$0xff]  }
 0x770   :  { %v3082_v54 = vadd.f32 1.0, %v5950_v42  ;;  %v5952_v20 = vpop.eup %5951  ;;  %v7800_v42 = vld [vmem:[%s8190_s10 + $0x4] ss:$16 sps:$4 sm:$0xff]  }
 0x771   :  { %5955 = vrcp.f32 %v3076_v51  ;;  %v5954_v48 = vpop.eup %5953  ;;  %v3089_v6 = vadd.f32 1.0, %v5952_v20  ;;  %v7805_v51 = vld [vmem:[%s8190_s10 + $0x8] ss:$16 sps:$4 sm:$0xff]   ;;  %v7815_v20 = vld [vmem:[%s8190_s10 + $0x24] ss:$16 sps:$4 sm:$0xff]  }
 0x772   :  { %5957 = vrcp.f32 %v3082_v54  ;;  %v7810_v54 = vld [vmem:[%s8190_s10 + $0xc] ss:$16 sps:$4 sm:$0xff]  }
 0x773   :  { %5959 = vrcp.f32 %v3089_v6  ;;  %v7852_v6 = vld [vmem:[%s8190_s10 + $0x40] ss:$16 sps:$4 sm:$0xff]  }
 0x77b   :  { %v5956_v40 = vpop.eup %5955 }
 0x77c   :  { %v5958_v21 = vpop.eup %5957  ;;  %v3096_v22 = vmul.f32 %v5956_v40, %v5954_v48  ;;  %v7821_v48 = vld [vmem:[%s8190_s10 + $0x2c] ss:$16 sps:$4 sm:$0xff]   ;;  %v7828_v40 = vld [vmem:[%s8190_s10 + $0x20] ss:$16 sps:$4 sm:$0xff]  }
 0x77d   :  { %v3095_v14 = vmul.f32 %v5958_v21, %v3093_v29  ;;  %v5960_v55 = vpop.eup %5959  ;;  %v7835_v29 = vld [vmem:[%s8190_s10 + $0x28] ss:$16 sps:$4 sm:$0xff]   ;;  %v7840_v21 = vld [vmem:[%s8190_s10 + $0x44] ss:$16 sps:$4 sm:$0xff]  }
 0x77f   :  { %v7747_v62 = vadd.f32 %v3096_v22, %v3095_v14  ;;  %v7846_v22 = vld [vmem:[%s8190_s10 + $0x4c] ss:$16 sps:$4 sm:$0xff]   ;;  %v7859_v14 = vld [vmem:[%s8190_s10 + $0x48] ss:$16 sps:$4 sm:$0xff]  }
 0x781   :  { %5961 = vtanh.f32 %v7747_v62 }
 0x78b   :  { %v5962_v3 = vpop.eup %5961 }
 0x78c   :  { %v3099_v17 = vmul.f32 %v5962_v3, %v5960_v55  ;;  %v7870_v55 = vld [vmem:[%s8190_s10 + $0x6c] ss:$16 sps:$4 sm:$0xff]   ;;  %v7876_v3 = vld [vmem:[%s8190_s10 + $0x60] ss:$16 sps:$4 sm:$0xff]  }
 0x78e   :  { %3100 = vst [vmem:[#allocation2] sm:$0xc] %v3099_v17  ;;  %v3101_v1 = vpack.c.bf16 %v3099_v17, %v3099_v17  ;;  %v7883_v17 = vld [vmem:[%s8190_s10 + $0x68] ss:$16 sps:$4 sm:$0xff]  }
 0x790   :  { %v3135_v34 = vrot.slane %v3101_v1, 1  ;;  %v7888_v1 = vld [vmem:[%s8190_s10 + $0x84] ss:$16 sps:$4 sm:$0xff]  }
 0x792   :  { %3330 = vmatmul.mubr.bf16.vlgmr.msra.gmra.mrb[36].mxu0 %v3135_v34  ;;  %3371 = vmatmul.mubr.bf16.vlgmr.msra.gmra.mrb[52].mxu1 %v3135_v34  ;;  %v7894_v34 = vld [vmem:[%s8190_s10 + $0x8c] ss:$16 sps:$4 sm:$0xff]  }
 0x793   :  { %3620 = vmatpush1.bf16.msra.mxu0 %v7451_v33  ;;  %3661 = vmatpush1.bf16.msra.mxu1 %v7456_v25 }
 0x794   :  { %3621 = vmatprep.subr.bf16.mxu0 %v7461_v37  ;;  %3662 = vmatprep.subr.bf16.mxu1 %v7466_v61 }
 0x795   :  { %3651 = vmatprep.mubr.bf16.mxu0 %v8373_v46  ;;  %3692 = vmatprep.mubr.bf16.mxu1 %v8373_v46 }
 0x797   :  { %3622 = vmatpush1.bf16.msra.mxu0 %v7475_v8  ;;  %3663 = vmatpush1.bf16.msra.mxu1 %v7480_v45 }
 0x798   :  { %3623 = vmatprep.subr.bf16.mxu0 %v7487_v26  ;;  %3664 = vmatprep.subr.bf16.mxu1 %v7492_v52 }
 0x79b   :  { %3624 = vmatpush1.bf16.msra.mxu0 %v7501_v16  ;;  %3665 = vmatpush1.bf16.msra.mxu1 %v7506_v39 }
 0x79c   :  { %3625 = vmatprep.subr.bf16.mxu0 %v7513_v32  ;;  %3666 = vmatprep.subr.bf16.mxu1 %v7518_v11 }
 0x79f   :  { %3626 = vmatpush1.bf16.msra.mxu0 %v7525_v9  ;;  %3667 = vmatpush1.bf16.msra.mxu1 %v7530_v36 }
 0x7a0   :  { %3627 = vmatprep.subr.bf16.mxu0 %v7537_v63  ;;  %3668 = vmatprep.subr.bf16.mxu1 %v7542_v41 }
 0x7a3   :  { %3628 = vmatpush1.bf16.msra.mxu0 %v7549_v35  ;;  %3669 = vmatpush1.bf16.msra.mxu1 %v7554_v47 }
 0x7a4   :  { %3629 = vmatprep.subr.bf16.mxu0 %v7561_v15  ;;  %3670 = vmatprep.subr.bf16.mxu1 %v7566_v58 }
 0x7a7   :  { %3630 = vmatpush1.bf16.msra.mxu0 %v7573_v44  ;;  %3671 = vmatpush1.bf16.msra.mxu1 %v7578_v24 }
 0x7a8   :  { %3631 = vmatprep.subr.bf16.mxu0 %v7585_v49  ;;  %3672 = vmatprep.subr.bf16.mxu1 %v7590_v31 }
 0x7ab   :  { %3632 = vmatpush1.bf16.msra.mxu0 %v7597_v5  ;;  %3673 = vmatpush1.bf16.msra.mxu1 %v7602_v53 }
 0x7ac   :  { %3633 = vmatprep.subr.bf16.mxu0 %v7609_v57  ;;  %3674 = vmatprep.subr.bf16.mxu1 %v7614_v18  ;;  %v3415_v57 = vrot.slane %v7747_v62, 6  ;;  %v7864_v62 = vld [vmem:[%s8190_s10 + $0x64] ss:$16 sps:$4 sm:$0xff]  }
 0x7af   :  { %3634 = vmatpush1.bf16.msra.mxu0 %v7621_v38  ;;  %3675 = vmatpush1.bf16.msra.mxu1 %v7626_v13 }
 0x7b0   :  { %3941 = vmatprep.subr.bf16.mxu0 %v7800_v42  ;;  %3982 = vmatprep.subr.bf16.mxu1 %v7810_v54 }
 0x865   :  { %v3331_v33 = vpop.f32.mrb[36].mxu0  ;;  %v3372_v25 = vpop.f32.mrb[52].mxu1 }
 0x866   :  { %v3383_v37 = vrot.slane %v3331_v33, 4  ;;  %v3333_v61 = vpop.f32.mrb[37].mxu0  ;;  %v3374_v8 = vpop.f32.mrb[53].mxu1  ;;  %v3385_v35 = vrot.slane %v3372_v25, 4  ;;  %v7900_v33 = vld [vmem:[%s8190_s10 + $0x80] ss:$16 sps:$4 sm:$0xff]  }
 0x867   :  { %v3384_v45 = vrot.slane %v3333_v61, 4  ;;  %v3335_v26 = vpop.f32.mrb[38].mxu0  ;;  %v3376_v52 = vpop.f32.mrb[54].mxu1  ;;  %v3386_v63 = vrot.slane %v3374_v8, 4  ;;  %v7907_v25 = vld [vmem:[%s8190_s10 + $0x88] ss:$16 sps:$4 sm:$0xff]  }
 0x868   :  { %v3391_v16 = vadd.f32 %v3383_v37, %v7686_v50  ;;  %v3336_v39 = vpop.f32.mrb[39].mxu0  ;;  %v3377_v32 = vpop.f32.mrb[55].mxu1  ;;  %v3393_v15 = vadd.f32 %v3385_v35, %v7695_v30  ;;  %v7912_v37 = vld [vmem:[%s8190_s10 + $0xa4] ss:$16 sps:$4 sm:$0xff]   ;;  %v7918_v61 = vld [vmem:[%s8190_s10 + $0xac] ss:$16 sps:$4 sm:$0xff]  }
 0x869   :  { %v3392_v11 = vadd.f32 %v3384_v45, %v7688_v12  ;;  %v3394_v41 = vadd.f32 %v3386_v63, %v7692_v23  ;;  %v7924_v8 = vld [vmem:[%s8190_s10 + $0xa0] ss:$16 sps:$4 sm:$0xff]   ;;  %v7931_v45 = vld [vmem:[%s8190_s10 + $0xa8] ss:$16 sps:$4 sm:$0xff]   ;;  %v7936_v26 = vld [vmem:[%s8190_s10 + $0xc4] ss:$16 sps:$4 sm:$0xff]  }
 0x86a   :  { %v5349_v9 = vmul.f32 -1.442695, %v3391_v16  ;;  %v7942_v52 = vld [vmem:[%s8190_s10 + $0xcc] ss:$16 sps:$4 sm:$0xff]   ;;  %v7948_v16 = vld [vmem:[%s8190_s10 + $0xc0] ss:$16 sps:$4 sm:$0xff]  }
 0x86b   :  { %v5350_v36 = vmul.f32 -1.442695, %v3392_v11  ;;  %v5351_v47 = vmul.f32 -1.442695, %v3394_v41  ;;  %v7955_v39 = vld [vmem:[%s8190_s10 + $0xc8] ss:$16 sps:$4 sm:$0xff]  }
 0x86c   :  { %5963 = vpow2.f32 %v5349_v9  ;;  %v7960_v32 = vld [vmem:[%s8190_s10 + $0xe4] ss:$16 sps:$4 sm:$0xff]   ;;  %v7966_v11 = vld [vmem:[%s8190_s10 + $0xec] ss:$16 sps:$4 sm:$0xff]   ;;  %v7972_v9 = vld [vmem:[%s8190_s10 + $0xe0] ss:$16 sps:$4 sm:$0xff]  }
 0x86d   :  { %5965 = vpow2.f32 %v5350_v36  ;;  %v7979_v36 = vld [vmem:[%s8190_s10 + $0xe8] ss:$16 sps:$4 sm:$0xff]  }
 0x86e   :  { %5967 = vpow2.f32 %v5351_v47 }
 0x86f   :  { %5969 = vtanh.f32 %v3393_v15 }
 0x876   :  { %v5964_v58 = vpop.eup %5963 }
 0x877   :  { %v5966_v44 = vpop.eup %5965  ;;  %v3398_v24 = vadd.f32 1.0, %v5964_v58 }
 0x878   :  { %v3404_v49 = vadd.f32 1.0, %v5966_v44  ;;  %v5968_v31 = vpop.eup %5967 }
 0x879   :  { %5971 = vrcp.f32 %v3398_v24  ;;  %v5970_v5 = vpop.eup %5969  ;;  %v3411_v13 = vadd.f32 1.0, %v5968_v31 }
 0x87a   :  { %5973 = vrcp.f32 %v3404_v49 }
 0x87b   :  { %5975 = vrcp.f32 %v3411_v13 }
 0x883   :  { %v5972_v53 = vpop.eup %5971 }
 0x884   :  { %v5974_v18 = vpop.eup %5973  ;;  %v3418_v38 = vmul.f32 %v5972_v53, %v5970_v5 }
 0x885   :  { %v3417_v43 = vmul.f32 %v5974_v18, %v3415_v57  ;;  %v5976_v7 = vpop.eup %5975 }
 0x887   :  { %v7787_v27 = vadd.f32 %v3418_v38, %v3417_v43 }
 0x889   :  { %5977 = vtanh.f32 %v7787_v27 }
 0x893   :  { %v5978_v28 = vpop.eup %5977 }
 0x894   :  { %v3421_v10 = vmul.f32 %v5978_v28, %v5976_v7 }
 0x896   :  { %3422 = vst [vmem:[#allocation2] sm:$0x30] %v3421_v10  ;;  %v3423_v0 = vpack.c.bf16 %v3421_v10, %v3421_v10 }
 0x898   :  { %v3457_v4 = vrot.slane %v3423_v0, 2 }
 0x89a   :  { %3652 = vmatmul.mubr.bf16.vlgmr.msra.gmra.mrb[40].mxu0 %v3457_v4  ;;  %3693 = vmatmul.mubr.bf16.vlgmr.msra.gmra.mrb[56].mxu1 %v3457_v4 }
 0x89b   :  { %3973 = vmatprep.mubr.bf16.mxu0 %v8373_v46  ;;  %4014 = vmatprep.mubr.bf16.mxu1 %v8373_v46 }
 0x89c   :  { %3942 = vmatpush1.bf16.msra.mxu0 %v7795_v60  ;;  %3983 = vmatpush1.bf16.msra.mxu1 %v7805_v51 }
 0x89d   :  { %3943 = vmatprep.subr.bf16.mxu0 %v7815_v20  ;;  %3984 = vmatprep.subr.bf16.mxu1 %v7821_v48 }
 0x8a0   :  { %3944 = vmatpush1.bf16.msra.mxu0 %v7828_v40  ;;  %3985 = vmatpush1.bf16.msra.mxu1 %v7835_v29 }
 0x8a1   :  { %3945 = vmatprep.subr.bf16.mxu0 %v7840_v21  ;;  %3986 = vmatprep.subr.bf16.mxu1 %v7846_v22 }
 0x8a4   :  { %3946 = vmatpush1.bf16.msra.mxu0 %v7852_v6  ;;  %3987 = vmatpush1.bf16.msra.mxu1 %v7859_v14 }
 0x8a5   :  { %3947 = vmatprep.subr.bf16.mxu0 %v7864_v62  ;;  %3988 = vmatprep.subr.bf16.mxu1 %v7870_v55 }
 0x8a8   :  { %3948 = vmatpush1.bf16.msra.mxu0 %v7876_v3  ;;  %3989 = vmatpush1.bf16.msra.mxu1 %v7883_v17 }
 0x8a9   :  { %3949 = vmatprep.subr.bf16.mxu0 %v7888_v1  ;;  %3990 = vmatprep.subr.bf16.mxu1 %v7894_v34 }
 0x8ac   :  { %3950 = vmatpush1.bf16.msra.mxu0 %v7900_v33  ;;  %3991 = vmatpush1.bf16.msra.mxu1 %v7907_v25 }
 0x8ad   :  { %3951 = vmatprep.subr.bf16.mxu0 %v7912_v37  ;;  %3992 = vmatprep.subr.bf16.mxu1 %v7918_v61 }
 0x8b0   :  { %3952 = vmatpush1.bf16.msra.mxu0 %v7924_v8  ;;  %3993 = vmatpush1.bf16.msra.mxu1 %v7931_v45 }
 0x8b1   :  { %3953 = vmatprep.subr.bf16.mxu0 %v7936_v26  ;;  %3994 = vmatprep.subr.bf16.mxu1 %v7942_v52 }
 0x8b4   :  { %3954 = vmatpush1.bf16.msra.mxu0 %v7948_v16  ;;  %3995 = vmatpush1.bf16.msra.mxu1 %v7955_v39 }
 0x8b5   :  { %3955 = vmatprep.subr.bf16.mxu0 %v7960_v32  ;;  %3996 = vmatprep.subr.bf16.mxu1 %v7966_v11 }
 0x8b8   :  { %3956 = vmatpush1.bf16.msra.mxu0 %v7972_v9  ;;  %3997 = vmatpush1.bf16.msra.mxu1 %v7979_v36 }
 0x8b9   :  { %4248 = vmatprep.subr.bf16.mxu0 %v7800_v42  ;;  %4289 = vmatprep.subr.bf16.mxu1 %v7810_v54 }
 0x96d   :  { %v3653_v63 = vpop.f32.mrb[40].mxu0  ;;  %v3694_v41 = vpop.f32.mrb[56].mxu1 }
 0x96e   :  { %v3705_v35 = vrot.slane %v3653_v63, 2  ;;  %v3655_v47 = vpop.f32.mrb[41].mxu0  ;;  %v3696_v15 = vpop.f32.mrb[57].mxu1  ;;  %v3707_v43 = vrot.slane %v3694_v41, 2 }
 0x96f   :  { %v3706_v58 = vrot.slane %v3655_v47, 2  ;;  %v3657_v44 = vpop.f32.mrb[42].mxu0  ;;  %v3698_v24 = vpop.f32.mrb[58].mxu1  ;;  %v3708_v38 = vrot.slane %v3696_v15, 2  ;;  %v3737_v47 = vrot.slane %v7787_v27, 6 }
 0x970   :  { %v3713_v49 = vadd.f32 %v3705_v35, %v7686_v50  ;;  %v3658_v31 = vpop.f32.mrb[43].mxu0  ;;  %v3699_v5 = vpop.f32.mrb[59].mxu1  ;;  %v3715_v28 = vadd.f32 %v3707_v43, %v7695_v30 }
 0x971   :  { %v3714_v53 = vadd.f32 %v3706_v58, %v7688_v12  ;;  %v3716_v13 = vadd.f32 %v3708_v38, %v7692_v23 }
 0x972   :  { %v5384_v57 = vmul.f32 -1.442695, %v3713_v49 }
 0x973   :  { %v5385_v18 = vmul.f32 -1.442695, %v3714_v53  ;;  %v5386_v7 = vmul.f32 -1.442695, %v3716_v13 }
 0x974   :  { %5979 = vpow2.f32 %v5384_v57 }
 0x975   :  { %5981 = vpow2.f32 %v5385_v18 }
 0x976   :  { %5983 = vpow2.f32 %v5386_v7 }
 0x977   :  { %5985 = vtanh.f32 %v3715_v28 }
 0x97e   :  { %v5980_v10 = vpop.eup %5979 }
 0x97f   :  { %v5982_v0 = vpop.eup %5981  ;;  %v3720_v4 = vadd.f32 1.0, %v5980_v10 }
 0x980   :  { %v3726_v50 = vadd.f32 1.0, %v5982_v0  ;;  %v5984_v12 = vpop.eup %5983 }
 0x981   :  { %5987 = vrcp.f32 %v3720_v4  ;;  %v5986_v63 = vpop.eup %5985  ;;  %v3733_v23 = vadd.f32 1.0, %v5984_v12 }
 0x982   :  { %5989 = vrcp.f32 %v3726_v50 }
 0x983   :  { %5991 = vrcp.f32 %v3733_v23 }
 0x98b   :  { %v5988_v35 = vpop.eup %5987 }
 0x98c   :  { %v5990_v15 = vpop.eup %5989  ;;  %v3740_v58 = vmul.f32 %v5988_v35, %v5986_v63 }
 0x98d   :  { %v3739_v41 = vmul.f32 %v5990_v15, %v3737_v47  ;;  %v5992_v30 = vpop.eup %5991 }
 0x98f   :  { %v7991_v44 = vadd.f32 %v3740_v58, %v3739_v41 }
 0x991   :  { %5993 = vtanh.f32 %v7991_v44 }
 0x99b   :  { %v5994_v24 = vpop.eup %5993 }
 0x99c   :  { %v3743_v49 = vmul.f32 %v5994_v24, %v5992_v30  ;;  %v4047_v24 = vrot.slane %v7991_v44, 6 }
 0x99e   :  { %3744 = vst [vmem:[#allocation2] sm:$0xc0] %v3743_v49  ;;  %v3745_v31 = vpack.c.bf16 %v3743_v49, %v3743_v49 }
 0x9a0   :  { %v3779_v5 = vrot.slane %v3745_v31, 3 }
 0x9a2   :  { %3974 = vmatmul.mubr.bf16.vlgmr.msra.gmra.mrb[44].mxu0 %v3779_v5  ;;  %4015 = vmatmul.mubr.bf16.vlgmr.msra.gmra.mrb[60].mxu1 %v3779_v5 }
 0x9a3   :  { %4249 = vmatpush1.bf16.msra.mxu0 %v7795_v60  ;;  %4290 = vmatpush1.bf16.msra.mxu1 %v7805_v51 }
 0x9a4   :  { %4250 = vmatprep.subr.bf16.mxu0 %v7815_v20  ;;  %4291 = vmatprep.subr.bf16.mxu1 %v7821_v48 }
 0x9a5   :  { %4280 = vmatprep.mubr.bf16.mxu0 %v8373_v46  ;;  %4321 = vmatprep.mubr.bf16.mxu1 %v8373_v46 }
 0x9a7   :  { %4251 = vmatpush1.bf16.msra.mxu0 %v7828_v40  ;;  %4292 = vmatpush1.bf16.msra.mxu1 %v7835_v29 }
 0x9a8   :  { %4252 = vmatprep.subr.bf16.mxu0 %v7840_v21  ;;  %4293 = vmatprep.subr.bf16.mxu1 %v7846_v22 }
 0x9ab   :  { %4253 = vmatpush1.bf16.msra.mxu0 %v7852_v6  ;;  %4294 = vmatpush1.bf16.msra.mxu1 %v7859_v14 }
 0x9ac   :  { %4254 = vmatprep.subr.bf16.mxu0 %v7864_v62  ;;  %4295 = vmatprep.subr.bf16.mxu1 %v7870_v55 }
 0x9af   :  { %4255 = vmatpush1.bf16.msra.mxu0 %v7876_v3  ;;  %4296 = vmatpush1.bf16.msra.mxu1 %v7883_v17 }
 0x9b0   :  { %4256 = vmatprep.subr.bf16.mxu0 %v7888_v1  ;;  %4297 = vmatprep.subr.bf16.mxu1 %v7894_v34 }
 0x9b3   :  { %4257 = vmatpush1.bf16.msra.mxu0 %v7900_v33  ;;  %4298 = vmatpush1.bf16.msra.mxu1 %v7907_v25 }
 0x9b4   :  { %4258 = vmatprep.subr.bf16.mxu0 %v7912_v37  ;;  %4299 = vmatprep.subr.bf16.mxu1 %v7918_v61 }
 0x9b7   :  { %4259 = vmatpush1.bf16.msra.mxu0 %v7924_v8  ;;  %4300 = vmatpush1.bf16.msra.mxu1 %v7931_v45 }
 0x9b8   :  { %4260 = vmatprep.subr.bf16.mxu0 %v7936_v26  ;;  %4301 = vmatprep.subr.bf16.mxu1 %v7942_v52 }
 0x9bb   :  { %4261 = vmatpush1.bf16.msra.mxu0 %v7948_v16  ;;  %4302 = vmatpush1.bf16.msra.mxu1 %v7955_v39 }
 0x9bc   :  { %4262 = vmatprep.subr.bf16.mxu0 %v7960_v32  ;;  %4303 = vmatprep.subr.bf16.mxu1 %v7966_v11 }
 0x9bf   :  { %4263 = vmatpush1.bf16.msra.mxu0 %v7972_v9  ;;  %4304 = vmatpush1.bf16.msra.mxu1 %v7979_v36 }
 0x9c0   :  { %4570 = vmatprep.subr.bf16.mxu0 %v7800_v42  ;;  %4611 = vmatprep.subr.bf16.mxu1 %v7810_v54 }
 0xa75   :  { %v3975_v27 = vpop.f32.mrb[44].mxu0  ;;  %v4016_v53 = vpop.f32.mrb[60].mxu1 }
 0xa76   :  { %v4023_v57 = vadd.f32 %v3975_v27, %v7678_v56  ;;  %v3977_v18 = vpop.f32.mrb[45].mxu0  ;;  %v4018_v38 = vpop.f32.mrb[61].mxu1  ;;  %v4025_v63 = vadd.f32 %v4016_v53, %v7680_v2 }
 0xa77   :  { %v4024_v13 = vadd.f32 %v3977_v18, %v7682_v59  ;;  %v3979_v43 = vpop.f32.mrb[46].mxu0  ;;  %v4020_v7 = vpop.f32.mrb[62].mxu1  ;;  %v4026_v50 = vadd.f32 %v4018_v38, %v7684_v19 }
 0xa78   :  { %v5419_v28 = vmul.f32 -1.442695, %v4023_v57  ;;  %v3980_v10 = vpop.f32.mrb[47].mxu0  ;;  %v4021_v0 = vpop.f32.mrb[63].mxu1 }
 0xa79   :  { %v5420_v4 = vmul.f32 -1.442695, %v4024_v13  ;;  %v5421_v12 = vmul.f32 -1.442695, %v4026_v50 }
 0xa7a   :  { %5995 = vpow2.f32 %v5419_v28 }
 0xa7b   :  { %5997 = vpow2.f32 %v5420_v4 }
 0xa7c   :  { %5999 = vpow2.f32 %v5421_v12 }
 0xa7d   :  { %6001 = vtanh.f32 %v4025_v63 }
 0xa84   :  { %v5996_v35 = vpop.eup %5995 }
 0xa85   :  { %v5998_v47 = vpop.eup %5997  ;;  %v4030_v15 = vadd.f32 1.0, %v5996_v35 }
 0xa86   :  { %v4036_v58 = vadd.f32 1.0, %v5998_v47  ;;  %v6000_v23 = vpop.eup %5999 }
 0xa87   :  { %6003 = vrcp.f32 %v4030_v15  ;;  %v6002_v41 = vpop.eup %6001  ;;  %v4043_v5 = vadd.f32 1.0, %v6000_v23 }
 0xa88   :  { %6005 = vrcp.f32 %v4036_v58 }
 0xa89   :  { %6007 = vrcp.f32 %v4043_v5 }
 0xa91   :  { %v6004_v30 = vpop.eup %6003 }
 0xa92   :  { %v6006_v49 = vpop.eup %6005  ;;  %v4050_v31 = vmul.f32 %v6004_v30, %v6002_v41 }
 0xa93   :  { %v4049_v27 = vmul.f32 %v6006_v49, %v4047_v24  ;;  %v6008_v53 = vpop.eup %6007 }
 0xa95   :  { %v8033_v57 = vadd.f32 %v4050_v31, %v4049_v27 }
 0xa97   :  { %6009 = vtanh.f32 %v8033_v57 }
 0xaa1   :  { %v6010_v18 = vpop.eup %6009 }
 0xaa2   :  { %v4053_v38 = vmul.f32 %v6010_v18, %v6008_v53 }
 0xaa4   :  { %4054 = vst [vmem:[#allocation2 + $0x8] sm:$0x3] %v4053_v38  ;;  %v4055_v13 = vpack.c.bf16 %v4053_v38, %v4053_v38  ;;  %v4366_v38 = vrot.slane %v8033_v57, 6 }
 0xaa6   :  { %4281 = vmatmul.mubr.bf16.vlgmr.msra.gmra.mrb[48].mxu0 %v4055_v13  ;;  %4322 = vmatmul.mubr.bf16.vlgmr.msra.gmra.mrb[64].mxu1 %v4055_v13 }
 0xaa7   :  { %4571 = vmatpush1.bf16.msra.mxu0 %v7795_v60  ;;  %4612 = vmatpush1.bf16.msra.mxu1 %v7805_v51 }
 0xaa8   :  { %4572 = vmatprep.subr.bf16.mxu0 %v7815_v20  ;;  %4613 = vmatprep.subr.bf16.mxu1 %v7821_v48 }
 0xaa9   :  { %4602 = vmatprep.mubr.bf16.mxu0 %v8373_v46  ;;  %4643 = vmatprep.mubr.bf16.mxu1 %v8373_v46 }
 0xaab   :  { %4573 = vmatpush1.bf16.msra.mxu0 %v7828_v40  ;;  %4614 = vmatpush1.bf16.msra.mxu1 %v7835_v29 }
 0xaac   :  { %4574 = vmatprep.subr.bf16.mxu0 %v7840_v21  ;;  %4615 = vmatprep.subr.bf16.mxu1 %v7846_v22 }
 0xaaf   :  { %4575 = vmatpush1.bf16.msra.mxu0 %v7852_v6  ;;  %4616 = vmatpush1.bf16.msra.mxu1 %v7859_v14 }
 0xab0   :  { %4576 = vmatprep.subr.bf16.mxu0 %v7864_v62  ;;  %4617 = vmatprep.subr.bf16.mxu1 %v7870_v55 }
 0xab3   :  { %4577 = vmatpush1.bf16.msra.mxu0 %v7876_v3  ;;  %4618 = vmatpush1.bf16.msra.mxu1 %v7883_v17 }
 0xab4   :  { %4578 = vmatprep.subr.bf16.mxu0 %v7888_v1  ;;  %4619 = vmatprep.subr.bf16.mxu1 %v7894_v34 }
 0xab7   :  { %4579 = vmatpush1.bf16.msra.mxu0 %v7900_v33  ;;  %4620 = vmatpush1.bf16.msra.mxu1 %v7907_v25 }
 0xab8   :  { %4580 = vmatprep.subr.bf16.mxu0 %v7912_v37  ;;  %4621 = vmatprep.subr.bf16.mxu1 %v7918_v61 }
 0xabb   :  { %4581 = vmatpush1.bf16.msra.mxu0 %v7924_v8  ;;  %4622 = vmatpush1.bf16.msra.mxu1 %v7931_v45 }
 0xabc   :  { %4582 = vmatprep.subr.bf16.mxu0 %v7936_v26  ;;  %4623 = vmatprep.subr.bf16.mxu1 %v7942_v52 }
 0xabf   :  { %4583 = vmatpush1.bf16.msra.mxu0 %v7948_v16  ;;  %4624 = vmatpush1.bf16.msra.mxu1 %v7955_v39 }
 0xac0   :  { %4584 = vmatprep.subr.bf16.mxu0 %v7960_v32  ;;  %4625 = vmatprep.subr.bf16.mxu1 %v7966_v11 }
 0xac3   :  { %4585 = vmatpush1.bf16.msra.mxu0 %v7972_v9  ;;  %4626 = vmatpush1.bf16.msra.mxu1 %v7979_v36 }
 0xac4   :  { %4892 = vmatprep.subr.bf16.mxu0 %v7800_v42  ;;  %4933 = vmatprep.subr.bf16.mxu1 %v7810_v54 }
 0xb79   :  { %v4282_v44 = vpop.f32.mrb[48].mxu0  ;;  %v4323_v43 = vpop.f32.mrb[64].mxu1 }
 0xb7a   :  { %v4334_v7 = vrot.slane %v4282_v44, 6  ;;  %v4284_v28 = vpop.f32.mrb[49].mxu0  ;;  %v4325_v10 = vpop.f32.mrb[65].mxu1  ;;  %v4336_v54 = vrot.slane %v4323_v43, 6 }
 0xb7b   :  { %v4335_v0 = vrot.slane %v4284_v28, 6  ;;  %v4286_v4 = vpop.f32.mrb[50].mxu0  ;;  %v4327_v50 = vpop.f32.mrb[66].mxu1  ;;  %v4337_v23 = vrot.slane %v4325_v10, 6 }
 0xb7c   :  { %v4342_v12 = vadd.f32 %v4334_v7, %v7678_v56  ;;  %v4287_v63 = vpop.f32.mrb[51].mxu0  ;;  %v4328_v35 = vpop.f32.mrb[67].mxu1  ;;  %v4344_v30 = vadd.f32 %v4336_v54, %v7680_v2  ;;  %v5828_v54 = vld [vmem:[%s8192_s12 + $0x8] sm:$0xff]  }
 0xb7d   :  { %v4343_v47 = vadd.f32 %v4335_v0, %v7682_v59  ;;  %v4345_v42 = vadd.f32 %v4337_v23, %v7684_v19  ;;  %v5827_v23 = vld [vmem:[%s8192_s12] sm:$0xff]  }
 0xb7e   :  { %v5454_v15 = vmul.f32 -1.442695, %v4342_v12 }
 0xb7f   :  { %v5455_v58 = vmul.f32 -1.442695, %v4343_v47  ;;  %v5456_v41 = vmul.f32 -1.442695, %v4345_v42  ;;  %v6110_v42 = vmov 0.0  }
 0xb80   :  { %6011 = vpow2.f32 %v5454_v15 }
 0xb81   :  { %6013 = vpow2.f32 %v5455_v58 }
 0xb82   :  { %6015 = vpow2.f32 %v5456_v41  ;;  %v5829_v41 = vld [vmem:[%s8192_s12 + $0x10] sm:$0xff]  }
 0xb83   :  { %6017 = vtanh.f32 %v4344_v30  ;;  %v5830_v30 = vld [vmem:[%s8192_s12 + $0x18] sm:$0xff]  }
 0xb8a   :  { %v6012_v24 = vpop.eup %6011 }
 0xb8b   :  { %v6014_v49 = vpop.eup %6013  ;;  %v4349_v31 = vadd.f32 1.0, %v6012_v24  ;;  %v5831_v24 = vld [vmem:[%s8192_s12 + $0x20] sm:$0xff]  }
 0xb8c   :  { %v4355_v5 = vadd.f32 1.0, %v6014_v49  ;;  %v6016_v27 = vpop.eup %6015  ;;  %v5832_v49 = vld [vmem:[%s8192_s12 + $0x28] sm:$0xff]  }
 0xb8d   :  { %6019 = vrcp.f32 %v4349_v31  ;;  %v6018_v53 = vpop.eup %6017  ;;  %v4362_v7 = vadd.f32 1.0, %v6016_v27  ;;  %v5833_v31 = vld [vmem:[%s8192_s12 + $0x30] sm:$0xff]  }
 0xb8e   :  { %6021 = vrcp.f32 %v4355_v5  ;;  %v5834_v5 = vld [vmem:[%s8192_s12 + $0x38] sm:$0xff]   ;;  %s6112_s12 = smov [#allocation4]  }
 0xb8f   :  { %6023 = vrcp.f32 %v4362_v7  ;;  %s5147_s6 = sshll.u32 %s6112_s12, 4  ;;  %s5148_s6 = int_to_ptr.vmem [resolvable:$true] %s5147_s6 }
 0xb90   :  { %s6061_s24 = scalar_lea.vmem %s5148_s6, 32  ;;  %p6066_p1 = scmp.lt.s32.totalorder %s5148_s6, %s5148_s6 }
 0xb91   :  { %p6062_p0 = scmp.ne.s32.totalorder %s5148_s6, %s6061_s24  ;;  %p6067_p2 = scmp.lt.s32.totalorder %s6061_s24, %s6061_s24 }
 0xb93   :  { %p6068_p3 = por %p6067_p2, %p6066_p1 }
 0xb95   :  { %p6069_p4 = pnand %p6068_p3, %p6062_p0 }
 0xb97   :  { %v6020_v18 = vpop.eup %6019 }
 0xb98   :  { %v6022_v13 = vpop.eup %6021  ;;  %v4369_v44 = vmul.f32 %v6020_v18, %v6018_v53 }
 0xb99   :  { %v4368_v43 = vmul.f32 %v6022_v13, %v4366_v38  ;;  %v6024_v10 = vpop.eup %6023 }
 0xb9b   :  { %v8075_v28 = vadd.f32 %v4369_v44, %v4368_v43 }
 0xb9d   :  { %6025 = vtanh.f32 %v8075_v28 }
 0xba7   :  { %v6026_v0 = vpop.eup %6025 }
 0xba8   :  { %v4372_v4 = vmul.f32 %v6026_v0, %v6024_v10 }
 0xbaa   :  { %4373 = vst [vmem:[#allocation2 + $0x8] sm:$0xc] %v4372_v4  ;;  %v4374_v50 = vpack.c.bf16 %v4372_v4, %v4372_v4 }
 0xbac   :  { %v4408_v12 = vrot.slane %v4374_v50, 1 }
 0xbae   :  { %4603 = vmatmul.mubr.bf16.vlgmr.msra.gmra.mrb[52].mxu0 %v4408_v12  ;;  %4644 = vmatmul.mubr.bf16.vlgmr.msra.gmra.mrb[68].mxu1 %v4408_v12 }
 0xbaf   :  { %4893 = vmatpush1.bf16.msra.mxu0 %v7795_v60  ;;  %4934 = vmatpush1.bf16.msra.mxu1 %v7805_v51 }
 0xbb0   :  { %4894 = vmatprep.subr.bf16.mxu0 %v7815_v20  ;;  %4935 = vmatprep.subr.bf16.mxu1 %v7821_v48 }
 0xbb1   :  { %4924 = vmatprep.mubr.bf16.mxu0 %v8373_v46  ;;  %4965 = vmatprep.mubr.bf16.mxu1 %v8373_v46 }
 0xbb3   :  { %4895 = vmatpush1.bf16.msra.mxu0 %v7828_v40  ;;  %4936 = vmatpush1.bf16.msra.mxu1 %v7835_v29 }
 0xbb4   :  { %4896 = vmatprep.subr.bf16.mxu0 %v7840_v21  ;;  %4937 = vmatprep.subr.bf16.mxu1 %v7846_v22 }
 0xbb7   :  { %4897 = vmatpush1.bf16.msra.mxu0 %v7852_v6  ;;  %4938 = vmatpush1.bf16.msra.mxu1 %v7859_v14 }
 0xbb8   :  { %4898 = vmatprep.subr.bf16.mxu0 %v7864_v62  ;;  %4939 = vmatprep.subr.bf16.mxu1 %v7870_v55 }
 0xbbb   :  { %4899 = vmatpush1.bf16.msra.mxu0 %v7876_v3  ;;  %4940 = vmatpush1.bf16.msra.mxu1 %v7883_v17 }
 0xbbc   :  { %4900 = vmatprep.subr.bf16.mxu0 %v7888_v1  ;;  %4941 = vmatprep.subr.bf16.mxu1 %v7894_v34 }
 0xbbf   :  { %4901 = vmatpush1.bf16.msra.mxu0 %v7900_v33  ;;  %4942 = vmatpush1.bf16.msra.mxu1 %v7907_v25 }
 0xbc0   :  { %4902 = vmatprep.subr.bf16.mxu0 %v7912_v37  ;;  %4943 = vmatprep.subr.bf16.mxu1 %v7918_v61 }
 0xbc3   :  { %4903 = vmatpush1.bf16.msra.mxu0 %v7924_v8  ;;  %4944 = vmatpush1.bf16.msra.mxu1 %v7931_v45 }
 0xbc4   :  { %4904 = vmatprep.subr.bf16.mxu0 %v7936_v26  ;;  %4945 = vmatprep.subr.bf16.mxu1 %v7942_v52 }
 0xbc7   :  { %4905 = vmatpush1.bf16.msra.mxu0 %v7948_v16  ;;  %4946 = vmatpush1.bf16.msra.mxu1 %v7955_v39  ;;  %v4688_v39 = vrot.slane %v8075_v28, 6 }
 0xbc8   :  { %4906 = vmatprep.subr.bf16.mxu0 %v7960_v32  ;;  %4947 = vmatprep.subr.bf16.mxu1 %v7966_v11 }
 0xbcb   :  { %4907 = vmatpush1.bf16.msra.mxu0 %v7972_v9  ;;  %4948 = vmatpush1.bf16.msra.mxu1 %v7979_v36 }
 0xbcc   :  { %5656 = vmatprep.subr.bf16.mxu0 %v6110_v42 }
 0xc81   :  { %v4604_v46 = vpop.f32.mrb[52].mxu0  ;;  %v4645_v60 = vpop.f32.mrb[68].mxu1 }
 0xc82   :  { %v4656_v51 = vrot.slane %v4604_v46, 4  ;;  %v4606_v20 = vpop.f32.mrb[53].mxu0  ;;  %v4647_v48 = vpop.f32.mrb[69].mxu1  ;;  %v4658_v34 = vrot.slane %v4645_v60, 4 }
 0xc83   :  { %v4657_v40 = vrot.slane %v4606_v20, 4  ;;  %v4608_v29 = vpop.f32.mrb[54].mxu0  ;;  %v4649_v21 = vpop.f32.mrb[70].mxu1  ;;  %v4659_v17 = vrot.slane %v4647_v48, 4 }
 0xc84   :  { %v4664_v22 = vadd.f32 %v4656_v51, %v7678_v56  ;;  %v4609_v6 = vpop.f32.mrb[55].mxu0  ;;  %v4650_v14 = vpop.f32.mrb[71].mxu1  ;;  %v4666_v25 = vadd.f32 %v4658_v34, %v7680_v2 }
 0xc85   :  { %v4665_v62 = vadd.f32 %v4657_v40, %v7682_v59  ;;  %v4667_v1 = vadd.f32 %v4659_v17, %v7684_v19 }
 0xc86   :  { %v5489_v55 = vmul.f32 -1.442695, %v4664_v22 }
 0xc87   :  { %v5490_v3 = vmul.f32 -1.442695, %v4665_v62  ;;  %v5491_v33 = vmul.f32 -1.442695, %v4667_v1 }
 0xc88   :  { %6027 = vpow2.f32 %v5489_v55 }
 0xc89   :  { %6029 = vpow2.f32 %v5490_v3 }
 0xc8a   :  { %6031 = vpow2.f32 %v5491_v33  ;;  %v5020_v33 = vld [vmem:[#allocation2] sm:$0xff] }
 0xc8b   :  { %6033 = vtanh.f32 %v4666_v25 }
 0xc92   :  { %v6028_v37 = vpop.eup %6027 }
 0xc93   :  { %v6030_v61 = vpop.eup %6029  ;;  %v4671_v8 = vadd.f32 1.0, %v6028_v37 }
 0xc94   :  { %v4677_v45 = vadd.f32 1.0, %v6030_v61  ;;  %v6032_v26 = vpop.eup %6031 }
 0xc95   :  { %6035 = vrcp.f32 %v4671_v8  ;;  %v6034_v52 = vpop.eup %6033  ;;  %v4684_v9 = vadd.f32 1.0, %v6032_v26 }
 0xc96   :  { %6037 = vrcp.f32 %v4677_v45 }
 0xc97   :  { %6039 = vrcp.f32 %v4684_v9 }
 0xc9f   :  { %v6036_v16 = vpop.eup %6035 }
 0xca0   :  { %v6038_v32 = vpop.eup %6037  ;;  %v4691_v11 = vmul.f32 %v6036_v16, %v6034_v52 }
 0xca1   :  { %v4690_v36 = vmul.f32 %v6038_v32, %v4688_v39  ;;  %v6040_v63 = vpop.eup %6039 }
 0xca3   :  { %v8115_v57 = vadd.f32 %v4691_v11, %v4690_v36 }
 0xca5   :  { %6041 = vtanh.f32 %v8115_v57  ;;  %v5010_v14 = vrot.slane %v8115_v57, 6 }
 0xcaf   :  { %v6042_v35 = vpop.eup %6041 }
 0xcb0   :  { %v4694_v47 = vmul.f32 %v6042_v35, %v6040_v63 }
 0xcb2   :  { %4695 = vst [vmem:[#allocation2 + $0x8] sm:$0x30] %v4694_v47  ;;  %v4696_v15 = vpack.c.bf16 %v4694_v47, %v4694_v47 }
 0xcb4   :  { %v4730_v58 = vrot.slane %v4696_v15, 2 }
 0xcb6   :  { %4925 = vmatmul.mubr.bf16.vlgmr.msra.gmra.mrb[56].mxu0 %v4730_v58  ;;  %4966 = vmatmul.mubr.bf16.vlgmr.msra.gmra.mrb[72].mxu1 %v4730_v58 }
 0xcb7   :  { %5657 = vmatpush3.bf16.msra.mxu0 %v5827_v23  ;;  %5672 = vmatprep.mubr.msk.bf16.mxu0 %vm6111_vm12, %v6110_v42 }
 0xcb8   :  { %5658 = vmatprep.subr.bf16.mxu0 %v6110_v42 }
 0xcbb   :  { %5659 = vmatpush3.bf16.msra.mxu0 %v5828_v54 }
 0xcbc   :  { %5660 = vmatprep.subr.bf16.mxu0 %v6110_v42 }
 0xcbf   :  { %5661 = vmatpush3.bf16.msra.mxu0 %v5829_v41 }
 0xcc0   :  { %5662 = vmatprep.subr.bf16.mxu0 %v6110_v42 }
 0xcc3   :  { %5663 = vmatpush3.bf16.msra.mxu0 %v5830_v30 }
 0xcc4   :  { %5664 = vmatprep.subr.bf16.mxu0 %v6110_v42 }
 0xcc7   :  { %5665 = vmatpush3.bf16.msra.mxu0 %v5831_v24 }
 0xcc8   :  { %5666 = vmatprep.subr.bf16.mxu0 %v6110_v42 }
 0xccb   :  { %5667 = vmatpush3.bf16.msra.mxu0 %v5832_v49 }
 0xccc   :  { %5668 = vmatprep.subr.bf16.mxu0 %v6110_v42 }
 0xccf   :  { %5669 = vmatpush3.bf16.msra.mxu0 %v5833_v31 }
 0xcd0   :  { %5670 = vmatprep.subr.bf16.mxu0 %v6110_v42 }
 0xcd3   :  { %5671 = vmatpush3.bf16.msra.mxu0 %v5834_v5 }
 0xd89   :  { %v4926_v27 = vpop.f32.mrb[56].mxu0  ;;  %v4967_v53 = vpop.f32.mrb[72].mxu1 }
 0xd8a   :  { %v4978_v18 = vrot.slane %v4926_v27, 2  ;;  %v4928_v38 = vpop.f32.mrb[57].mxu0  ;;  %v4969_v13 = vpop.f32.mrb[73].mxu1  ;;  %v4980_v51 = vrot.slane %v4967_v53, 2 }
 0xd8b   :  { %v4979_v44 = vrot.slane %v4928_v38, 2  ;;  %v4930_v7 = vpop.f32.mrb[58].mxu0  ;;  %v4971_v43 = vpop.f32.mrb[74].mxu1  ;;  %v4981_v46 = vrot.slane %v4969_v13, 2 }
 0xd8c   :  { %v4986_v28 = vadd.f32 %v4978_v18, %v7678_v56  ;;  %v4931_v10 = vpop.f32.mrb[59].mxu0  ;;  %v4972_v0 = vpop.f32.mrb[75].mxu1  ;;  %v4988_v48 = vadd.f32 %v4980_v51, %v7680_v2 }
 0xd8d   :  { %v4987_v4 = vadd.f32 %v4979_v44, %v7682_v59  ;;  %v4989_v60 = vadd.f32 %v4981_v46, %v7684_v19 }
 0xd8e   :  { %v5524_v50 = vmul.f32 -1.442695, %v4986_v28 }
 0xd8f   :  { %v5525_v12 = vmul.f32 -1.442695, %v4987_v4  ;;  %v5526_v20 = vmul.f32 -1.442695, %v4989_v60 }
 0xd90   :  { %6043 = vpow2.f32 %v5524_v50 }
 0xd91   :  { %6045 = vpow2.f32 %v5525_v12 }
 0xd92   :  { %6047 = vpow2.f32 %v5526_v20 }
 0xd93   :  { %6049 = vtanh.f32 %v4988_v48 }
 0xd9a   :  { %v6044_v40 = vpop.eup %6043 }
 0xd9b   :  { %v6046_v29 = vpop.eup %6045  ;;  %v4993_v21 = vadd.f32 1.0, %v6044_v40 }
 0xd9c   :  { %v4999_v56 = vadd.f32 1.0, %v6046_v29  ;;  %v6048_v59 = vpop.eup %6047 }
 0xd9d   :  { %6051 = vrcp.f32 %v4993_v21  ;;  %v6050_v22 = vpop.eup %6049  ;;  %v5006_v19 = vadd.f32 1.0, %v6048_v59 }
 0xd9e   :  { %6053 = vrcp.f32 %v4999_v56 }
 0xd9f   :  { %6055 = vrcp.f32 %v5006_v19 }
 0xda7   :  { %v6052_v6 = vpop.eup %6051 }
 0xda8   :  { %v6054_v62 = vpop.eup %6053  ;;  %v5013_v55 = vmul.f32 %v6052_v6, %v6050_v22 }
 0xda9   :  { %v5012_v3 = vmul.f32 %v6054_v62, %v5010_v14  ;;  %v6056_v2 = vpop.eup %6055 }
 0xdab   :  { %v5014_v17 = vadd.f32 %v5013_v55, %v5012_v3 }
 0xdad   :  { %6057 = vtanh.f32 %v5014_v17  ;;  %5019 = vst [vmem:[#allocation6 - $0x6] sm:$0xc0] %v5014_v17 }
 0xdb7   :  { %v6058_v1 = vpop.eup %6057 }
 0xdb8   :  { %v5016_v34 = vmul.f32 %v6058_v1, %v6056_v2 }
 0xdba   :  { %5017 = vst [vmem:[#allocation2 + $0x8] sm:$0xc0] %v5016_v34  ;;  %5018 = vst [vmem:[#allocation4 - $0x6] sm:$0xc0] %v5016_v34 }
 0xdc1   :  { %v5021_v25 = vld [vmem:[#allocation2 + $0x8] sm:$0xff] }
 0xdc2   :  { %v5022_v37 = vpack.c.bf16 %v5021_v25, %v5020_v33 }
 0xdc4   :  { %5673 = vmatmul.mubr.bf16.vlgmr.msra.gmra.mrb[60].mxu0 %v5022_v37 }
 0xdc5   :  { %6072 = shalt.err (!%p6069_p4)
}
 0xdc6   :  { %s6073_s27 = scalar_lea.hbm %s8196_s16, 32 }
 0xdc7   :  { %p6074_p5 = scmp.ne.s32.totalorder %s8196_s16, %s6073_s27  ;;  %p6077_p6 = scmp.lt.u32.totalorder %s6073_s27, %s8196_s16 }
 0xdc9   :  { %p6079_p7 = pnand %p6077_p6, %p6074_p5 }
 0xdcb   :  { %6082 = shalt.err (!%p6079_p7)
}
 0xdcc   :  { %5150 = dma.vmem_to_hbm [thread:$0]  %s5148_s6, 32, %s8196_s16, [#allocation5]  }
 0xdcd   :  { %s6083_s19 = scalar_lea.vmem %s5158_s23, 32  ;;  %p6088_p9 = scmp.lt.s32.totalorder %s5158_s23, %s5158_s23 }
 0xdce   :  { %p6084_p8 = scmp.ne.s32.totalorder %s5158_s23, %s6083_s19  ;;  %p6089_p10 = scmp.lt.s32.totalorder %s6083_s19, %s6083_s19 }
 0xdd0   :  { %p6090_p11 = por %p6089_p10, %p6088_p9 }
 0xdd2   :  { %p6091_p12 = pnand %p6090_p11, %p6084_p8 }
 0xdd4   :  { %6094 = shalt.err (!%p6091_p12)
}
 0xdd5   :  { %s6095_s11 = scalar_lea.hbm %s8197_s17, 32 }
 0xdd6   :  { %p6096_p13 = scmp.ne.s32.totalorder %s8197_s17, %s6095_s11  ;;  %p6099_p0 = scmp.lt.u32.totalorder %s6095_s11, %s8197_s17 }
 0xdd8   :  { %p6101_p1 = pnand %p6099_p0, %p6096_p13 }
 0xdda   :  { %6104 = shalt.err (!%p6101_p1)
}
 0xddb   :  { %5160 = dma.vmem_to_hbm [thread:$0]  %s5158_s23, 32, %s8197_s17, [#allocation7]   ;;  %v5527_v61 = vld [vmem:[%s8193_s13] ss:$0 sm:$0xff] }
 0xe97   :  { %v5128_v8 = vpop.f32.mrb[60].mxu0 }
 0xe98   :  { %v5129_v45 = vadd.f32 %v5527_v61, %v5128_v8  ;;  %v5674_v26 = vpop.f32.mrb[61].mxu0 }
 0xe99   :  { %v5131_v52 = vpop.f32.mrb[62].mxu0 }
 0xe9a   :  { %5135 = vst [vmem:[%s8195_s15] sm:$0xff] %v5129_v45  ;;  %v5132_v16 = vadd.f32 %v5527_v61, %v5131_v52  ;;  %v5675_v39 = vpop.f32.mrb[63].mxu0 }
 0xe9c   :  { %5136 = vst [vmem:[%s8195_s15 + $0x8] sm:$0xff] %v5132_v16 }
 0xe9d   :  { %6105 = dma.done.wait [#allocation5], 32  }
 0xe9e   :  { %6106 = vsyncadd [#allocation5], 4294967264 }
 0xe9f   :  { %6107 = dma.done.wait [#allocation7], 32  }
 0xea0   :  { %6108 = vsyncadd [#allocation7], 4294967264 }
 0xea1   :  { %5171 = vsyncpa [#allocation5], 1 }
 0xea2   :  { %5172 = vsyncpa [#allocation7], 1 }

</bundles_post_ra>
